<compile_context>
chip_gen: v6e
topology: v6e:2x2x1
jax: 0.10.0
libtpu: 0.0.40
codegen_flags: <defaults>
</compile_context>

<pallas_src>
import math

import jax
import jax.numpy as jnp
from jax.experimental import pallas as pl
from jax.experimental.pallas import tpu as pltpu


_SQRT1_2 = 1.0 / math.sqrt(2.0)


def _gelu(x):
    # exact (erf) GELU, matching torch.nn.GELU() default
    return 0.5 * x * (1.0 + jax.lax.erf(x * _SQRT1_2))


def _round_up(a, b):
    return (a + b - 1) // b * b


def _default_tile():
    # 256 fills the 256-wide MXU of v6e/v7x; 128 is enough for v5e's 128-wide
    # MXU (bigger tiles there only add vreg/VMEM pressure).
    try:
        kind = jax.devices()[0].device_kind.lower()
    except Exception:
        return 128
    if ("v6" in kind) or ("v7" in kind) or ("7x" in kind):
        return 256
    return 128


# --------------------------------------------------------------------------
# Fused kernel: param generator + adaptive mixing + output projection
# --------------------------------------------------------------------------
def _fused_kernel(q_ref, x_ref, lnw_ref, lnb_ref, w1_ref, b1_ref,
                  w2_ref, b2_ref, mb_ref, sb_ref,
                  ex_ref, tc_ref, es_ref, to_ref, wp_ref, bp_ref, out_ref):
    f32 = jnp.float32
    bf16 = jnp.bfloat16

    T = q_ref.shape[0]            # tokens in this tile
    P = ex_ref.shape[0]           # in_points
    C = tc_ref.shape[0]           # eff_in_dim == eff_out_dim
    OP = es_ref.shape[0]          # out_points
    CC = C * C

    # ---- parameter generator: LayerNorm(eps=1e-6) -> Linear(Dq,128) -> Linear(128,total)
    q = q_ref[...].astype(f32)
    mean = jnp.mean(q, axis=-1, keepdims=True)
    var = jnp.mean((q - mean) ** 2, axis=-1, keepdims=True)
    qn = (q - mean) * jax.lax.rsqrt(var + 1e-6)
    qn = qn * lnw_ref[...] + lnb_ref[...]

    # first linear kept in f32 (tiny matmul; better accuracy of generated params)
    h = jnp.dot(qn, w1_ref[...], preferred_element_type=f32) + b1_ref[...]         # (T, 128)

    # merged second linear; slice at column CC (=1024) is 128-aligned -> free
    pgen = jnp.dot(h.astype(bf16), w2_ref[...],
                   preferred_element_type=f32) + b2_ref[...]                        # (T, CC + P*OP)
    cm = pgen[:, :CC].astype(bf16)     # (T, C*C)   lane i*C + j   (channel mixing)
    sm = pgen[:, CC:].astype(bf16)     # (T, P*OP)  lane p*OP + o  (spatial mixing, point-major)

    xb = x_ref[...]                    # bf16 (T, C*P), lane i*P + p (in-channel major)

    ex = ex_ref[...]                   # (P,  P*C)  : ex[p, p*C + j] = 1
    tc = tc_ref[...]                   # (C,  P*C)  : tc[j, p*C + j] = 1
    es = es_ref[...]                   # (OP, OP*C) : es[o, o*C + c] = 1
    to = to_ref[...]                   # (C,  OP*C) : to[c, o*C + c] = 1

    # ---- channel mixing: o1[t, p*C + j] = sum_i x[t,p,i] * cm[t,i,j]
    # Loop over the contraction index i; constant 0/1 matmuls do the lane-band
    # placement on the MXU, the FMA runs lane-dense on the VPU.  No relayouts.
    o1 = jnp.zeros((T, P * C), f32)
    for i in range(C):
        x_i = xb[:, i * P:(i + 1) * P]                                   # (T, P)
        cm_i = cm[:, i * C:(i + 1) * C]                                  # (T, C)
        x_exp = jnp.dot(x_i, ex, preferred_element_type=f32)             # (T, P*C)
        cm_til = jnp.dot(cm_i, tc, preferred_element_type=f32)           # (T, P*C)
        o1 = o1 + x_exp * cm_til
    o1 = _gelu(o1 + mb_ref[...])                                         # + m_beta[j]
    o1b = o1.astype(bf16)

    # ---- spatial mixing: o2[t, o*C + c] = sum_p sm[t,o,p] * o1[t,p,c]
    o2 = jnp.zeros((T, OP * C), f32)
    for p in range(P):
        sm_p = sm[:, p * OP:(p + 1) * OP]                                # (T, OP)
        o1_p = o1b[:, p * C:(p + 1) * C]                                 # (T, C)
        sm_exp = jnp.dot(sm_p, es, preferred_element_type=f32)           # (T, OP*C)
        o1_til = jnp.dot(o1_p, to, preferred_element_type=f32)           # (T, OP*C)
        o2 = o2 + sm_exp * o1_til
    o2 = _gelu(o2 + sb_ref[...])                                         # + s_beta[o]

    # ---- output projection: single K = OP*C matmul, 128-lane (unmasked) store
    y = jnp.dot(o2.astype(bf16), wp_ref[...], preferred_element_type=f32) + bp_ref[...]
    out_ref[...] = y.astype(out_ref.dtype)


# --------------------------------------------------------------------------
# Wrapper
# --------------------------------------------------------------------------
def adaptive_mixing_forward(x, query, params, *, tile=None):
    B, N, g, P, C = x.shape
    assert g == 1
    Dq = query.shape[-1]
    OP = params['s_beta'].shape[0]
    Q = params['proj_b'].shape[0]
    BN = B * N
    CC = C * C
    Q_pad = _round_up(Q, 128)

    f32, bf16 = jnp.float32, jnp.bfloat16

    if tile is None:
        tile = _default_tile()
    # clamp tile to the (8-rounded) token count; no forced >=2-step split
    tile = max(8, min(tile, _round_up(BN, 8)))
    BN_pad = _round_up(BN, tile)
    grid = (BN_pad // tile,)

    # tokens: query in f32 (LayerNorm precision), x streamed bf16 lane-dense in
    # "in-channel major" layout  x_im[t, i*P + p] = x[t, p, i].
    # NOTE: padding rows are zeros; LayerNorm of a zero row stays finite and the
    # padded rows are sliced away below -- do not change the padding value.
    q2 = query.reshape(BN, Dq).astype(f32)
    x_im = x.reshape(BN, P, C).transpose(0, 2, 1).reshape(BN, C * P).astype(bf16)
    if BN_pad != BN:
        q2 = jnp.pad(q2, ((0, BN_pad - BN), (0, 0)))
        x_im = jnp.pad(x_im, ((0, BN_pad - BN), (0, 0)))

    # ---- one-time weight prep (outside the kernel) ----
    lnw = params['ln_w'][None, :].astype(f32)
    lnb = params['ln_b'][None, :].astype(f32)
    w1 = params['w1'].T.astype(f32)                                  # (Dq, 128), f32 (tiny)
    b1 = params['b1'][None, :].astype(f32)

    w2t = params['w2'].T                                             # (128, total)
    b2 = params['b2']
    # spatial half permuted to point-major: new column p*OP + o <- old o*P + p
    perm = jnp.arange(OP * P).reshape(OP, P).T.reshape(-1)
    w2_m = jnp.concatenate([w2t[:, :CC], w2t[:, CC:][:, perm]], axis=1).astype(bf16)
    b2_m = jnp.concatenate([b2[:CC], b2[CC:][perm]])[None, :].astype(f32)

    mb_t = jnp.tile(params['m_beta'], P)[None, :].astype(f32)        # (1, P*C):  m_beta[j] at p*C+j
    sb_e = jnp.repeat(params['s_beta'], C)[None, :].astype(f32)      # (1, OP*C): s_beta[o] at o*C+c

    # constant 0/1 placement matrices (the MXU does the lane relayouts)
    ex = jnp.repeat(jnp.eye(P, dtype=bf16), C, axis=1)               # (P,  P*C)
    tc = jnp.tile(jnp.eye(C, dtype=bf16), (1, P))                    # (C,  P*C)
    es = jnp.repeat(jnp.eye(OP, dtype=bf16), C, axis=1)              # (OP, OP*C)
    to = jnp.tile(jnp.eye(C, dtype=bf16), (1, OP))                   # (C,  OP*C)

    wp = jnp.pad(params['proj_w'].T.astype(bf16), ((0, 0), (0, Q_pad - Q)))   # (OP*C, Q_pad)
    bp = jnp.pad(params['proj_b'], (0, Q_pad - Q))[None, :].astype(f32)       # (1, Q_pad)

    vmem_full = pl.BlockSpec(memory_space=pltpu.MemorySpace.VMEM)    # resident weight, no blocking

    kernel = pl.pallas_call(
        _fused_kernel,
        out_shape=jax.ShapeDtypeStruct((BN_pad, Q_pad), jnp.float32),
        grid_spec=pltpu.PrefetchScalarGridSpec(
            num_scalar_prefetch=0,
            grid=grid,
            in_specs=[
                pl.BlockSpec((tile, Dq), lambda i: (i, 0)),          # query
                pl.BlockSpec((tile, C * P), lambda i: (i, 0)),       # x (bf16, lane-dense)
                vmem_full,   # ln_w
                vmem_full,   # ln_b
                vmem_full,   # w1
                vmem_full,   # b1
                vmem_full,   # w2 (merged, spatial half point-major)
                vmem_full,   # b2 (merged)
                vmem_full,   # m_beta tiled
                vmem_full,   # s_beta expanded
                vmem_full,   # ex
                vmem_full,   # tc
                vmem_full,   # es
                vmem_full,   # to
                vmem_full,   # proj_w (padded to Q_pad)
                vmem_full,   # proj_b (padded to Q_pad)
            ],
            out_specs=pl.BlockSpec((tile, Q_pad), lambda i: (i, 0)),
        ),
        compiler_params=pltpu.CompilerParams(
            dimension_semantics=("parallel",),
            vmem_limit_bytes=48 * 1024 * 1024,
        ),
    )
    y = kernel(q2, x_im, lnw, lnb, w1, b1, w2_m, b2_m, mb_t, sb_e,
               ex, tc, es, to, wp, bp)
    return y[:BN, :Q].reshape(B, N, Q)


# --------------------------------------------------------------------------
# Pure-JAX reference (mirrors the PyTorch forward, f32 throughout)
# --------------------------------------------------------------------------
def reference_forward(x, query, p):
    B, N, g, P, C = x.shape
    BN = B * N
    q2 = query.reshape(BN, -1)
    mean = q2.mean(-1, keepdims=True)
    var = ((q2 - mean) ** 2).mean(-1, keepdims=True)
    qn = (q2 - mean) / jnp.sqrt(var + 1e-6) * p['ln_w'] + p['ln_b']
    h = qn @ p['w1'].T + p['b1']
    pr = h @ p['w2'].T + p['b2']
    OP = p['s_beta'].shape[0]
    cm = pr[:, :C * C].reshape(BN, C, C)
    sm = pr[:, C * C:].reshape(BN, OP, P)
    o = x.reshape(BN, P, C)
    o = _gelu(jnp.einsum('bpc,bcd->bpd', o, cm) + p['m_beta'][None, None, :])
    o = _gelu(jnp.einsum('bop,bpc->boc', sm, o) + p['s_beta'][None, :, None])
    o = o.reshape(BN, -1) @ p['proj_w'].T + p['proj_b']
    return o.reshape(B, N, -1)


if __name__ == "__main__":
    # module config: in_dim=32, in_points=8, n_groups=1 (g==1 assert in forward)
    # -> eff_in_dim = eff_out_dim = 32, out_points = max(in_points, 32) = 32,
    #    query_dim = out_query_dim = 32, total_param_count = 32*32 + 32*8 = 1280
    B, N, P, C = 2, 8, 8, 32
    Dq, OP, Q = 32, 32, 32
    total = C * C + OP * P

    key = jax.random.PRNGKey(0)
    ks = jax.random.split(key, 10)

    params = {
        # LayerNorm init per init_layer_norm_unit_norm (gamma * width^-0.5)
        'ln_w': jnp.ones((Dq,), jnp.float32) * (Dq ** -0.5),
        'ln_b': jnp.zeros((Dq,), jnp.float32),
        'w1': 0.10 * jax.random.normal(ks[0], (128, Dq), jnp.float32),
        'b1': 0.10 * jax.random.normal(ks[1], (128,), jnp.float32),
        'w2': 0.02 * jax.random.normal(ks[2], (total, 128), jnp.float32),
        'b2': 0.02 * jax.random.normal(ks[3], (total,), jnp.float32),
        'm_beta': 0.01 * jax.random.normal(ks[4], (C,), jnp.float32),
        's_beta': 0.01 * jax.random.normal(ks[5], (OP,), jnp.float32),
        'proj_w': 0.05 * jax.random.normal(ks[6], (Q, OP * C), jnp.float32),
        'proj_b': 0.05 * jax.random.normal(ks[7], (Q,), jnp.float32),
    }

    x = jax.random.normal(ks[8], (B, N, 1, P, C), jnp.float32)
    query = jax.random.normal(ks[9], (B, N, Dq), jnp.float32)

    out = adaptive_mixing_forward(x, query, params)
    out = jax.block_until_ready(out)

    ref = reference_forward(x, query, params)
    err = float(jnp.max(jnp.abs(out - ref)))
    assert out.shape == (B, N, Q), out.shape
    assert err < 2e-2, f"max abs error too large: {err}"
    print("KERNEL_OK")
</pallas_src>

<mosaic_0001>
module attributes {stable_mosaic.version = 11 : i64} {
  func.func @_fused_kernel(%arg0: i32, %arg1: memref<16x32xf32, #tpu.memory_space<vmem>>, %arg2: memref<16x256xbf16, #tpu.memory_space<vmem>>, %arg3: memref<1x32xf32, #tpu.memory_space<vmem>>, %arg4: memref<1x32xf32, #tpu.memory_space<vmem>>, %arg5: memref<32x128xf32, #tpu.memory_space<vmem>>, %arg6: memref<1x128xf32, #tpu.memory_space<vmem>>, %arg7: memref<128x1280xbf16, #tpu.memory_space<vmem>>, %arg8: memref<1x1280xf32, #tpu.memory_space<vmem>>, %arg9: memref<1x256xf32, #tpu.memory_space<vmem>>, %arg10: memref<1x1024xf32, #tpu.memory_space<vmem>>, %arg11: memref<8x256xbf16, #tpu.memory_space<vmem>>, %arg12: memref<32x256xbf16, #tpu.memory_space<vmem>>, %arg13: memref<32x1024xbf16, #tpu.memory_space<vmem>>, %arg14: memref<32x1024xbf16, #tpu.memory_space<vmem>>, %arg15: memref<1024x128xbf16, #tpu.memory_space<vmem>>, %arg16: memref<1x128xf32, #tpu.memory_space<vmem>>, %arg17: memref<16x128xf32, #tpu.memory_space<vmem>>) attributes {dimension_semantics = [#tpu.dimension_semantics<parallel>], iteration_bounds = array<i64: 1>, scalar_prefetch = 0 : i64, scratch_operands = 0 : i64, tpu.core_type = #tpu.core_type<tc>, window_params = [{transform_indices = @transform_0, window_bounds = array<i64: 16, 32>}, {transform_indices = @transform_1, window_bounds = array<i64: 16, 256>}, {pipeline_mode = #tpu.pipeline_mode<synchronous>, transform_indices = @transform_2, window_bounds = array<i64: 1, 32>}, {pipeline_mode = #tpu.pipeline_mode<synchronous>, transform_indices = @transform_3, window_bounds = array<i64: 1, 32>}, {pipeline_mode = #tpu.pipeline_mode<synchronous>, transform_indices = @transform_4, window_bounds = array<i64: 32, 128>}, {pipeline_mode = #tpu.pipeline_mode<synchronous>, transform_indices = @transform_5, window_bounds = array<i64: 1, 128>}, {pipeline_mode = #tpu.pipeline_mode<synchronous>, transform_indices = @transform_6, window_bounds = array<i64: 128, 1280>}, {pipeline_mode = #tpu.pipeline_mode<synchronous>, transform_indices = @transform_7, window_bounds = array<i64: 1, 1280>}, {pipeline_mode = #tpu.pipeline_mode<synchronous>, transform_indices = @transform_8, window_bounds = array<i64: 1, 256>}, {pipeline_mode = #tpu.pipeline_mode<synchronous>, transform_indices = @transform_9, window_bounds = array<i64: 1, 1024>}, {pipeline_mode = #tpu.pipeline_mode<synchronous>, transform_indices = @transform_10, window_bounds = array<i64: 8, 256>}, {pipeline_mode = #tpu.pipeline_mode<synchronous>, transform_indices = @transform_11, window_bounds = array<i64: 32, 256>}, {pipeline_mode = #tpu.pipeline_mode<synchronous>, transform_indices = @transform_12, window_bounds = array<i64: 32, 1024>}, {pipeline_mode = #tpu.pipeline_mode<synchronous>, transform_indices = @transform_13, window_bounds = array<i64: 32, 1024>}, {pipeline_mode = #tpu.pipeline_mode<synchronous>, transform_indices = @transform_14, window_bounds = array<i64: 1024, 128>}, {pipeline_mode = #tpu.pipeline_mode<synchronous>, transform_indices = @transform_15, window_bounds = array<i64: 1, 128>}, {transform_indices = @transform_16, window_bounds = array<i64: 16, 128>}]} {
    %c0 = arith.constant 0 : index
    %c0_0 = arith.constant 0 : index
    %0 = vector.load %arg1[%c0, %c0_0] : memref<16x32xf32, #tpu.memory_space<vmem>>, vector<16x32xf32>
    %cst = arith.constant dense<0.000000e+00> : vector<16xf32>
    %1 = vector.multi_reduction <add>, %0, %cst [1] : vector<16x32xf32> to vector<16xf32>
    %2 = vector.shape_cast %1 : vector<16xf32> to vector<16x1xf32>
    %cst_1 = arith.constant 3.200000e+01 : f32
    %3 = vector.broadcast %cst_1 : f32 to vector<16x1xf32>
    %4 = arith.divf %2, %3 : vector<16x1xf32>
    %5 = vector.broadcast %4 : vector<16x1xf32> to vector<16x32xf32>
    %6 = arith.subf %0, %5 : vector<16x32xf32>
    %7 = arith.mulf %6, %6 : vector<16x32xf32>
    %cst_2 = arith.constant dense<0.000000e+00> : vector<16xf32>
    %8 = vector.multi_reduction <add>, %7, %cst_2 [1] : vector<16x32xf32> to vector<16xf32>
    %9 = vector.shape_cast %8 : vector<16xf32> to vector<16x1xf32>
    %cst_3 = arith.constant 3.200000e+01 : f32
    %10 = vector.broadcast %cst_3 : f32 to vector<16x1xf32>
    %11 = arith.divf %9, %10 : vector<16x1xf32>
    %12 = vector.broadcast %4 : vector<16x1xf32> to vector<16x32xf32>
    %13 = arith.subf %0, %12 : vector<16x32xf32>
    %cst_4 = arith.constant 9.99999997E-7 : f32
    %14 = vector.broadcast %cst_4 : f32 to vector<16x1xf32>
    %15 = arith.addf %11, %14 : vector<16x1xf32>
    %16 = math.rsqrt %15 : vector<16x1xf32>
    %17 = vector.broadcast %16 : vector<16x1xf32> to vector<16x32xf32>
    %18 = arith.mulf %13, %17 : vector<16x32xf32>
    %c0_5 = arith.constant 0 : index
    %c0_6 = arith.constant 0 : index
    %19 = vector.load %arg3[%c0_5, %c0_6] : memref<1x32xf32, #tpu.memory_space<vmem>>, vector<1x32xf32>
    %20 = vector.broadcast %19 : vector<1x32xf32> to vector<16x32xf32>
    %21 = arith.mulf %18, %20 : vector<16x32xf32>
    %c0_7 = arith.constant 0 : index
    %c0_8 = arith.constant 0 : index
    %22 = vector.load %arg4[%c0_7, %c0_8] : memref<1x32xf32, #tpu.memory_space<vmem>>, vector<1x32xf32>
    %23 = vector.broadcast %22 : vector<1x32xf32> to vector<16x32xf32>
    %24 = arith.addf %21, %23 : vector<16x32xf32>
    %c0_9 = arith.constant 0 : index
    %c0_10 = arith.constant 0 : index
    %25 = vector.load %arg5[%c0_9, %c0_10] : memref<32x128xf32, #tpu.memory_space<vmem>>, vector<32x128xf32>
    %cst_11 = arith.constant dense<0.000000e+00> : vector<16x128xf32>
    %26 = tpu.matmul %24, %25, %cst_11 {dimension_numbers = #tpu.dot_dimension_numbers<[1], [0], [0], [1], [0, 0, 1, 1], [], []>} : vector<16x32xf32>, vector<32x128xf32>, vector<16x128xf32> -> vector<16x128xf32>
    %c0_12 = arith.constant 0 : index
    %c0_13 = arith.constant 0 : index
    %27 = vector.load %arg6[%c0_12, %c0_13] : memref<1x128xf32, #tpu.memory_space<vmem>>, vector<1x128xf32>
    %28 = vector.broadcast %27 : vector<1x128xf32> to vector<16x128xf32>
    %29 = arith.addf %26, %28 : vector<16x128xf32>
    %30 = arith.truncf %29 : vector<16x128xf32> to vector<16x128xbf16>
    %c0_14 = arith.constant 0 : index
    %c0_15 = arith.constant 0 : index
    %31 = vector.load %arg7[%c0_14, %c0_15] : memref<128x1280xbf16, #tpu.memory_space<vmem>>, vector<128x1280xbf16>
    %cst_16 = arith.constant dense<0.000000e+00> : vector<16x1280xf32>
    %32 = tpu.matmul %30, %31, %cst_16 {dimension_numbers = #tpu.dot_dimension_numbers<[1], [0], [0], [1], [0, 0, 1, 1], [], []>} : vector<16x128xbf16>, vector<128x1280xbf16>, vector<16x1280xf32> -> vector<16x1280xf32>
    %c0_17 = arith.constant 0 : index
    %c0_18 = arith.constant 0 : index
    %33 = vector.load %arg8[%c0_17, %c0_18] : memref<1x1280xf32, #tpu.memory_space<vmem>>, vector<1x1280xf32>
    %34 = vector.broadcast %33 : vector<1x1280xf32> to vector<16x1280xf32>
    %35 = arith.addf %32, %34 : vector<16x1280xf32>
    %36 = vector.extract_strided_slice %35 {offsets = [0, 0], sizes = [16, 1024], strides = [1, 1]} : vector<16x1280xf32> to vector<16x1024xf32>
    %37 = arith.truncf %36 : vector<16x1024xf32> to vector<16x1024xbf16>
    %38 = vector.extract_strided_slice %35 {offsets = [0, 1024], sizes = [16, 256], strides = [1, 1]} : vector<16x1280xf32> to vector<16x256xf32>
    %39 = arith.truncf %38 : vector<16x256xf32> to vector<16x256xbf16>
    %c0_19 = arith.constant 0 : index
    %c0_20 = arith.constant 0 : index
    %40 = vector.load %arg2[%c0_19, %c0_20] : memref<16x256xbf16, #tpu.memory_space<vmem>>, vector<16x256xbf16>
    %c0_21 = arith.constant 0 : index
    %c0_22 = arith.constant 0 : index
    %41 = vector.load %arg11[%c0_21, %c0_22] : memref<8x256xbf16, #tpu.memory_space<vmem>>, vector<8x256xbf16>
    %c0_23 = arith.constant 0 : index
    %c0_24 = arith.constant 0 : index
    %42 = vector.load %arg12[%c0_23, %c0_24] : memref<32x256xbf16, #tpu.memory_space<vmem>>, vector<32x256xbf16>
    %c0_25 = arith.constant 0 : index
    %c0_26 = arith.constant 0 : index
    %43 = vector.load %arg13[%c0_25, %c0_26] : memref<32x1024xbf16, #tpu.memory_space<vmem>>, vector<32x1024xbf16>
    %c0_27 = arith.constant 0 : index
    %c0_28 = arith.constant 0 : index
    %44 = vector.load %arg14[%c0_27, %c0_28] : memref<32x1024xbf16, #tpu.memory_space<vmem>>, vector<32x1024xbf16>
    %cst_29 = arith.constant 0.000000e+00 : f32
    %45 = vector.broadcast %cst_29 : f32 to vector<16x256xf32>
    %46 = vector.extract_strided_slice %40 {offsets = [0, 0], sizes = [16, 8], strides = [1, 1]} : vector<16x256xbf16> to vector<16x8xbf16>
    %47 = vector.extract_strided_slice %37 {offsets = [0, 0], sizes = [16, 32], strides = [1, 1]} : vector<16x1024xbf16> to vector<16x32xbf16>
    %cst_30 = arith.constant dense<0.000000e+00> : vector<16x256xf32>
    %48 = tpu.matmul %46, %41, %cst_30 {dimension_numbers = #tpu.dot_dimension_numbers<[1], [0], [0], [1], [0, 0, 1, 1], [], []>} : vector<16x8xbf16>, vector<8x256xbf16>, vector<16x256xf32> -> vector<16x256xf32>
    %cst_31 = arith.constant dense<0.000000e+00> : vector<16x256xf32>
    %49 = tpu.matmul %47, %42, %cst_31 {dimension_numbers = #tpu.dot_dimension_numbers<[1], [0], [0], [1], [0, 0, 1, 1], [], []>} : vector<16x32xbf16>, vector<32x256xbf16>, vector<16x256xf32> -> vector<16x256xf32>
    %50 = arith.mulf %48, %49 : vector<16x256xf32>
    %51 = arith.addf %45, %50 : vector<16x256xf32>
    %52 = vector.extract_strided_slice %40 {offsets = [0, 8], sizes = [16, 8], strides = [1, 1]} : vector<16x256xbf16> to vector<16x8xbf16>
    %53 = vector.extract_strided_slice %37 {offsets = [0, 32], sizes = [16, 32], strides = [1, 1]} : vector<16x1024xbf16> to vector<16x32xbf16>
    %cst_32 = arith.constant dense<0.000000e+00> : vector<16x256xf32>
    %54 = tpu.matmul %52, %41, %cst_32 {dimension_numbers = #tpu.dot_dimension_numbers<[1], [0], [0], [1], [0, 0, 1, 1], [], []>} : vector<16x8xbf16>, vector<8x256xbf16>, vector<16x256xf32> -> vector<16x256xf32>
    %cst_33 = arith.constant dense<0.000000e+00> : vector<16x256xf32>
    %55 = tpu.matmul %53, %42, %cst_33 {dimension_numbers = #tpu.dot_dimension_numbers<[1], [0], [0], [1], [0, 0, 1, 1], [], []>} : vector<16x32xbf16>, vector<32x256xbf16>, vector<16x256xf32> -> vector<16x256xf32>
    %56 = arith.mulf %54, %55 : vector<16x256xf32>
    %57 = arith.addf %51, %56 : vector<16x256xf32>
    %58 = vector.extract_strided_slice %40 {offsets = [0, 16], sizes = [16, 8], strides = [1, 1]} : vector<16x256xbf16> to vector<16x8xbf16>
    %59 = vector.extract_strided_slice %37 {offsets = [0, 64], sizes = [16, 32], strides = [1, 1]} : vector<16x1024xbf16> to vector<16x32xbf16>
    %cst_34 = arith.constant dense<0.000000e+00> : vector<16x256xf32>
    %60 = tpu.matmul %58, %41, %cst_34 {dimension_numbers = #tpu.dot_dimension_numbers<[1], [0], [0], [1], [0, 0, 1, 1], [], []>} : vector<16x8xbf16>, vector<8x256xbf16>, vector<16x256xf32> -> vector<16x256xf32>
    %cst_35 = arith.constant dense<0.000000e+00> : vector<16x256xf32>
    %61 = tpu.matmul %59, %42, %cst_35 {dimension_numbers = #tpu.dot_dimension_numbers<[1], [0], [0], [1], [0, 0, 1, 1], [], []>} : vector<16x32xbf16>, vector<32x256xbf16>, vector<16x256xf32> -> vector<16x256xf32>
    %62 = arith.mulf %60, %61 : vector<16x256xf32>
    %63 = arith.addf %57, %62 : vector<16x256xf32>
    %64 = vector.extract_strided_slice %40 {offsets = [0, 24], sizes = [16, 8], strides = [1, 1]} : vector<16x256xbf16> to vector<16x8xbf16>
    %65 = vector.extract_strided_slice %37 {offsets = [0, 96], sizes = [16, 32], strides = [1, 1]} : vector<16x1024xbf16> to vector<16x32xbf16>
    %cst_36 = arith.constant dense<0.000000e+00> : vector<16x256xf32>
    %66 = tpu.matmul %64, %41, %cst_36 {dimension_numbers = #tpu.dot_dimension_numbers<[1], [0], [0], [1], [0, 0, 1, 1], [], []>} : vector<16x8xbf16>, vector<8x256xbf16>, vector<16x256xf32> -> vector<16x256xf32>
    %cst_37 = arith.constant dense<0.000000e+00> : vector<16x256xf32>
    %67 = tpu.matmul %65, %42, %cst_37 {dimension_numbers = #tpu.dot_dimension_numbers<[1], [0], [0], [1], [0, 0, 1, 1], [], []>} : vector<16x32xbf16>, vector<32x256xbf16>, vector<16x256xf32> -> vector<16x256xf32>
    %68 = arith.mulf %66, %67 : vector<16x256xf32>
    %69 = arith.addf %63, %68 : vector<16x256xf32>
    %70 = vector.extract_strided_slice %40 {offsets = [0, 32], sizes = [16, 8], strides = [1, 1]} : vector<16x256xbf16> to vector<16x8xbf16>
    %71 = vector.extract_strided_slice %37 {offsets = [0, 128], sizes = [16, 32], strides = [1, 1]} : vector<16x1024xbf16> to vector<16x32xbf16>
    %cst_38 = arith.constant dense<0.000000e+00> : vector<16x256xf32>
    %72 = tpu.matmul %70, %41, %cst_38 {dimension_numbers = #tpu.dot_dimension_numbers<[1], [0], [0], [1], [0, 0, 1, 1], [], []>} : vector<16x8xbf16>, vector<8x256xbf16>, vector<16x256xf32> -> vector<16x256xf32>
    %cst_39 = arith.constant dense<0.000000e+00> : vector<16x256xf32>
    %73 = tpu.matmul %71, %42, %cst_39 {dimension_numbers = #tpu.dot_dimension_numbers<[1], [0], [0], [1], [0, 0, 1, 1], [], []>} : vector<16x32xbf16>, vector<32x256xbf16>, vector<16x256xf32> -> vector<16x256xf32>
    %74 = arith.mulf %72, %73 : vector<16x256xf32>
    %75 = arith.addf %69, %74 : vector<16x256xf32>
    %76 = vector.extract_strided_slice %40 {offsets = [0, 40], sizes = [16, 8], strides = [1, 1]} : vector<16x256xbf16> to vector<16x8xbf16>
    %77 = vector.extract_strided_slice %37 {offsets = [0, 160], sizes = [16, 32], strides = [1, 1]} : vector<16x1024xbf16> to vector<16x32xbf16>
    %cst_40 = arith.constant dense<0.000000e+00> : vector<16x256xf32>
    %78 = tpu.matmul %76, %41, %cst_40 {dimension_numbers = #tpu.dot_dimension_numbers<[1], [0], [0], [1], [0, 0, 1, 1], [], []>} : vector<16x8xbf16>, vector<8x256xbf16>, vector<16x256xf32> -> vector<16x256xf32>
    %cst_41 = arith.constant dense<0.000000e+00> : vector<16x256xf32>
    %79 = tpu.matmul %77, %42, %cst_41 {dimension_numbers = #tpu.dot_dimension_numbers<[1], [0], [0], [1], [0, 0, 1, 1], [], []>} : vector<16x32xbf16>, vector<32x256xbf16>, vector<16x256xf32> -> vector<16x256xf32>
    %80 = arith.mulf %78, %79 : vector<16x256xf32>
    %81 = arith.addf %75, %80 : vector<16x256xf32>
    %82 = vector.extract_strided_slice %40 {offsets = [0, 48], sizes = [16, 8], strides = [1, 1]} : vector<16x256xbf16> to vector<16x8xbf16>
    %83 = vector.extract_strided_slice %37 {offsets = [0, 192], sizes = [16, 32], strides = [1, 1]} : vector<16x1024xbf16> to vector<16x32xbf16>
    %cst_42 = arith.constant dense<0.000000e+00> : vector<16x256xf32>
    %84 = tpu.matmul %82, %41, %cst_42 {dimension_numbers = #tpu.dot_dimension_numbers<[1], [0], [0], [1], [0, 0, 1, 1], [], []>} : vector<16x8xbf16>, vector<8x256xbf16>, vector<16x256xf32> -> vector<16x256xf32>
    %cst_43 = arith.constant dense<0.000000e+00> : vector<16x256xf32>
    %85 = tpu.matmul %83, %42, %cst_43 {dimension_numbers = #tpu.dot_dimension_numbers<[1], [0], [0], [1], [0, 0, 1, 1], [], []>} : vector<16x32xbf16>, vector<32x256xbf16>, vector<16x256xf32> -> vector<16x256xf32>
    %86 = arith.mulf %84, %85 : vector<16x256xf32>
    %87 = arith.addf %81, %86 : vector<16x256xf32>
    %88 = vector.extract_strided_slice %40 {offsets = [0, 56], sizes = [16, 8], strides = [1, 1]} : vector<16x256xbf16> to vector<16x8xbf16>
    %89 = vector.extract_strided_slice %37 {offsets = [0, 224], sizes = [16, 32], strides = [1, 1]} : vector<16x1024xbf16> to vector<16x32xbf16>
    %cst_44 = arith.constant dense<0.000000e+00> : vector<16x256xf32>
    %90 = tpu.matmul %88, %41, %cst_44 {dimension_numbers = #tpu.dot_dimension_numbers<[1], [0], [0], [1], [0, 0, 1, 1], [], []>} : vector<16x8xbf16>, vector<8x256xbf16>, vector<16x256xf32> -> vector<16x256xf32>
    %cst_45 = arith.constant dense<0.000000e+00> : vector<16x256xf32>
    %91 = tpu.matmul %89, %42, %cst_45 {dimension_numbers = #tpu.dot_dimension_numbers<[1], [0], [0], [1], [0, 0, 1, 1], [], []>} : vector<16x32xbf16>, vector<32x256xbf16>, vector<16x256xf32> -> vector<16x256xf32>
    %92 = arith.mulf %90, %91 : vector<16x256xf32>
    %93 = arith.addf %87, %92 : vector<16x256xf32>
    %94 = vector.extract_strided_slice %40 {offsets = [0, 64], sizes = [16, 8], strides = [1, 1]} : vector<16x256xbf16> to vector<16x8xbf16>
    %95 = vector.extract_strided_slice %37 {offsets = [0, 256], sizes = [16, 32], strides = [1, 1]} : vector<16x1024xbf16> to vector<16x32xbf16>
    %cst_46 = arith.constant dense<0.000000e+00> : vector<16x256xf32>
    %96 = tpu.matmul %94, %41, %cst_46 {dimension_numbers = #tpu.dot_dimension_numbers<[1], [0], [0], [1], [0, 0, 1, 1], [], []>} : vector<16x8xbf16>, vector<8x256xbf16>, vector<16x256xf32> -> vector<16x256xf32>
    %cst_47 = arith.constant dense<0.000000e+00> : vector<16x256xf32>
    %97 = tpu.matmul %95, %42, %cst_47 {dimension_numbers = #tpu.dot_dimension_numbers<[1], [0], [0], [1], [0, 0, 1, 1], [], []>} : vector<16x32xbf16>, vector<32x256xbf16>, vector<16x256xf32> -> vector<16x256xf32>
    %98 = arith.mulf %96, %97 : vector<16x256xf32>
    %99 = arith.addf %93, %98 : vector<16x256xf32>
    %100 = vector.extract_strided_slice %40 {offsets = [0, 72], sizes = [16, 8], strides = [1, 1]} : vector<16x256xbf16> to vector<16x8xbf16>
    %101 = vector.extract_strided_slice %37 {offsets = [0, 288], sizes = [16, 32], strides = [1, 1]} : vector<16x1024xbf16> to vector<16x32xbf16>
    %cst_48 = arith.constant dense<0.000000e+00> : vector<16x256xf32>
    %102 = tpu.matmul %100, %41, %cst_48 {dimension_numbers = #tpu.dot_dimension_numbers<[1], [0], [0], [1], [0, 0, 1, 1], [], []>} : vector<16x8xbf16>, vector<8x256xbf16>, vector<16x256xf32> -> vector<16x256xf32>
    %cst_49 = arith.constant dense<0.000000e+00> : vector<16x256xf32>
    %103 = tpu.matmul %101, %42, %cst_49 {dimension_numbers = #tpu.dot_dimension_numbers<[1], [0], [0], [1], [0, 0, 1, 1], [], []>} : vector<16x32xbf16>, vector<32x256xbf16>, vector<16x256xf32> -> vector<16x256xf32>
    %104 = arith.mulf %102, %103 : vector<16x256xf32>
    %105 = arith.addf %99, %104 : vector<16x256xf32>
    %106 = vector.extract_strided_slice %40 {offsets = [0, 80], sizes = [16, 8], strides = [1, 1]} : vector<16x256xbf16> to vector<16x8xbf16>
    %107 = vector.extract_strided_slice %37 {offsets = [0, 320], sizes = [16, 32], strides = [1, 1]} : vector<16x1024xbf16> to vector<16x32xbf16>
    %cst_50 = arith.constant dense<0.000000e+00> : vector<16x256xf32>
    %108 = tpu.matmul %106, %41, %cst_50 {dimension_numbers = #tpu.dot_dimension_numbers<[1], [0], [0], [1], [0, 0, 1, 1], [], []>} : vector<16x8xbf16>, vector<8x256xbf16>, vector<16x256xf32> -> vector<16x256xf32>
    %cst_51 = arith.constant dense<0.000000e+00> : vector<16x256xf32>
    %109 = tpu.matmul %107, %42, %cst_51 {dimension_numbers = #tpu.dot_dimension_numbers<[1], [0], [0], [1], [0, 0, 1, 1], [], []>} : vector<16x32xbf16>, vector<32x256xbf16>, vector<16x256xf32> -> vector<16x256xf32>
    %110 = arith.mulf %108, %109 : vector<16x256xf32>
    %111 = arith.addf %105, %110 : vector<16x256xf32>
    %112 = vector.extract_strided_slice %40 {offsets = [0, 88], sizes = [16, 8], strides = [1, 1]} : vector<16x256xbf16> to vector<16x8xbf16>
    %113 = vector.extract_strided_slice %37 {offsets = [0, 352], sizes = [16, 32], strides = [1, 1]} : vector<16x1024xbf16> to vector<16x32xbf16>
    %cst_52 = arith.constant dense<0.000000e+00> : vector<16x256xf32>
    %114 = tpu.matmul %112, %41, %cst_52 {dimension_numbers = #tpu.dot_dimension_numbers<[1], [0], [0], [1], [0, 0, 1, 1], [], []>} : vector<16x8xbf16>, vector<8x256xbf16>, vector<16x256xf32> -> vector<16x256xf32>
    %cst_53 = arith.constant dense<0.000000e+00> : vector<16x256xf32>
    %115 = tpu.matmul %113, %42, %cst_53 {dimension_numbers = #tpu.dot_dimension_numbers<[1], [0], [0], [1], [0, 0, 1, 1], [], []>} : vector<16x32xbf16>, vector<32x256xbf16>, vector<16x256xf32> -> vector<16x256xf32>
    %116 = arith.mulf %114, %115 : vector<16x256xf32>
    %117 = arith.addf %111, %116 : vector<16x256xf32>
    %118 = vector.extract_strided_slice %40 {offsets = [0, 96], sizes = [16, 8], strides = [1, 1]} : vector<16x256xbf16> to vector<16x8xbf16>
    %119 = vector.extract_strided_slice %37 {offsets = [0, 384], sizes = [16, 32], strides = [1, 1]} : vector<16x1024xbf16> to vector<16x32xbf16>
    %cst_54 = arith.constant dense<0.000000e+00> : vector<16x256xf32>
    %120 = tpu.matmul %118, %41, %cst_54 {dimension_numbers = #tpu.dot_dimension_numbers<[1], [0], [0], [1], [0, 0, 1, 1], [], []>} : vector<16x8xbf16>, vector<8x256xbf16>, vector<16x256xf32> -> vector<16x256xf32>
    %cst_55 = arith.constant dense<0.000000e+00> : vector<16x256xf32>
    %121 = tpu.matmul %119, %42, %cst_55 {dimension_numbers = #tpu.dot_dimension_numbers<[1], [0], [0], [1], [0, 0, 1, 1], [], []>} : vector<16x32xbf16>, vector<32x256xbf16>, vector<16x256xf32> -> vector<16x256xf32>
    %122 = arith.mulf %120, %121 : vector<16x256xf32>
    %123 = arith.addf %117, %122 : vector<16x256xf32>
    %124 = vector.extract_strided_slice %40 {offsets = [0, 104], sizes = [16, 8], strides = [1, 1]} : vector<16x256xbf16> to vector<16x8xbf16>
    %125 = vector.extract_strided_slice %37 {offsets = [0, 416], sizes = [16, 32], strides = [1, 1]} : vector<16x1024xbf16> to vector<16x32xbf16>
    %cst_56 = arith.constant dense<0.000000e+00> : vector<16x256xf32>
    %126 = tpu.matmul %124, %41, %cst_56 {dimension_numbers = #tpu.dot_dimension_numbers<[1], [0], [0], [1], [0, 0, 1, 1], [], []>} : vector<16x8xbf16>, vector<8x256xbf16>, vector<16x256xf32> -> vector<16x256xf32>
    %cst_57 = arith.constant dense<0.000000e+00> : vector<16x256xf32>
    %127 = tpu.matmul %125, %42, %cst_57 {dimension_numbers = #tpu.dot_dimension_numbers<[1], [0], [0], [1], [0, 0, 1, 1], [], []>} : vector<16x32xbf16>, vector<32x256xbf16>, vector<16x256xf32> -> vector<16x256xf32>
    %128 = arith.mulf %126, %127 : vector<16x256xf32>
    %129 = arith.addf %123, %128 : vector<16x256xf32>
    %130 = vector.extract_strided_slice %40 {offsets = [0, 112], sizes = [16, 8], strides = [1, 1]} : vector<16x256xbf16> to vector<16x8xbf16>
    %131 = vector.extract_strided_slice %37 {offsets = [0, 448], sizes = [16, 32], strides = [1, 1]} : vector<16x1024xbf16> to vector<16x32xbf16>
    %cst_58 = arith.constant dense<0.000000e+00> : vector<16x256xf32>
    %132 = tpu.matmul %130, %41, %cst_58 {dimension_numbers = #tpu.dot_dimension_numbers<[1], [0], [0], [1], [0, 0, 1, 1], [], []>} : vector<16x8xbf16>, vector<8x256xbf16>, vector<16x256xf32> -> vector<16x256xf32>
    %cst_59 = arith.constant dense<0.000000e+00> : vector<16x256xf32>
    %133 = tpu.matmul %131, %42, %cst_59 {dimension_numbers = #tpu.dot_dimension_numbers<[1], [0], [0], [1], [0, 0, 1, 1], [], []>} : vector<16x32xbf16>, vector<32x256xbf16>, vector<16x256xf32> -> vector<16x256xf32>
    %134 = arith.mulf %132, %133 : vector<16x256xf32>
    %135 = arith.addf %129, %134 : vector<16x256xf32>
    %136 = vector.extract_strided_slice %40 {offsets = [0, 120], sizes = [16, 8], strides = [1, 1]} : vector<16x256xbf16> to vector<16x8xbf16>
    %137 = vector.extract_strided_slice %37 {offsets = [0, 480], sizes = [16, 32], strides = [1, 1]} : vector<16x1024xbf16> to vector<16x32xbf16>
    %cst_60 = arith.constant dense<0.000000e+00> : vector<16x256xf32>
    %138 = tpu.matmul %136, %41, %cst_60 {dimension_numbers = #tpu.dot_dimension_numbers<[1], [0], [0], [1], [0, 0, 1, 1], [], []>} : vector<16x8xbf16>, vector<8x256xbf16>, vector<16x256xf32> -> vector<16x256xf32>
    %cst_61 = arith.constant dense<0.000000e+00> : vector<16x256xf32>
    %139 = tpu.matmul %137, %42, %cst_61 {dimension_numbers = #tpu.dot_dimension_numbers<[1], [0], [0], [1], [0, 0, 1, 1], [], []>} : vector<16x32xbf16>, vector<32x256xbf16>, vector<16x256xf32> -> vector<16x256xf32>
    %140 = arith.mulf %138, %139 : vector<16x256xf32>
    %141 = arith.addf %135, %140 : vector<16x256xf32>
    %142 = vector.extract_strided_slice %40 {offsets = [0, 128], sizes = [16, 8], strides = [1, 1]} : vector<16x256xbf16> to vector<16x8xbf16>
    %143 = vector.extract_strided_slice %37 {offsets = [0, 512], sizes = [16, 32], strides = [1, 1]} : vector<16x1024xbf16> to vector<16x32xbf16>
    %cst_62 = arith.constant dense<0.000000e+00> : vector<16x256xf32>
    %144 = tpu.matmul %142, %41, %cst_62 {dimension_numbers = #tpu.dot_dimension_numbers<[1], [0], [0], [1], [0, 0, 1, 1], [], []>} : vector<16x8xbf16>, vector<8x256xbf16>, vector<16x256xf32> -> vector<16x256xf32>
    %cst_63 = arith.constant dense<0.000000e+00> : vector<16x256xf32>
    %145 = tpu.matmul %143, %42, %cst_63 {dimension_numbers = #tpu.dot_dimension_numbers<[1], [0], [0], [1], [0, 0, 1, 1], [], []>} : vector<16x32xbf16>, vector<32x256xbf16>, vector<16x256xf32> -> vector<16x256xf32>
    %146 = arith.mulf %144, %145 : vector<16x256xf32>
    %147 = arith.addf %141, %146 : vector<16x256xf32>
    %148 = vector.extract_strided_slice %40 {offsets = [0, 136], sizes = [16, 8], strides = [1, 1]} : vector<16x256xbf16> to vector<16x8xbf16>
    %149 = vector.extract_strided_slice %37 {offsets = [0, 544], sizes = [16, 32], strides = [1, 1]} : vector<16x1024xbf16> to vector<16x32xbf16>
    %cst_64 = arith.constant dense<0.000000e+00> : vector<16x256xf32>
    %150 = tpu.matmul %148, %41, %cst_64 {dimension_numbers = #tpu.dot_dimension_numbers<[1], [0], [0], [1], [0, 0, 1, 1], [], []>} : vector<16x8xbf16>, vector<8x256xbf16>, vector<16x256xf32> -> vector<16x256xf32>
    %cst_65 = arith.constant dense<0.000000e+00> : vector<16x256xf32>
    %151 = tpu.matmul %149, %42, %cst_65 {dimension_numbers = #tpu.dot_dimension_numbers<[1], [0], [0], [1], [0, 0, 1, 1], [], []>} : vector<16x32xbf16>, vector<32x256xbf16>, vector<16x256xf32> -> vector<16x256xf32>
    %152 = arith.mulf %150, %151 : vector<16x256xf32>
    %153 = arith.addf %147, %152 : vector<16x256xf32>
    %154 = vector.extract_strided_slice %40 {offsets = [0, 144], sizes = [16, 8], strides = [1, 1]} : vector<16x256xbf16> to vector<16x8xbf16>
    %155 = vector.extract_strided_slice %37 {offsets = [0, 576], sizes = [16, 32], strides = [1, 1]} : vector<16x1024xbf16> to vector<16x32xbf16>
    %cst_66 = arith.constant dense<0.000000e+00> : vector<16x256xf32>
    %156 = tpu.matmul %154, %41, %cst_66 {dimension_numbers = #tpu.dot_dimension_numbers<[1], [0], [0], [1], [0, 0, 1, 1], [], []>} : vector<16x8xbf16>, vector<8x256xbf16>, vector<16x256xf32> -> vector<16x256xf32>
    %cst_67 = arith.constant dense<0.000000e+00> : vector<16x256xf32>
    %157 = tpu.matmul %155, %42, %cst_67 {dimension_numbers = #tpu.dot_dimension_numbers<[1], [0], [0], [1], [0, 0, 1, 1], [], []>} : vector<16x32xbf16>, vector<32x256xbf16>, vector<16x256xf32> -> vector<16x256xf32>
    %158 = arith.mulf %156, %157 : vector<16x256xf32>
    %159 = arith.addf %153, %158 : vector<16x256xf32>
    %160 = vector.extract_strided_slice %40 {offsets = [0, 152], sizes = [16, 8], strides = [1, 1]} : vector<16x256xbf16> to vector<16x8xbf16>
    %161 = vector.extract_strided_slice %37 {offsets = [0, 608], sizes = [16, 32], strides = [1, 1]} : vector<16x1024xbf16> to vector<16x32xbf16>
    %cst_68 = arith.constant dense<0.000000e+00> : vector<16x256xf32>
    %162 = tpu.matmul %160, %41, %cst_68 {dimension_numbers = #tpu.dot_dimension_numbers<[1], [0], [0], [1], [0, 0, 1, 1], [], []>} : vector<16x8xbf16>, vector<8x256xbf16>, vector<16x256xf32> -> vector<16x256xf32>
    %cst_69 = arith.constant dense<0.000000e+00> : vector<16x256xf32>
    %163 = tpu.matmul %161, %42, %cst_69 {dimension_numbers = #tpu.dot_dimension_numbers<[1], [0], [0], [1], [0, 0, 1, 1], [], []>} : vector<16x32xbf16>, vector<32x256xbf16>, vector<16x256xf32> -> vector<16x256xf32>
    %164 = arith.mulf %162, %163 : vector<16x256xf32>
    %165 = arith.addf %159, %164 : vector<16x256xf32>
    %166 = vector.extract_strided_slice %40 {offsets = [0, 160], sizes = [16, 8], strides = [1, 1]} : vector<16x256xbf16> to vector<16x8xbf16>
    %167 = vector.extract_strided_slice %37 {offsets = [0, 640], sizes = [16, 32], strides = [1, 1]} : vector<16x1024xbf16> to vector<16x32xbf16>
    %cst_70 = arith.constant dense<0.000000e+00> : vector<16x256xf32>
    %168 = tpu.matmul %166, %41, %cst_70 {dimension_numbers = #tpu.dot_dimension_numbers<[1], [0], [0], [1], [0, 0, 1, 1], [], []>} : vector<16x8xbf16>, vector<8x256xbf16>, vector<16x256xf32> -> vector<16x256xf32>
    %cst_71 = arith.constant dense<0.000000e+00> : vector<16x256xf32>
    %169 = tpu.matmul %167, %42, %cst_71 {dimension_numbers = #tpu.dot_dimension_numbers<[1], [0], [0], [1], [0, 0, 1, 1], [], []>} : vector<16x32xbf16>, vector<32x256xbf16>, vector<16x256xf32> -> vector<16x256xf32>
    %170 = arith.mulf %168, %169 : vector<16x256xf32>
    %171 = arith.addf %165, %170 : vector<16x256xf32>
    %172 = vector.extract_strided_slice %40 {offsets = [0, 168], sizes = [16, 8], strides = [1, 1]} : vector<16x256xbf16> to vector<16x8xbf16>
    %173 = vector.extract_strided_slice %37 {offsets = [0, 672], sizes = [16, 32], strides = [1, 1]} : vector<16x1024xbf16> to vector<16x32xbf16>
    %cst_72 = arith.constant dense<0.000000e+00> : vector<16x256xf32>
    %174 = tpu.matmul %172, %41, %cst_72 {dimension_numbers = #tpu.dot_dimension_numbers<[1], [0], [0], [1], [0, 0, 1, 1], [], []>} : vector<16x8xbf16>, vector<8x256xbf16>, vector<16x256xf32> -> vector<16x256xf32>
    %cst_73 = arith.constant dense<0.000000e+00> : vector<16x256xf32>
    %175 = tpu.matmul %173, %42, %cst_73 {dimension_numbers = #tpu.dot_dimension_numbers<[1], [0], [0], [1], [0, 0, 1, 1], [], []>} : vector<16x32xbf16>, vector<32x256xbf16>, vector<16x256xf32> -> vector<16x256xf32>
    %176 = arith.mulf %174, %175 : vector<16x256xf32>
    %177 = arith.addf %171, %176 : vector<16x256xf32>
    %178 = vector.extract_strided_slice %40 {offsets = [0, 176], sizes = [16, 8], strides = [1, 1]} : vector<16x256xbf16> to vector<16x8xbf16>
    %179 = vector.extract_strided_slice %37 {offsets = [0, 704], sizes = [16, 32], strides = [1, 1]} : vector<16x1024xbf16> to vector<16x32xbf16>
    %cst_74 = arith.constant dense<0.000000e+00> : vector<16x256xf32>
    %180 = tpu.matmul %178, %41, %cst_74 {dimension_numbers = #tpu.dot_dimension_numbers<[1], [0], [0], [1], [0, 0, 1, 1], [], []>} : vector<16x8xbf16>, vector<8x256xbf16>, vector<16x256xf32> -> vector<16x256xf32>
    %cst_75 = arith.constant dense<0.000000e+00> : vector<16x256xf32>
    %181 = tpu.matmul %179, %42, %cst_75 {dimension_numbers = #tpu.dot_dimension_numbers<[1], [0], [0], [1], [0, 0, 1, 1], [], []>} : vector<16x32xbf16>, vector<32x256xbf16>, vector<16x256xf32> -> vector<16x256xf32>
    %182 = arith.mulf %180, %181 : vector<16x256xf32>
    %183 = arith.addf %177, %182 : vector<16x256xf32>
    %184 = vector.extract_strided_slice %40 {offsets = [0, 184], sizes = [16, 8], strides = [1, 1]} : vector<16x256xbf16> to vector<16x8xbf16>
    %185 = vector.extract_strided_slice %37 {offsets = [0, 736], sizes = [16, 32], strides = [1, 1]} : vector<16x1024xbf16> to vector<16x32xbf16>
    %cst_76 = arith.constant dense<0.000000e+00> : vector<16x256xf32>
    %186 = tpu.matmul %184, %41, %cst_76 {dimension_numbers = #tpu.dot_dimension_numbers<[1], [0], [0], [1], [0, 0, 1, 1], [], []>} : vector<16x8xbf16>, vector<8x256xbf16>, vector<16x256xf32> -> vector<16x256xf32>
    %cst_77 = arith.constant dense<0.000000e+00> : vector<16x256xf32>
    %187 = tpu.matmul %185, %42, %cst_77 {dimension_numbers = #tpu.dot_dimension_numbers<[1], [0], [0], [1], [0, 0, 1, 1], [], []>} : vector<16x32xbf16>, vector<32x256xbf16>, vector<16x256xf32> -> vector<16x256xf32>
    %188 = arith.mulf %186, %187 : vector<16x256xf32>
    %189 = arith.addf %183, %188 : vector<16x256xf32>
    %190 = vector.extract_strided_slice %40 {offsets = [0, 192], sizes = [16, 8], strides = [1, 1]} : vector<16x256xbf16> to vector<16x8xbf16>
    %191 = vector.extract_strided_slice %37 {offsets = [0, 768], sizes = [16, 32], strides = [1, 1]} : vector<16x1024xbf16> to vector<16x32xbf16>
    %cst_78 = arith.constant dense<0.000000e+00> : vector<16x256xf32>
    %192 = tpu.matmul %190, %41, %cst_78 {dimension_numbers = #tpu.dot_dimension_numbers<[1], [0], [0], [1], [0, 0, 1, 1], [], []>} : vector<16x8xbf16>, vector<8x256xbf16>, vector<16x256xf32> -> vector<16x256xf32>
    %cst_79 = arith.constant dense<0.000000e+00> : vector<16x256xf32>
    %193 = tpu.matmul %191, %42, %cst_79 {dimension_numbers = #tpu.dot_dimension_numbers<[1], [0], [0], [1], [0, 0, 1, 1], [], []>} : vector<16x32xbf16>, vector<32x256xbf16>, vector<16x256xf32> -> vector<16x256xf32>
    %194 = arith.mulf %192, %193 : vector<16x256xf32>
    %195 = arith.addf %189, %194 : vector<16x256xf32>
    %196 = vector.extract_strided_slice %40 {offsets = [0, 200], sizes = [16, 8], strides = [1, 1]} : vector<16x256xbf16> to vector<16x8xbf16>
    %197 = vector.extract_strided_slice %37 {offsets = [0, 800], sizes = [16, 32], strides = [1, 1]} : vector<16x1024xbf16> to vector<16x32xbf16>
    %cst_80 = arith.constant dense<0.000000e+00> : vector<16x256xf32>
    %198 = tpu.matmul %196, %41, %cst_80 {dimension_numbers = #tpu.dot_dimension_numbers<[1], [0], [0], [1], [0, 0, 1, 1], [], []>} : vector<16x8xbf16>, vector<8x256xbf16>, vector<16x256xf32> -> vector<16x256xf32>
    %cst_81 = arith.constant dense<0.000000e+00> : vector<16x256xf32>
    %199 = tpu.matmul %197, %42, %cst_81 {dimension_numbers = #tpu.dot_dimension_numbers<[1], [0], [0], [1], [0, 0, 1, 1], [], []>} : vector<16x32xbf16>, vector<32x256xbf16>, vector<16x256xf32> -> vector<16x256xf32>
    %200 = arith.mulf %198, %199 : vector<16x256xf32>
    %201 = arith.addf %195, %200 : vector<16x256xf32>
    %202 = vector.extract_strided_slice %40 {offsets = [0, 208], sizes = [16, 8], strides = [1, 1]} : vector<16x256xbf16> to vector<16x8xbf16>
    %203 = vector.extract_strided_slice %37 {offsets = [0, 832], sizes = [16, 32], strides = [1, 1]} : vector<16x1024xbf16> to vector<16x32xbf16>
    %cst_82 = arith.constant dense<0.000000e+00> : vector<16x256xf32>
    %204 = tpu.matmul %202, %41, %cst_82 {dimension_numbers = #tpu.dot_dimension_numbers<[1], [0], [0], [1], [0, 0, 1, 1], [], []>} : vector<16x8xbf16>, vector<8x256xbf16>, vector<16x256xf32> -> vector<16x256xf32>
    %cst_83 = arith.constant dense<0.000000e+00> : vector<16x256xf32>
    %205 = tpu.matmul %203, %42, %cst_83 {dimension_numbers = #tpu.dot_dimension_numbers<[1], [0], [0], [1], [0, 0, 1, 1], [], []>} : vector<16x32xbf16>, vector<32x256xbf16>, vector<16x256xf32> -> vector<16x256xf32>
    %206 = arith.mulf %204, %205 : vector<16x256xf32>
    %207 = arith.addf %201, %206 : vector<16x256xf32>
    %208 = vector.extract_strided_slice %40 {offsets = [0, 216], sizes = [16, 8], strides = [1, 1]} : vector<16x256xbf16> to vector<16x8xbf16>
    %209 = vector.extract_strided_slice %37 {offsets = [0, 864], sizes = [16, 32], strides = [1, 1]} : vector<16x1024xbf16> to vector<16x32xbf16>
    %cst_84 = arith.constant dense<0.000000e+00> : vector<16x256xf32>
    %210 = tpu.matmul %208, %41, %cst_84 {dimension_numbers = #tpu.dot_dimension_numbers<[1], [0], [0], [1], [0, 0, 1, 1], [], []>} : vector<16x8xbf16>, vector<8x256xbf16>, vector<16x256xf32> -> vector<16x256xf32>
    %cst_85 = arith.constant dense<0.000000e+00> : vector<16x256xf32>
    %211 = tpu.matmul %209, %42, %cst_85 {dimension_numbers = #tpu.dot_dimension_numbers<[1], [0], [0], [1], [0, 0, 1, 1], [], []>} : vector<16x32xbf16>, vector<32x256xbf16>, vector<16x256xf32> -> vector<16x256xf32>
    %212 = arith.mulf %210, %211 : vector<16x256xf32>
    %213 = arith.addf %207, %212 : vector<16x256xf32>
    %214 = vector.extract_strided_slice %40 {offsets = [0, 224], sizes = [16, 8], strides = [1, 1]} : vector<16x256xbf16> to vector<16x8xbf16>
    %215 = vector.extract_strided_slice %37 {offsets = [0, 896], sizes = [16, 32], strides = [1, 1]} : vector<16x1024xbf16> to vector<16x32xbf16>
    %cst_86 = arith.constant dense<0.000000e+00> : vector<16x256xf32>
    %216 = tpu.matmul %214, %41, %cst_86 {dimension_numbers = #tpu.dot_dimension_numbers<[1], [0], [0], [1], [0, 0, 1, 1], [], []>} : vector<16x8xbf16>, vector<8x256xbf16>, vector<16x256xf32> -> vector<16x256xf32>
    %cst_87 = arith.constant dense<0.000000e+00> : vector<16x256xf32>
    %217 = tpu.matmul %215, %42, %cst_87 {dimension_numbers = #tpu.dot_dimension_numbers<[1], [0], [0], [1], [0, 0, 1, 1], [], []>} : vector<16x32xbf16>, vector<32x256xbf16>, vector<16x256xf32> -> vector<16x256xf32>
    %218 = arith.mulf %216, %217 : vector<16x256xf32>
    %219 = arith.addf %213, %218 : vector<16x256xf32>
    %220 = vector.extract_strided_slice %40 {offsets = [0, 232], sizes = [16, 8], strides = [1, 1]} : vector<16x256xbf16> to vector<16x8xbf16>
    %221 = vector.extract_strided_slice %37 {offsets = [0, 928], sizes = [16, 32], strides = [1, 1]} : vector<16x1024xbf16> to vector<16x32xbf16>
    %cst_88 = arith.constant dense<0.000000e+00> : vector<16x256xf32>
    %222 = tpu.matmul %220, %41, %cst_88 {dimension_numbers = #tpu.dot_dimension_numbers<[1], [0], [0], [1], [0, 0, 1, 1], [], []>} : vector<16x8xbf16>, vector<8x256xbf16>, vector<16x256xf32> -> vector<16x256xf32>
    %cst_89 = arith.constant dense<0.000000e+00> : vector<16x256xf32>
    %223 = tpu.matmul %221, %42, %cst_89 {dimension_numbers = #tpu.dot_dimension_numbers<[1], [0], [0], [1], [0, 0, 1, 1], [], []>} : vector<16x32xbf16>, vector<32x256xbf16>, vector<16x256xf32> -> vector<16x256xf32>
    %224 = arith.mulf %222, %223 : vector<16x256xf32>
    %225 = arith.addf %219, %224 : vector<16x256xf32>
    %226 = vector.extract_strided_slice %40 {offsets = [0, 240], sizes = [16, 8], strides = [1, 1]} : vector<16x256xbf16> to vector<16x8xbf16>
    %227 = vector.extract_strided_slice %37 {offsets = [0, 960], sizes = [16, 32], strides = [1, 1]} : vector<16x1024xbf16> to vector<16x32xbf16>
    %cst_90 = arith.constant dense<0.000000e+00> : vector<16x256xf32>
    %228 = tpu.matmul %226, %41, %cst_90 {dimension_numbers = #tpu.dot_dimension_numbers<[1], [0], [0], [1], [0, 0, 1, 1], [], []>} : vector<16x8xbf16>, vector<8x256xbf16>, vector<16x256xf32> -> vector<16x256xf32>
    %cst_91 = arith.constant dense<0.000000e+00> : vector<16x256xf32>
    %229 = tpu.matmul %227, %42, %cst_91 {dimension_numbers = #tpu.dot_dimension_numbers<[1], [0], [0], [1], [0, 0, 1, 1], [], []>} : vector<16x32xbf16>, vector<32x256xbf16>, vector<16x256xf32> -> vector<16x256xf32>
    %230 = arith.mulf %228, %229 : vector<16x256xf32>
    %231 = arith.addf %225, %230 : vector<16x256xf32>
    %232 = vector.extract_strided_slice %40 {offsets = [0, 248], sizes = [16, 8], strides = [1, 1]} : vector<16x256xbf16> to vector<16x8xbf16>
    %233 = vector.extract_strided_slice %37 {offsets = [0, 992], sizes = [16, 32], strides = [1, 1]} : vector<16x1024xbf16> to vector<16x32xbf16>
    %cst_92 = arith.constant dense<0.000000e+00> : vector<16x256xf32>
    %234 = tpu.matmul %232, %41, %cst_92 {dimension_numbers = #tpu.dot_dimension_numbers<[1], [0], [0], [1], [0, 0, 1, 1], [], []>} : vector<16x8xbf16>, vector<8x256xbf16>, vector<16x256xf32> -> vector<16x256xf32>
    %cst_93 = arith.constant dense<0.000000e+00> : vector<16x256xf32>
    %235 = tpu.matmul %233, %42, %cst_93 {dimension_numbers = #tpu.dot_dimension_numbers<[1], [0], [0], [1], [0, 0, 1, 1], [], []>} : vector<16x32xbf16>, vector<32x256xbf16>, vector<16x256xf32> -> vector<16x256xf32>
    %236 = arith.mulf %234, %235 : vector<16x256xf32>
    %237 = arith.addf %231, %236 : vector<16x256xf32>
    %c0_94 = arith.constant 0 : index
    %c0_95 = arith.constant 0 : index
    %238 = vector.load %arg9[%c0_94, %c0_95] : memref<1x256xf32, #tpu.memory_space<vmem>>, vector<1x256xf32>
    %239 = vector.broadcast %238 : vector<1x256xf32> to vector<16x256xf32>
    %240 = arith.addf %237, %239 : vector<16x256xf32>
    %cst_96 = arith.constant 5.000000e-01 : f32
    %241 = vector.broadcast %cst_96 : f32 to vector<16x256xf32>
    %242 = arith.mulf %241, %240 : vector<16x256xf32>
    %cst_97 = arith.constant 0.707106769 : f32
    %243 = vector.broadcast %cst_97 : f32 to vector<16x256xf32>
    %244 = arith.mulf %240, %243 : vector<16x256xf32>
    %245 = math.erf %244 : vector<16x256xf32>
    %cst_98 = arith.constant 1.000000e+00 : f32
    %246 = vector.broadcast %cst_98 : f32 to vector<16x256xf32>
    %247 = arith.addf %246, %245 : vector<16x256xf32>
    %248 = arith.mulf %242, %247 : vector<16x256xf32>
    %249 = arith.truncf %248 : vector<16x256xf32> to vector<16x256xbf16>
    %cst_99 = arith.constant 0.000000e+00 : f32
    %250 = vector.broadcast %cst_99 : f32 to vector<16x1024xf32>
    %251 = vector.extract_strided_slice %39 {offsets = [0, 0], sizes = [16, 32], strides = [1, 1]} : vector<16x256xbf16> to vector<16x32xbf16>
    %252 = vector.extract_strided_slice %249 {offsets = [0, 0], sizes = [16, 32], strides = [1, 1]} : vector<16x256xbf16> to vector<16x32xbf16>
    %cst_100 = arith.constant dense<0.000000e+00> : vector<16x1024xf32>
    %253 = tpu.matmul %251, %43, %cst_100 {dimension_numbers = #tpu.dot_dimension_numbers<[1], [0], [0], [1], [0, 0, 1, 1], [], []>} : vector<16x32xbf16>, vector<32x1024xbf16>, vector<16x1024xf32> -> vector<16x1024xf32>
    %cst_101 = arith.constant dense<0.000000e+00> : vector<16x1024xf32>
    %254 = tpu.matmul %252, %44, %cst_101 {dimension_numbers = #tpu.dot_dimension_numbers<[1], [0], [0], [1], [0, 0, 1, 1], [], []>} : vector<16x32xbf16>, vector<32x1024xbf16>, vector<16x1024xf32> -> vector<16x1024xf32>
    %255 = arith.mulf %253, %254 : vector<16x1024xf32>
    %256 = arith.addf %250, %255 : vector<16x1024xf32>
    %257 = vector.extract_strided_slice %39 {offsets = [0, 32], sizes = [16, 32], strides = [1, 1]} : vector<16x256xbf16> to vector<16x32xbf16>
    %258 = vector.extract_strided_slice %249 {offsets = [0, 32], sizes = [16, 32], strides = [1, 1]} : vector<16x256xbf16> to vector<16x32xbf16>
    %cst_102 = arith.constant dense<0.000000e+00> : vector<16x1024xf32>
    %259 = tpu.matmul %257, %43, %cst_102 {dimension_numbers = #tpu.dot_dimension_numbers<[1], [0], [0], [1], [0, 0, 1, 1], [], []>} : vector<16x32xbf16>, vector<32x1024xbf16>, vector<16x1024xf32> -> vector<16x1024xf32>
    %cst_103 = arith.constant dense<0.000000e+00> : vector<16x1024xf32>
    %260 = tpu.matmul %258, %44, %cst_103 {dimension_numbers = #tpu.dot_dimension_numbers<[1], [0], [0], [1], [0, 0, 1, 1], [], []>} : vector<16x32xbf16>, vector<32x1024xbf16>, vector<16x1024xf32> -> vector<16x1024xf32>
    %261 = arith.mulf %259, %260 : vector<16x1024xf32>
    %262 = arith.addf %256, %261 : vector<16x1024xf32>
    %263 = vector.extract_strided_slice %39 {offsets = [0, 64], sizes = [16, 32], strides = [1, 1]} : vector<16x256xbf16> to vector<16x32xbf16>
    %264 = vector.extract_strided_slice %249 {offsets = [0, 64], sizes = [16, 32], strides = [1, 1]} : vector<16x256xbf16> to vector<16x32xbf16>
    %cst_104 = arith.constant dense<0.000000e+00> : vector<16x1024xf32>
    %265 = tpu.matmul %263, %43, %cst_104 {dimension_numbers = #tpu.dot_dimension_numbers<[1], [0], [0], [1], [0, 0, 1, 1], [], []>} : vector<16x32xbf16>, vector<32x1024xbf16>, vector<16x1024xf32> -> vector<16x1024xf32>
    %cst_105 = arith.constant dense<0.000000e+00> : vector<16x1024xf32>
    %266 = tpu.matmul %264, %44, %cst_105 {dimension_numbers = #tpu.dot_dimension_numbers<[1], [0], [0], [1], [0, 0, 1, 1], [], []>} : vector<16x32xbf16>, vector<32x1024xbf16>, vector<16x1024xf32> -> vector<16x1024xf32>
    %267 = arith.mulf %265, %266 : vector<16x1024xf32>
    %268 = arith.addf %262, %267 : vector<16x1024xf32>
    %269 = vector.extract_strided_slice %39 {offsets = [0, 96], sizes = [16, 32], strides = [1, 1]} : vector<16x256xbf16> to vector<16x32xbf16>
    %270 = vector.extract_strided_slice %249 {offsets = [0, 96], sizes = [16, 32], strides = [1, 1]} : vector<16x256xbf16> to vector<16x32xbf16>
    %cst_106 = arith.constant dense<0.000000e+00> : vector<16x1024xf32>
    %271 = tpu.matmul %269, %43, %cst_106 {dimension_numbers = #tpu.dot_dimension_numbers<[1], [0], [0], [1], [0, 0, 1, 1], [], []>} : vector<16x32xbf16>, vector<32x1024xbf16>, vector<16x1024xf32> -> vector<16x1024xf32>
    %cst_107 = arith.constant dense<0.000000e+00> : vector<16x1024xf32>
    %272 = tpu.matmul %270, %44, %cst_107 {dimension_numbers = #tpu.dot_dimension_numbers<[1], [0], [0], [1], [0, 0, 1, 1], [], []>} : vector<16x32xbf16>, vector<32x1024xbf16>, vector<16x1024xf32> -> vector<16x1024xf32>
    %273 = arith.mulf %271, %272 : vector<16x1024xf32>
    %274 = arith.addf %268, %273 : vector<16x1024xf32>
    %275 = vector.extract_strided_slice %39 {offsets = [0, 128], sizes = [16, 32], strides = [1, 1]} : vector<16x256xbf16> to vector<16x32xbf16>
    %276 = vector.extract_strided_slice %249 {offsets = [0, 128], sizes = [16, 32], strides = [1, 1]} : vector<16x256xbf16> to vector<16x32xbf16>
    %cst_108 = arith.constant dense<0.000000e+00> : vector<16x1024xf32>
    %277 = tpu.matmul %275, %43, %cst_108 {dimension_numbers = #tpu.dot_dimension_numbers<[1], [0], [0], [1], [0, 0, 1, 1], [], []>} : vector<16x32xbf16>, vector<32x1024xbf16>, vector<16x1024xf32> -> vector<16x1024xf32>
    %cst_109 = arith.constant dense<0.000000e+00> : vector<16x1024xf32>
    %278 = tpu.matmul %276, %44, %cst_109 {dimension_numbers = #tpu.dot_dimension_numbers<[1], [0], [0], [1], [0, 0, 1, 1], [], []>} : vector<16x32xbf16>, vector<32x1024xbf16>, vector<16x1024xf32> -> vector<16x1024xf32>
    %279 = arith.mulf %277, %278 : vector<16x1024xf32>
    %280 = arith.addf %274, %279 : vector<16x1024xf32>
    %281 = vector.extract_strided_slice %39 {offsets = [0, 160], sizes = [16, 32], strides = [1, 1]} : vector<16x256xbf16> to vector<16x32xbf16>
    %282 = vector.extract_strided_slice %249 {offsets = [0, 160], sizes = [16, 32], strides = [1, 1]} : vector<16x256xbf16> to vector<16x32xbf16>
    %cst_110 = arith.constant dense<0.000000e+00> : vector<16x1024xf32>
    %283 = tpu.matmul %281, %43, %cst_110 {dimension_numbers = #tpu.dot_dimension_numbers<[1], [0], [0], [1], [0, 0, 1, 1], [], []>} : vector<16x32xbf16>, vector<32x1024xbf16>, vector<16x1024xf32> -> vector<16x1024xf32>
    %cst_111 = arith.constant dense<0.000000e+00> : vector<16x1024xf32>
    %284 = tpu.matmul %282, %44, %cst_111 {dimension_numbers = #tpu.dot_dimension_numbers<[1], [0], [0], [1], [0, 0, 1, 1], [], []>} : vector<16x32xbf16>, vector<32x1024xbf16>, vector<16x1024xf32> -> vector<16x1024xf32>
    %285 = arith.mulf %283, %284 : vector<16x1024xf32>
    %286 = arith.addf %280, %285 : vector<16x1024xf32>
    %287 = vector.extract_strided_slice %39 {offsets = [0, 192], sizes = [16, 32], strides = [1, 1]} : vector<16x256xbf16> to vector<16x32xbf16>
    %288 = vector.extract_strided_slice %249 {offsets = [0, 192], sizes = [16, 32], strides = [1, 1]} : vector<16x256xbf16> to vector<16x32xbf16>
    %cst_112 = arith.constant dense<0.000000e+00> : vector<16x1024xf32>
    %289 = tpu.matmul %287, %43, %cst_112 {dimension_numbers = #tpu.dot_dimension_numbers<[1], [0], [0], [1], [0, 0, 1, 1], [], []>} : vector<16x32xbf16>, vector<32x1024xbf16>, vector<16x1024xf32> -> vector<16x1024xf32>
    %cst_113 = arith.constant dense<0.000000e+00> : vector<16x1024xf32>
    %290 = tpu.matmul %288, %44, %cst_113 {dimension_numbers = #tpu.dot_dimension_numbers<[1], [0], [0], [1], [0, 0, 1, 1], [], []>} : vector<16x32xbf16>, vector<32x1024xbf16>, vector<16x1024xf32> -> vector<16x1024xf32>
    %291 = arith.mulf %289, %290 : vector<16x1024xf32>
    %292 = arith.addf %286, %291 : vector<16x1024xf32>
    %293 = vector.extract_strided_slice %39 {offsets = [0, 224], sizes = [16, 32], strides = [1, 1]} : vector<16x256xbf16> to vector<16x32xbf16>
    %294 = vector.extract_strided_slice %249 {offsets = [0, 224], sizes = [16, 32], strides = [1, 1]} : vector<16x256xbf16> to vector<16x32xbf16>
    %cst_114 = arith.constant dense<0.000000e+00> : vector<16x1024xf32>
    %295 = tpu.matmul %293, %43, %cst_114 {dimension_numbers = #tpu.dot_dimension_numbers<[1], [0], [0], [1], [0, 0, 1, 1], [], []>} : vector<16x32xbf16>, vector<32x1024xbf16>, vector<16x1024xf32> -> vector<16x1024xf32>
    %cst_115 = arith.constant dense<0.000000e+00> : vector<16x1024xf32>
    %296 = tpu.matmul %294, %44, %cst_115 {dimension_numbers = #tpu.dot_dimension_numbers<[1], [0], [0], [1], [0, 0, 1, 1], [], []>} : vector<16x32xbf16>, vector<32x1024xbf16>, vector<16x1024xf32> -> vector<16x1024xf32>
    %297 = arith.mulf %295, %296 : vector<16x1024xf32>
    %298 = arith.addf %292, %297 : vector<16x1024xf32>
    %c0_116 = arith.constant 0 : index
    %c0_117 = arith.constant 0 : index
    %299 = vector.load %arg10[%c0_116, %c0_117] : memref<1x1024xf32, #tpu.memory_space<vmem>>, vector<1x1024xf32>
    %300 = vector.broadcast %299 : vector<1x1024xf32> to vector<16x1024xf32>
    %301 = arith.addf %298, %300 : vector<16x1024xf32>
    %cst_118 = arith.constant 5.000000e-01 : f32
    %302 = vector.broadcast %cst_118 : f32 to vector<16x1024xf32>
    %303 = arith.mulf %302, %301 : vector<16x1024xf32>
    %cst_119 = arith.constant 0.707106769 : f32
    %304 = vector.broadcast %cst_119 : f32 to vector<16x1024xf32>
    %305 = arith.mulf %301, %304 : vector<16x1024xf32>
    %306 = math.erf %305 : vector<16x1024xf32>
    %cst_120 = arith.constant 1.000000e+00 : f32
    %307 = vector.broadcast %cst_120 : f32 to vector<16x1024xf32>
    %308 = arith.addf %307, %306 : vector<16x1024xf32>
    %309 = arith.mulf %303, %308 : vector<16x1024xf32>
    %310 = arith.truncf %309 : vector<16x1024xf32> to vector<16x1024xbf16>
    %c0_121 = arith.constant 0 : index
    %c0_122 = arith.constant 0 : index
    %311 = vector.load %arg15[%c0_121, %c0_122] : memref<1024x128xbf16, #tpu.memory_space<vmem>>, vector<1024x128xbf16>
    %cst_123 = arith.constant dense<0.000000e+00> : vector<16x128xf32>
    %312 = tpu.matmul %310, %311, %cst_123 {dimension_numbers = #tpu.dot_dimension_numbers<[1], [0], [0], [1], [0, 0, 1, 1], [], []>} : vector<16x1024xbf16>, vector<1024x128xbf16>, vector<16x128xf32> -> vector<16x128xf32>
    %c0_124 = arith.constant 0 : index
    %c0_125 = arith.constant 0 : index
    %313 = vector.load %arg16[%c0_124, %c0_125] : memref<1x128xf32, #tpu.memory_space<vmem>>, vector<1x128xf32>
    %314 = vector.broadcast %313 : vector<1x128xf32> to vector<16x128xf32>
    %315 = arith.addf %312, %314 : vector<16x128xf32>
    %c0_126 = arith.constant 0 : index
    %c0_127 = arith.constant 0 : index
    %316 = vector.load %arg17[%c0_126, %c0_127] : memref<16x128xf32, #tpu.memory_space<vmem>>, vector<16x128xf32>
    tpu.vector_store %arg17[%c0_126, %c0_127], %315 {strides = array<i32>} : memref<16x128xf32, #tpu.memory_space<vmem>>, vector<16x128xf32>,
    return
  }
  func.func @transform_0(%arg0: i32) -> (i32, i32) {
    %c0_i32 = arith.constant 0 : i32
    %c0_i32_0 = arith.constant 0 : i32
    return %arg0, %c0_i32 : i32, i32
  }
  func.func @transform_1(%arg0: i32) -> (i32, i32) {
    %c0_i32 = arith.constant 0 : i32
    %c0_i32_0 = arith.constant 0 : i32
    return %arg0, %c0_i32 : i32, i32
  }
  func.func @transform_2(%arg0: i32) -> (i32, i32) {
    %c0_i32 = arith.constant 0 : i32
    %c0_i32_0 = arith.constant 0 : i32
    %c0_i32_1 = arith.constant 0 : i32
    return %c0_i32, %c0_i32_0 : i32, i32
  }
  func.func @transform_3(%arg0: i32) -> (i32, i32) {
    %c0_i32 = arith.constant 0 : i32
    %c0_i32_0 = arith.constant 0 : i32
    %c0_i32_1 = arith.constant 0 : i32
    return %c0_i32, %c0_i32_0 : i32, i32
  }
  func.func @transform_4(%arg0: i32) -> (i32, i32) {
    %c0_i32 = arith.constant 0 : i32
    %c0_i32_0 = arith.constant 0 : i32
    %c0_i32_1 = arith.constant 0 : i32
    return %c0_i32, %c0_i32_0 : i32, i32
  }
  func.func @transform_5(%arg0: i32) -> (i32, i32) {
    %c0_i32 = arith.constant 0 : i32
    %c0_i32_0 = arith.constant 0 : i32
    %c0_i32_1 = arith.constant 0 : i32
    return %c0_i32, %c0_i32_0 : i32, i32
  }
  func.func @transform_6(%arg0: i32) -> (i32, i32) {
    %c0_i32 = arith.constant 0 : i32
    %c0_i32_0 = arith.constant 0 : i32
    %c0_i32_1 = arith.constant 0 : i32
    return %c0_i32, %c0_i32_0 : i32, i32
  }
  func.func @transform_7(%arg0: i32) -> (i32, i32) {
    %c0_i32 = arith.constant 0 : i32
    %c0_i32_0 = arith.constant 0 : i32
    %c0_i32_1 = arith.constant 0 : i32
    return %c0_i32, %c0_i32_0 : i32, i32
  }
  func.func @transform_8(%arg0: i32) -> (i32, i32) {
    %c0_i32 = arith.constant 0 : i32
    %c0_i32_0 = arith.constant 0 : i32
    %c0_i32_1 = arith.constant 0 : i32
    return %c0_i32, %c0_i32_0 : i32, i32
  }
  func.func @transform_9(%arg0: i32) -> (i32, i32) {
    %c0_i32 = arith.constant 0 : i32
    %c0_i32_0 = arith.constant 0 : i32
    %c0_i32_1 = arith.constant 0 : i32
    return %c0_i32, %c0_i32_0 : i32, i32
  }
  func.func @transform_10(%arg0: i32) -> (i32, i32) {
    %c0_i32 = arith.constant 0 : i32
    %c0_i32_0 = arith.constant 0 : i32
    %c0_i32_1 = arith.constant 0 : i32
    return %c0_i32, %c0_i32_0 : i32, i32
  }
  func.func @transform_11(%arg0: i32) -> (i32, i32) {
    %c0_i32 = arith.constant 0 : i32
    %c0_i32_0 = arith.constant 0 : i32
    %c0_i32_1 = arith.constant 0 : i32
    return %c0_i32, %c0_i32_0 : i32, i32
  }
  func.func @transform_12(%arg0: i32) -> (i32, i32) {
    %c0_i32 = arith.constant 0 : i32
    %c0_i32_0 = arith.constant 0 : i32
    %c0_i32_1 = arith.constant 0 : i32
    return %c0_i32, %c0_i32_0 : i32, i32
  }
  func.func @transform_13(%arg0: i32) -> (i32, i32) {
    %c0_i32 = arith.constant 0 : i32
    %c0_i32_0 = arith.constant 0 : i32
    %c0_i32_1 = arith.constant 0 : i32
    return %c0_i32, %c0_i32_0 : i32, i32
  }
  func.func @transform_14(%arg0: i32) -> (i32, i32) {
    %c0_i32 = arith.constant 0 : i32
    %c0_i32_0 = arith.constant 0 : i32
    %c0_i32_1 = arith.constant 0 : i32
    return %c0_i32, %c0_i32_0 : i32, i32
  }
  func.func @transform_15(%arg0: i32) -> (i32, i32) {
    %c0_i32 = arith.constant 0 : i32
    %c0_i32_0 = arith.constant 0 : i32
    %c0_i32_1 = arith.constant 0 : i32
    return %c0_i32, %c0_i32_0 : i32, i32
  }
  func.func @transform_16(%arg0: i32) -> (i32, i32) {
    %c0_i32 = arith.constant 0 : i32
    %c0_i32_0 = arith.constant 0 : i32
    return %arg0, %c0_i32 : i32, i32
  }
}

</mosaic_0001>

<bundles_post_ra>
// kernel: tpu_custom_call.1
= control target key start
LH: loop header
LB: loop body
LE: loop exit
PB: predicated region body
PF: predicated region fallthrough
CT: control target
= control target key end

     0   :  { %s11797_s0 = inlined_call_operand.hbm [shape: f32[16,32], index: 0, kind: input, shape index: {}]   ;;  %s11798_s1 = inlined_call_operand.hbm [shape: bf16[16,256], index: 1, kind: input, shape index: {}]   ;;  %s11799_s2 = inlined_call_operand.hbm [shape: f32[1,32], index: 2, kind: input, shape index: {}]   ;;  %s11800_s3 = inlined_call_operand.hbm [shape: f32[1,32], index: 3, kind: input, shape index: {}]   ;;  %s11801_s4 = inlined_call_operand.hbm [shape: f32[32,128], index: 4, kind: input, shape index: {}]   ;;  %s11802_s5 = inlined_call_operand.hbm [shape: f32[1,128], index: 5, kind: input, shape index: {}]   ;;  %s11803_s6 = inlined_call_operand.hbm [shape: bf16[128,1280], index: 6, kind: input, shape index: {}]   ;;  %s11804_s7 = inlined_call_operand.vmem [shape: f32[1,1280], index: 7, kind: input, shape index: {}]   ;;  %s11805_s8 = inlined_call_operand.hbm [shape: f32[1,256], index: 8, kind: input, shape index: {}]   ;;  %s11806_s9 = inlined_call_operand.hbm [shape: f32[1,1024], index: 9, kind: input, shape index: {}]   ;;  %s11807_s10 = inlined_call_operand.vmem [shape: bf16[8,256], index: 10, kind: input, shape index: {}]   ;;  %s11808_s11 = inlined_call_operand.hbm [shape: bf16[32,256], index: 11, kind: input, shape index: {}]   ;;  %s11809_s12 = inlined_call_operand.hbm [shape: bf16[32,1024], index: 12, kind: input, shape index: {}]   ;;  %s11810_s13 = inlined_call_operand.hbm [shape: bf16[32,1024], index: 13, kind: input, shape index: {}]   ;;  %s11811_s14 = inlined_call_operand.hbm [shape: bf16[1024,128], index: 14, kind: input, shape index: {}]   ;;  %s11812_s15 = inlined_call_operand.vmem [shape: f32[1,128], index: 15, kind: input, shape index: {}]   ;;  %s11813_s16 = inlined_call_operand.hbm [shape: f32[16,128], index: 16, kind: output, shape index: {}]  }
   0x1   :  { %11884 = sst [smem:[#allocation79_spill]] %s11797_s0 }
   0x2   :  { %21 = vsyncpa [#allocation3], 0 }
   0x3   :  { %22 = vsyncpa [#allocation6], 0 }
   0x4   :  { %23 = vsyncpa [#allocation9], 0 }
   0x5   :  { %24 = vsyncpa [#allocation12], 0 }
   0x6   :  { %25 = vsyncpa [#allocation15], 0 }
   0x7   :  { %26 = vsyncpa [#allocation18], 0 }
   0x8   :  { %27 = vsyncpa [#allocation21], 0 }
   0x9   :  { %28 = vsyncpa [#allocation4], 0  ;;  %s9681_s21 = smov [#allocation5]   ;;  %s9682_s23 = smov [#allocation8]  }
   0xa   :  { %s46_s22 = sshll.u32 %s9681_s21, 4  ;;  %s69_s24 = sshll.u32 %s9682_s23, 4  ;;  %s47_s22 = int_to_ptr.vmem [resolvable:$true] %s46_s22  ;;  %s70_s24 = int_to_ptr.vmem [resolvable:$true] %s69_s24 }
   0xb   :  { %s9393_s25 = scalar_lea.vmem %s47_s22, 256  ;;  %p9398_p1 = scmp.lt.s32.totalorder %s47_s22, %s47_s22 }
   0xc   :  { %p9394_p0 = scmp.ne.s32.totalorder %s47_s22, %s9393_s25  ;;  %p9399_p2 = scmp.lt.s32.totalorder %s9393_s25, %s9393_s25 }
   0xe   :  { %p9400_p3 = por %p9399_p2, %p9398_p1 }
  0x10   :  { %p9401_p4 = pnand %p9400_p3, %p9394_p0 }
  0x12   :  { %9404 = shalt.err (!%p9401_p4)
}
  0x13   :  { %s9683_s26 = smov 128   ;;  %s9684_s27 = smov 8  }
  0x14   :  { %52 = dma.hbm_to_vmem [thread:$0]  %s11798_s1, 256, %s47_s22, [#allocation6], %s9683_s26, %s9683_s26, %s9684_s27  }
  0x15   :  { %s9413_s30 = scalar_lea.vmem %s70_s24, 16  ;;  %s9417_s0 = scalar_lea.vmem %s70_s24, 32 }
  0x16   :  { %p9414_p5 = scmp.ne.s32.totalorder %s70_s24, %s9413_s30  ;;  %p9418_p6 = scmp.lt.s32.totalorder %s70_s24, %s70_s24 }
  0x17   :  { %p9419_p7 = scmp.lt.s32.totalorder %s9417_s0, %s9413_s30 }
  0x19   :  { %p9420_p8 = por %p9419_p7, %p9418_p6 }
  0x1b   :  { %p9421_p9 = pnand %p9420_p8, %p9414_p5 }
  0x1d   :  { %9424 = shalt.err (!%p9421_p9)
}
  0x1e   :  { %72 = dma.hbm_to_vmem [thread:$0]  %s11800_s3, 16, %s70_s24, [#allocation9]  }
  0x1f   :  { %s9685_s19 = smov [#allocation11]   ;;  %s9686_s21 = smov [#allocation14]  }
  0x20   :  { %s91_s20 = sshll.u32 %s9685_s19, 4  ;;  %s115_s23 = sshll.u32 %s9686_s21, 4  ;;  %s92_s20 = int_to_ptr.vmem [resolvable:$true] %s91_s20  ;;  %s116_s23 = int_to_ptr.vmem [resolvable:$true] %s115_s23 }
  0x21   :  { %s9433_s25 = scalar_lea.vmem %s92_s20, 16  ;;  %s9437_s1 = scalar_lea.vmem %s92_s20, 32 }
  0x22   :  { %p9434_p10 = scmp.ne.s32.totalorder %s92_s20, %s9433_s25  ;;  %p9438_p11 = scmp.lt.s32.totalorder %s92_s20, %s92_s20 }
  0x23   :  { %p9439_p12 = scmp.lt.s32.totalorder %s9437_s1, %s9433_s25 }
  0x25   :  { %p9440_p13 = por %p9439_p12, %p9438_p11 }
  0x27   :  { %p9441_p0 = pnand %p9440_p13, %p9434_p10 }
  0x29   :  { %9444 = shalt.err (!%p9441_p0)
}
  0x2a   :  { %94 = dma.hbm_to_vmem [thread:$0]  %s11802_s5, 16, %s92_s20, [#allocation12]  }
  0x2b   :  { %s9453_s29 = scalar_lea.vmem %s116_s23, 32  ;;  %p9458_p2 = scmp.lt.s32.totalorder %s116_s23, %s116_s23 }
  0x2c   :  { %p9454_p1 = scmp.ne.s32.totalorder %s116_s23, %s9453_s29  ;;  %p9459_p3 = scmp.lt.s32.totalorder %s9453_s29, %s9453_s29 }
  0x2e   :  { %p9460_p4 = por %p9459_p3, %p9458_p2 }
  0x30   :  { %p9461_p5 = pnand %p9460_p4, %p9454_p1 }
  0x32   :  { %9464 = shalt.err (!%p9461_p5)
}
  0x33   :  { %118 = dma.hbm_to_vmem [thread:$0]  %s11805_s8, 32, %s116_s23, [#allocation15]  }
  0x34   :  { %s9687_s30 = smov [#allocation17]  }
  0x35   :  { %s136_s0 = sshll.u32 %s9687_s30, 4  ;;  %s137_s0 = int_to_ptr.vmem [resolvable:$true] %s136_s0 }
  0x36   :  { %s9473_s17 = scalar_lea.vmem %s137_s0, 512  ;;  %p9478_p7 = scmp.lt.s32.totalorder %s137_s0, %s137_s0 }
  0x37   :  { %p9474_p6 = scmp.ne.s32.totalorder %s137_s0, %s9473_s17  ;;  %p9479_p8 = scmp.lt.s32.totalorder %s9473_s17, %s9473_s17 }
  0x39   :  { %p9480_p9 = por %p9479_p8, %p9478_p7 }
  0x3b   :  { %p9481_p10 = pnand %p9480_p9, %p9474_p6 }
  0x3d   :  { %9484 = shalt.err (!%p9481_p10)
}
  0x3e   :  { %142 = dma.hbm_to_vmem [thread:$0]  %s11808_s11, 512, %s137_s0, [#allocation18], %s9683_s26, %s9683_s26, %s9684_s27  }
  0x3f   :  { %s9688_s19 = smov [#allocation20]   ;;  %s9689_s8 = smov [#allocation2]  }
  0x40   :  { %s160_s20 = sshll.u32 %s9688_s19, 4  ;;  %s34_s21 = sshll.u32 %s9689_s8, 4  ;;  %s161_s20 = int_to_ptr.vmem [resolvable:$true] %s160_s20  ;;  %s35_s21 = int_to_ptr.vmem [resolvable:$true] %s34_s21 }
  0x41   :  { %s9493_s23 = scalar_lea.vmem %s161_s20, 2048  ;;  %p9498_p12 = scmp.lt.s32.totalorder %s161_s20, %s161_s20 }
  0x42   :  { %p9494_p11 = scmp.ne.s32.totalorder %s161_s20, %s9493_s23  ;;  %p9499_p13 = scmp.lt.s32.totalorder %s9493_s23, %s9493_s23 }
  0x44   :  { %p9500_p0 = por %p9499_p13, %p9498_p12 }
  0x46   :  { %p9501_p1 = pnand %p9500_p0, %p9494_p11 }
  0x48   :  { %9504 = shalt.err (!%p9501_p1)
}
  0x49   :  { %s9690_s25 = smov 512   ;;  %s9691_s1 = smov 32  }
  0x4a   :  { %166 = dma.hbm_to_vmem [thread:$0]  %s11810_s13, 2048, %s161_s20, [#allocation21], %s9690_s25, %s9690_s25, %s9691_s1  }
  0x4b   :  { %s9513_s11 = scalar_lea.vmem %s35_s21, 256  ;;  %p9518_p3 = scmp.lt.s32.totalorder %s35_s21, %s35_s21 }
  0x4c   :  { %p9514_p2 = scmp.ne.s32.totalorder %s35_s21, %s9513_s11  ;;  %p9519_p4 = scmp.lt.s32.totalorder %s9513_s11, %s9513_s11 }
  0x4e   :  { %p9520_p5 = por %p9519_p4, %p9518_p3 }
  0x50   :  { %p9521_p6 = pnand %p9520_p5, %p9514_p2 }
  0x52   :  { %9524 = shalt.err (!%p9521_p6)
}
  0x53   :  { %s11885_s24 = sld [smem:[#allocation79_spill]]  ;;  %s9692_s30 = smov [#allocation7]  }
  0x54   :  { %s59_s0 = sshll.u32 %s9692_s30, 4  ;;  %s9693_s17 = smov [#allocation10]   ;;  %s60_s0 = int_to_ptr.vmem [resolvable:$true] %s59_s0 }
  0x55   :  { %s78_s13 = sshll.u32 %s9693_s17, 4  ;;  %s9533_s5 = scalar_lea.vmem %s60_s0, 16  ;;  %s79_s13 = int_to_ptr.vmem [resolvable:$true] %s78_s13 }
  0x56   :  { %p9534_p7 = scmp.ne.s32.totalorder %s60_s0, %s9533_s5  ;;  %s9537_s18 = scalar_lea.vmem %s60_s0, 32 }
  0x57   :  { %p9538_p8 = scmp.lt.s32.totalorder %s60_s0, %s60_s0  ;;  %p9539_p9 = scmp.lt.s32.totalorder %s9537_s18, %s9533_s5 }
  0x59   :  { %40 = dma.hbm_to_vmem [thread:$0]  %s11885_s24, 256, %s35_s21, [#allocation3], %s9683_s26, %s9683_s26, %s9684_s27  }
  0x5a   :  { %p9540_p10 = por %p9539_p9, %p9538_p8 }
  0x5c   :  { %p9541_p11 = pnand %p9540_p10, %p9534_p7 }
  0x5e   :  { %9544 = shalt.err (!%p9541_p11)
}
  0x5f   :  { %62 = dma.hbm_to_vmem [thread:$0]  %s11799_s2, 16, %s60_s0, [#allocation6]  }
  0x60   :  { %s9553_s8 = scalar_lea.vmem %s79_s13, 512  ;;  %p9558_p13 = scmp.lt.s32.totalorder %s79_s13, %s79_s13 }
  0x61   :  { %p9554_p12 = scmp.ne.s32.totalorder %s79_s13, %s9553_s8  ;;  %p9559_p0 = scmp.lt.s32.totalorder %s9553_s8, %s9553_s8 }
  0x63   :  { %p9560_p1 = por %p9559_p0, %p9558_p13 }
  0x65   :  { %p9561_p2 = pnand %p9560_p1, %p9554_p12 }
  0x67   :  { %9564 = shalt.err (!%p9561_p2)
}
  0x68   :  { %84 = dma.hbm_to_vmem [thread:$0]  %s11801_s4, 512, %s79_s13, [#allocation9], %s9683_s26, %s9683_s26, %s9684_s27  }
  0x69   :  { %s9694_s22 = smov [#allocation13]  }
  0x6a   :  { %s100_s28 = sshll.u32 %s9694_s22, 4  ;;  %s101_s28 = int_to_ptr.vmem [resolvable:$true] %s100_s28 }
  0x6b   :  { %s9573_s11 = scalar_lea.vmem %s101_s28, 10240  ;;  %p9578_p4 = scmp.lt.s32.totalorder %s101_s28, %s101_s28 }
  0x6c   :  { %p9574_p3 = scmp.ne.s32.totalorder %s101_s28, %s9573_s11  ;;  %p9579_p5 = scmp.lt.s32.totalorder %s9573_s11, %s9573_s11 }
  0x6e   :  { %p9580_p6 = por %p9579_p5, %p9578_p4 }
  0x70   :  { %p9581_p7 = pnand %p9580_p6, %p9574_p3 }
  0x72   :  { %9584 = shalt.err (!%p9581_p7)
}
  0x73   :  { %s9695_s2 = smov 640   ;;  %s9696_s29 = smov 40  }
  0x74   :  { %106 = dma.hbm_to_vmem [thread:$0]  %s11803_s6, 10240, %s101_s28, [#allocation12], %s9695_s2, %s9695_s2, %s9696_s29  }
  0x75   :  { %s9697_s30 = smov [#allocation16]   ;;  %s9698_s4 = smov [#allocation19]  }
  0x76   :  { %s125_s0 = sshll.u32 %s9697_s30, 4  ;;  %s148_s17 = sshll.u32 %s9698_s4, 4  ;;  %s126_s0 = int_to_ptr.vmem [resolvable:$true] %s125_s0  ;;  %s149_s17 = int_to_ptr.vmem [resolvable:$true] %s148_s17 }
  0x77   :  { %s9593_s13 = scalar_lea.vmem %s126_s0, 128  ;;  %p9598_p9 = scmp.lt.s32.totalorder %s126_s0, %s126_s0 }
  0x78   :  { %p9594_p8 = scmp.ne.s32.totalorder %s126_s0, %s9593_s13  ;;  %p9599_p10 = scmp.lt.s32.totalorder %s9593_s13, %s9593_s13 }
  0x7a   :  { %p9600_p11 = por %p9599_p10, %p9598_p9 }
  0x7c   :  { %p9601_p12 = pnand %p9600_p11, %p9594_p8 }
  0x7e   :  { %9604 = shalt.err (!%p9601_p12)
}
  0x7f   :  { %128 = dma.hbm_to_vmem [thread:$0]  %s11806_s9, 128, %s126_s0, [#allocation15]  }
  0x80   :  { %s9613_s19 = scalar_lea.vmem %s149_s17, 2048  ;;  %p9618_p0 = scmp.lt.s32.totalorder %s149_s17, %s149_s17 }
  0x81   :  { %p9614_p13 = scmp.ne.s32.totalorder %s149_s17, %s9613_s19  ;;  %p9619_p1 = scmp.lt.s32.totalorder %s9613_s19, %s9613_s19 }
  0x83   :  { %p9620_p2 = por %p9619_p1, %p9618_p0 }
  0x85   :  { %p9621_p3 = pnand %p9620_p2, %p9614_p13 }
  0x87   :  { %9624 = shalt.err (!%p9621_p3)
}
  0x88   :  { %154 = dma.hbm_to_vmem [thread:$0]  %s11809_s12, 2048, %s149_s17, [#allocation18], %s9690_s25, %s9690_s25, %s9691_s1  }
  0x89   :  { %s9699_s8 = smov [#allocation22]  }
  0x8a   :  { %s172_s21 = sshll.u32 %s9699_s8, 4  ;;  %s173_s21 = int_to_ptr.vmem [resolvable:$true] %s172_s21 }
  0x8b   :  { %s9633_s23 = scalar_lea.vmem %s173_s21, 8192  ;;  %p9638_p5 = scmp.lt.s32.totalorder %s173_s21, %s173_s21 }
  0x8c   :  { %p9634_p4 = scmp.ne.s32.totalorder %s173_s21, %s9633_s23  ;;  %p9639_p6 = scmp.lt.s32.totalorder %s9633_s23, %s9633_s23 }
  0x8e   :  { %p9640_p7 = por %p9639_p6, %p9638_p5 }
  0x90   :  { %p9641_p8 = pnand %p9640_p7, %p9634_p4 }
  0x92   :  { %9644 = shalt.err (!%p9641_p8)
}
  0x93   :  { %s9700_s9 = smov 64   ;;  %s9701_s22 = smov 4  }
  0x94   :  { %178 = dma.hbm_to_vmem [thread:$0]  %s11811_s14, 8192, %s173_s21, [#allocation21], %s9700_s9, %s9700_s9, %s9701_s22  }
  0x95   :  { %9665 = dma.done.wait [#allocation3], 256  }
  0x96   :  { %9666 = vsyncadd [#allocation3], 4294967040 }
  0x97   :  { %9667 = dma.done.wait [#allocation6], 272  }
  0x98   :  { %9668 = vsyncadd [#allocation6], 4294967024 }
  0x99   :  { %9669 = dma.done.wait [#allocation9], 528  }
  0x9a   :  { %9670 = vsyncadd [#allocation9], 4294966768 }
  0x9b   :  { %9671 = dma.done.wait [#allocation12], 10256  }
  0x9c   :  { %9672 = vsyncadd [#allocation12], 4294957040 }
  0x9d   :  { %9673 = dma.done.wait [#allocation15], 160  }
  0x9e   :  { %9674 = vsyncadd [#allocation15], 4294967136 }
  0x9f   :  { %9675 = dma.done.wait [#allocation18], 2560  }
  0xa0   :  { %9676 = vsyncadd [#allocation18], 4294964736 }
  0xa1   :  { %9677 = dma.done.wait [#allocation21], 10240  }
  0xa2   :  { %9678 = vsyncadd [#allocation21], 4294957056  ;;  %vm223_vm0 = vcmask 261120   ;;  %v221_v0 = vld [vmem:[#allocation2] sm:$0xff]  ;;  %v222_v1 = vld [vmem:[#allocation2 + $0x8] sm:$0xff]  ;;  %s9703_s12 = smov 120  }
  0xa3   :  { %v224_v2 = vsel %vm223_vm0, %v221_v0, 0.0  ;;  %v227_v3 = vsel %vm223_vm0, %v222_v1, 0.0  ;;  %v272_v14 = vld [vmem:[#allocation10 + $0x18] sm:$0xff]  ;;  %v271_v15 = vld [vmem:[#allocation10 + $0x10] sm:$0xff]  ;;  %v270_v16 = vld [vmem:[#allocation10 + $0x8] sm:$0xff]  ;;  %vm1174_vm1 = vcmask 1043456  }
  0xa4   :  { %225 = vadd.xlane.f32.xlu0 %v224_v2  ;;  %9097 = vmatprep.subr.mxu0 %v272_v14  ;;  %v269_v17 = vld [vmem:[#allocation10] sm:$0xff]  ;;  %v9147_v20 = vld [vmem:[#allocation13 + $0x230] ss:$40 sps:$4 sm:$0xff]   ;;  %v8654_v42 = vld [vmem:[#allocation8] ss:$0 sm:$0xff]  ;;  %vm1170_vm2 = vcmask 64512  }
  0xa5   :  { %9098 = vmatpush3.msra.mxu0 %v272_v14  ;;  %v9142_v18 = vld [vmem:[#allocation13 + $0x234] ss:$40 sps:$4 sm:$0xff]   ;;  %v9148_v21 = vld [vmem:[#allocation13 + $0x1e4] ss:$40 sps:$4 sm:$0xff]   ;;  %v9153_v22 = vld [vmem:[#allocation13 + $0x1e0] ss:$40 sps:$4 sm:$0xff]  }
  0xa6   :  { %9099 = vmatprep.subr.mxu0 %v271_v15  ;;  %v9146_v19 = vld [vmem:[#allocation13 + $0x23c] ss:$40 sps:$4 sm:$0xff]   ;;  %896 = vmatprep.subr.bf16.mxu1 %v9142_v18  ;;  %v9159_v24 = vld [vmem:[#allocation13 + $0x190] ss:$40 sps:$4 sm:$0xff]   ;;  %v9165_v26 = vld [vmem:[#allocation13 + $0x140] ss:$40 sps:$4 sm:$0xff]  }
  0xa7   :  { %9100 = vmatpush3.msra.mxu0 %v271_v15  ;;  %897 = vmatpush1.bf16.msra.mxu1 %v9147_v20  ;;  %v9154_v23 = vld [vmem:[#allocation13 + $0x194] ss:$40 sps:$4 sm:$0xff]   ;;  %v9160_v25 = vld [vmem:[#allocation13 + $0x144] ss:$40 sps:$4 sm:$0xff]   ;;  %v9171_v28 = vld [vmem:[#allocation13 + $0xf0] ss:$40 sps:$4 sm:$0xff]  }
  0xa8   :  { %228 = vadd.xlane.f32.xlu0 %v227_v3  ;;  %9101 = vmatprep.subr.mxu0 %v270_v16  ;;  %v9166_v27 = vld [vmem:[#allocation13 + $0xf4] ss:$40 sps:$4 sm:$0xff]   ;;  %v9172_v29 = vld [vmem:[#allocation13 + $0xa4] ss:$40 sps:$4 sm:$0xff]   ;;  %v9177_v30 = vld [vmem:[#allocation13 + $0xa0] ss:$40 sps:$4 sm:$0xff]  }
  0xa9   :  { %9102 = vmatpush3.msra.mxu0 %v270_v16  ;;  %898 = vmatprep.subr.bf16.mxu1 %v9148_v21  ;;  %v9178_v31 = vld [vmem:[#allocation13 + $0x54] ss:$40 sps:$4 sm:$0xff]   ;;  %v9183_v32 = vld [vmem:[#allocation13 + $0x50] ss:$40 sps:$4 sm:$0xff]   ;;  %v9184_v62 = vld [vmem:[#allocation13 + $0x4] ss:$40 sps:$4 sm:$0xff]  }
  0xaa   :  { %9103 = vmatprep.subr.mxu0 %v269_v17  ;;  %v8653_v40 = vld [vmem:[#allocation7] ss:$0 sm:$0xff]  ;;  %v9152_v50 = vld [vmem:[#allocation13 + $0x1ec] ss:$40 sps:$4 sm:$0xff]   ;;  %v9150_v51 = vld [vmem:[#allocation13 + $0x1e8] ss:$40 sps:$4 sm:$0xff]  }
  0xab   :  { %9104 = vmatpush3.msra.mxu0 %v269_v17  ;;  %899 = vmatpush1.bf16.msra.mxu1 %v9153_v22  ;;  %v9144_v48 = vld [vmem:[#allocation13 + $0x238] ss:$40 sps:$4 sm:$0xff]   ;;  %v9158_v52 = vld [vmem:[#allocation13 + $0x19c] ss:$40 sps:$4 sm:$0xff]   ;;  %v9164_v54 = vld [vmem:[#allocation13 + $0x14c] ss:$40 sps:$4 sm:$0xff]  }
  0xac   :  { %939 = vmatprep.subr.bf16.mxu0 %v9146_v19  ;;  %900 = vmatprep.subr.bf16.mxu1 %v9154_v23  ;;  %v9156_v53 = vld [vmem:[#allocation13 + $0x198] ss:$40 sps:$4 sm:$0xff]   ;;  %v9162_v55 = vld [vmem:[#allocation13 + $0x148] ss:$40 sps:$4 sm:$0xff]   ;;  %v9170_v56 = vld [vmem:[#allocation13 + $0xfc] ss:$40 sps:$4 sm:$0xff]  }
  0xad   :  { %v9168_v57 = vld [vmem:[#allocation13 + $0xf8] ss:$40 sps:$4 sm:$0xff]   ;;  %v9176_v58 = vld [vmem:[#allocation13 + $0xac] ss:$40 sps:$4 sm:$0xff]   ;;  %v9174_v59 = vld [vmem:[#allocation13 + $0xa8] ss:$40 sps:$4 sm:$0xff]  }
  0xae   :  { %v9182_v60 = vld [vmem:[#allocation13 + $0x5c] ss:$40 sps:$4 sm:$0xff]   ;;  %v9180_v61 = vld [vmem:[#allocation13 + $0x58] ss:$40 sps:$4 sm:$0xff]   ;;  %v9188_v63 = vld [vmem:[#allocation13 + $0xc] ss:$40 sps:$4 sm:$0xff]  }
  0xaf   :  { %901 = vmatpush1.bf16.msra.mxu1 %v9159_v24  ;;  %v9192_v2 = vld [vmem:[#allocation13 + $0x244] ss:$40 sps:$4 sm:$0xff]   ;;  %v9198_v14 = vld [vmem:[#allocation13 + $0x1f4] ss:$40 sps:$4 sm:$0xff]   ;;  %v9196_v16 = vld [vmem:[#allocation13 + $0x1f0] ss:$40 sps:$4 sm:$0xff]  }
  0xb0   :  { %902 = vmatprep.subr.bf16.mxu1 %v9160_v25  ;;  %v9195_v3 = vld [vmem:[#allocation13 + $0x24c] ss:$40 sps:$4 sm:$0xff]   ;;  %v9201_v15 = vld [vmem:[#allocation13 + $0x1fc] ss:$40 sps:$4 sm:$0xff]   ;;  %v9199_v17 = vld [vmem:[#allocation13 + $0x1f8] ss:$40 sps:$4 sm:$0xff]  }
  0xb1   :  { %v9204_v18 = vld [vmem:[#allocation13 + $0x1a4] ss:$40 sps:$4 sm:$0xff]   ;;  %v9202_v20 = vld [vmem:[#allocation13 + $0x1a0] ss:$40 sps:$4 sm:$0xff]   ;;  %v9210_v22 = vld [vmem:[#allocation13 + $0x154] ss:$40 sps:$4 sm:$0xff]  }
  0xb2   :  { %v9207_v19 = vld [vmem:[#allocation13 + $0x1ac] ss:$40 sps:$4 sm:$0xff]   ;;  %v9205_v21 = vld [vmem:[#allocation13 + $0x1a8] ss:$40 sps:$4 sm:$0xff]   ;;  %v9213_v23 = vld [vmem:[#allocation13 + $0x15c] ss:$40 sps:$4 sm:$0xff]  }
  0xb3   :  { %903 = vmatpush1.bf16.msra.mxu1 %v9165_v26  ;;  %v9208_v24 = vld [vmem:[#allocation13 + $0x150] ss:$40 sps:$4 sm:$0xff]   ;;  %v9216_v26 = vld [vmem:[#allocation13 + $0x104] ss:$40 sps:$4 sm:$0xff]   ;;  %s9705_s2 = smov 96   ;;  %s9706_s30 = smov 112  }
  0xb4   :  { %904 = vmatprep.subr.bf16.mxu1 %v9166_v27  ;;  %v9211_v25 = vld [vmem:[#allocation13 + $0x158] ss:$40 sps:$4 sm:$0xff]   ;;  %v9219_v27 = vld [vmem:[#allocation13 + $0x10c] ss:$40 sps:$4 sm:$0xff]   ;;  %s9707_s0 = smov 56   ;;  %s9708_s4 = smov 88  }
  0xb5   :  { %s9709_s17 = smov 48   ;;  %s9710_s13 = smov 80  }
  0xb6   :  { %s9711_s5 = smov 72   ;;  %s9712_s18 = smov 24  }
  0xb7   :  { %905 = vmatpush1.bf16.msra.mxu1 %v9171_v28  ;;  %v9214_v28 = vld [vmem:[#allocation13 + $0x100] ss:$40 sps:$4 sm:$0xff]   ;;  %s9713_s19 = smov 16  }
  0xb8   :  { %906 = vmatprep.subr.bf16.mxu1 %v9172_v29  ;;  %v9217_v29 = vld [vmem:[#allocation13 + $0x108] ss:$40 sps:$4 sm:$0xff]  }
  0xbb   :  { %907 = vmatpush1.bf16.msra.mxu1 %v9177_v30  ;;  %v9222_v30 = vld [vmem:[#allocation13 + $0xb4] ss:$40 sps:$4 sm:$0xff]  }
  0xbc   :  { %908 = vmatprep.subr.bf16.mxu1 %v9178_v31  ;;  %v9225_v31 = vld [vmem:[#allocation13 + $0xbc] ss:$40 sps:$4 sm:$0xff]  }
  0xbf   :  { %909 = vmatpush1.bf16.msra.mxu1 %v9183_v32  ;;  %v9220_v32 = vld [vmem:[#allocation13 + $0xb0] ss:$40 sps:$4 sm:$0xff]  }
  0xc0   :  { %910 = vmatprep.subr.bf16.mxu1 %v9184_v62  ;;  %v9896_v62 = vld [vmem:[#allocation17 + $0x14] ss:$8 sps:$4 sm:$0xff]  }
 0x12d   :  { %v226_v4 = vpop.xlane.xlu0 %225 }
 0x12e   :  { %v231_v5 = vmul.f32 0.03125, %v226_v4  ;;  %v11820_v4 = vmov 0  }
 0x12f   :  { %928 = vmatprep.mubr.bf16.mxu1 %v11820_v4 }
 0x130   :  { %v233_v6 = vsub.f32 %v221_v0, %v231_v5  ;;  %v9186_v0 = vld [vmem:[#allocation13 + $0x8] ss:$40 sps:$4 sm:$0xff]  }
 0x131   :  { %v229_v7 = vpop.xlane.xlu0 %228  ;;  %v9868_v5 = vld [vmem:[#allocation5] ss:$8 sps:$4 sm:$0xff]  }
 0x132   :  { %v232_v8 = vmul.f32 0.03125, %v229_v7  ;;  %v235_v9 = vmul.f32 %v233_v6, %v233_v6  ;;  %1298 = vrot.lane.b32.xlu0 %v9868_v5, %s9703_s12  ;;  %v8655_v7 = vld [vmem:[#allocation11] ss:$0 sm:$0xff] }
 0x134   :  { %v234_v10 = vsub.f32 %v222_v1, %v232_v8  ;;  %v237_v11 = vsel %vm223_vm0, %v235_v9, 0.0  ;;  %v9189_v1 = vld [vmem:[#allocation13] ss:$40 sps:$4 sm:$0xff]  }
 0x135   :  { %238 = vadd.xlane.f32.xlu1 %v237_v11  ;;  %911 = vmatpush1.bf16.msra.mxu1 %v9189_v1  ;;  %v9190_v11 = vld [vmem:[#allocation13 + $0x240] ss:$40 sps:$4 sm:$0xff]  }
 0x136   :  { %v236_v12 = vmul.f32 %v234_v10, %v234_v10  ;;  %982 = vmatprep.subr.bf16.mxu1 %v9192_v2  ;;  %v9913_v1 = vld [vmem:[#allocation17] ss:$8 sps:$4 sm:$0xff]   ;;  %v446_v2 = vlaneseq }
 0x138   :  { %v240_v13 = vsel %vm223_vm0, %v236_v12, 0.0  ;;  %v9193_v12 = vld [vmem:[#allocation13 + $0x248] ss:$40 sps:$4 sm:$0xff]  }
 0x139   :  { %241 = vadd.xlane.f32.xlu1 %v240_v13 }
 0x1be   :  { %v239_v33 = vpop.xlane.xlu1 %238 }
 0x1bf   :  { %v243_v34 = vmul.f32 0.03125, %v239_v33  ;;  %v9223_v33 = vld [vmem:[#allocation13 + $0xb8] ss:$40 sps:$4 sm:$0xff]  }
 0x1c1   :  { %v245_v35 = vadd.f32 1e-06, %v243_v34  ;;  %v9228_v34 = vld [vmem:[#allocation13 + $0x64] ss:$40 sps:$4 sm:$0xff]  }
 0x1c2   :  { %v242_v36 = vpop.xlane.xlu1 %241 }
 0x1c3   :  { %9337 = vrsqrt.f32 %v245_v35  ;;  %v244_v37 = vmul.f32 0.03125, %v242_v36  ;;  %v9231_v35 = vld [vmem:[#allocation13 + $0x6c] ss:$40 sps:$4 sm:$0xff]   ;;  %v9226_v36 = vld [vmem:[#allocation13 + $0x60] ss:$40 sps:$4 sm:$0xff]  }
 0x1c5   :  { %v246_v38 = vadd.f32 1e-06, %v244_v37  ;;  %v9229_v37 = vld [vmem:[#allocation13 + $0x68] ss:$40 sps:$4 sm:$0xff]  }
 0x1c7   :  { %9339 = vrsqrt.f32 %v246_v38  ;;  %v9234_v38 = vld [vmem:[#allocation13 + $0x14] ss:$40 sps:$4 sm:$0xff]  }
 0x1d0   :  { %v9338_v39 = vpop.eup %9337 }
 0x1d1   :  { %v249_v41 = vmul.f32 %v9338_v39, %v233_v6  ;;  %v9237_v39 = vld [vmem:[#allocation13 + $0x1c] ss:$40 sps:$4 sm:$0xff]  }
 0x1d3   :  { %v258_v43 = vmul.f32 %v8653_v40, %v249_v41  ;;  %v9232_v41 = vld [vmem:[#allocation13 + $0x10] ss:$40 sps:$4 sm:$0xff]  }
 0x1d4   :  { %v9340_v44 = vpop.eup %9339 }
 0x1d5   :  { %v250_v45 = vmul.f32 %v9340_v44, %v234_v10  ;;  %v267_v46 = vadd.f32 %v8654_v42, %v258_v43  ;;  %v9240_v43 = vld [vmem:[#allocation13 + $0x254] ss:$40 sps:$4 sm:$0xff]  }
 0x1d7   :  { %v259_v47 = vmul.f32 %v8653_v40, %v250_v45  ;;  %9105 = vmatprep.mubr.msk.f32.mxu0 %vm223_vm0, %v267_v46  ;;  %v1123_v40 = vld [vmem:[%s11807_s10] sm:$0xff]  ;;  %s9704_s10 = smov 104  }
 0x1d8   :  { %v9881_v44 = vcombine.high %v1123_v40, %v1123_v40  ;;  %v8739_v45 = vcombine.low %v1123_v40, %v1123_v40  ;;  %v9238_v46 = vld [vmem:[#allocation13 + $0x250] ss:$40 sps:$4 sm:$0xff]   ;;  %1507 = vrot.lane.b32.xlu0 %v9868_v5, %s9704_s10 }
 0x1d9   :  { %v268_v49 = vadd.f32 %v8654_v42, %v259_v47  ;;  %v9235_v42 = vld [vmem:[#allocation13 + $0x18] ss:$40 sps:$4 sm:$0xff]   ;;  %v9243_v47 = vld [vmem:[#allocation13 + $0x204] ss:$40 sps:$4 sm:$0xff]  }
 0x1db   :  { %9106 = vmatmul.mubr.msk.f32.vlgmr.msra.gmra.mxu0 %vm223_vm0, %v268_v49  ;;  %v9241_v49 = vld [vmem:[#allocation13 + $0x200] ss:$40 sps:$4 sm:$0xff]  }
 0x1dc   :  { %940 = vmatpush1.bf16.msra.mxu0 %v9144_v48  ;;  %971 = vmatprep.mubr.bf16.mxu0 %v11820_v4  ;;  %v9886_v48 = vsel %vm1174_vm1, %v8739_v45, 0  ;;  %v10017_v45 = vld [vmem:[#allocation5 + $0x4] ss:$8 sps:$4 sm:$0xff]  }
 0x1dd   :  { %941 = vmatprep.subr.bf16.mxu0 %v9152_v50  ;;  %v9246_v50 = vld [vmem:[#allocation13 + $0x1b4] ss:$40 sps:$4 sm:$0xff]   ;;  %1611 = vrot.lane.b32.xlu0 %v9868_v5, %s9705_s2 }
 0x1e0   :  { %942 = vmatpush1.bf16.msra.mxu0 %v9150_v51  ;;  %v9244_v51 = vld [vmem:[#allocation13 + $0x1b0] ss:$40 sps:$4 sm:$0xff]  }
 0x1e1   :  { %943 = vmatprep.subr.bf16.mxu0 %v9158_v52  ;;  %v9249_v52 = vld [vmem:[#allocation13 + $0x164] ss:$40 sps:$4 sm:$0xff]  }
 0x1e4   :  { %944 = vmatpush1.bf16.msra.mxu0 %v9156_v53  ;;  %v9247_v53 = vld [vmem:[#allocation13 + $0x160] ss:$40 sps:$4 sm:$0xff]  }
 0x1e5   :  { %945 = vmatprep.subr.bf16.mxu0 %v9164_v54  ;;  %v9252_v54 = vld [vmem:[#allocation13 + $0x114] ss:$40 sps:$4 sm:$0xff]  }
 0x1e8   :  { %946 = vmatpush1.bf16.msra.mxu0 %v9162_v55  ;;  %v9250_v55 = vld [vmem:[#allocation13 + $0x110] ss:$40 sps:$4 sm:$0xff]  }
 0x1e9   :  { %947 = vmatprep.subr.bf16.mxu0 %v9170_v56  ;;  %v9255_v56 = vld [vmem:[#allocation13 + $0xc4] ss:$40 sps:$4 sm:$0xff]  }
 0x1ec   :  { %948 = vmatpush1.bf16.msra.mxu0 %v9168_v57  ;;  %v9253_v57 = vld [vmem:[#allocation13 + $0xc0] ss:$40 sps:$4 sm:$0xff]  }
 0x1ed   :  { %949 = vmatprep.subr.bf16.mxu0 %v9176_v58  ;;  %v9258_v58 = vld [vmem:[#allocation13 + $0x74] ss:$40 sps:$4 sm:$0xff]  }
 0x1f0   :  { %950 = vmatpush1.bf16.msra.mxu0 %v9174_v59  ;;  %v9256_v59 = vld [vmem:[#allocation13 + $0x70] ss:$40 sps:$4 sm:$0xff]  }
 0x1f1   :  { %951 = vmatprep.subr.bf16.mxu0 %v9182_v60  ;;  %v9261_v60 = vld [vmem:[#allocation13 + $0x24] ss:$40 sps:$4 sm:$0xff]  }
 0x1f4   :  { %952 = vmatpush1.bf16.msra.mxu0 %v9180_v61  ;;  %v9259_v61 = vld [vmem:[#allocation13 + $0x20] ss:$40 sps:$4 sm:$0xff]  }
 0x1f5   :  { %953 = vmatprep.subr.bf16.mxu0 %v9188_v63  ;;  %v9898_v63 = vld [vmem:[#allocation17 + $0x10] ss:$8 sps:$4 sm:$0xff]  }
 0x1f8   :  { %954 = vmatpush1.bf16.msra.mxu0 %v9186_v0  ;;  %v9909_v0 = vld [vmem:[#allocation17 + $0x4] ss:$8 sps:$4 sm:$0xff]  }
 0x1f9   :  { %1025 = vmatprep.subr.bf16.mxu0 %v9195_v3  ;;  %v9921_v3 = vshrl.u32 %v446_v2, 7  ;;  %v443_v2 = vld [vmem:[%s11804_s7 + $0x8] sm:$0x3] }
 0x1fb   :  { %11886 = vst [vmem:[#allocation32_spill] sm:$0xff] %v9921_v3 }
 0x29b   :  { %v9107_v6 = vpop.f32.mrf.mxu0 }
 0x29c   :  { %v358_v9 = vadd.f32 %v9107_v6, %v8655_v7  ;;  %v9924_v6 = vsub.s32 0, %v9921_v3 }
 0x29d   :  { %v352_v8 = vpop.f32.mrf.mxu0 }
 0x29e   :  { %v353_v10 = vadd.f32 %v8655_v7, %v352_v8  ;;  %11887 = vst [vmem:[#allocation33_spill] sm:$0xff] %v9924_v6  ;;  %v9929_v7 = vld [vmem:[%s11804_s7] sm:$0xff]  ;;  %v9932_v8 = vsub.s32 1, %v9921_v3 }
 0x2a0   :  { %v9872_v13 = vpack.c.bf16 %v358_v9, %v353_v10  ;;  %11888 = vst [vmem:[#allocation34_spill] sm:$0xff] %v9932_v8  ;;  %v449_v10 = vrot.slane %v9929_v7, %v9924_v6 }
 0x2a2   :  { %929 = vmatmul.mubr.bf16.vlgmr.msra.gmra.mxu1 %v9872_v13  ;;  %972 = vmatmul.mubr.bf16.vlgmr.msra.gmra.mxu0 %v9872_v13 }
 0x2a3   :  { %983 = vmatpush1.bf16.msra.mxu1 %v9190_v11  ;;  %1026 = vmatpush1.bf16.msra.mxu0 %v9193_v12  ;;  %v453_v12 = vrot.slane %v9929_v7, %v9932_v8 }
 0x2a4   :  { %984 = vmatprep.subr.bf16.mxu1 %v9198_v14  ;;  %1027 = vmatprep.subr.bf16.mxu0 %v9201_v15 }
 0x2a5   :  { %1014 = vmatprep.mubr.bf16.mxu1 %v11820_v4  ;;  %1057 = vmatprep.mubr.bf16.mxu0 %v11820_v4 }
 0x2a7   :  { %985 = vmatpush1.bf16.msra.mxu1 %v9196_v16  ;;  %1028 = vmatpush1.bf16.msra.mxu0 %v9199_v17 }
 0x2a8   :  { %986 = vmatprep.subr.bf16.mxu1 %v9204_v18  ;;  %1029 = vmatprep.subr.bf16.mxu0 %v9207_v19 }
 0x2ab   :  { %987 = vmatpush1.bf16.msra.mxu1 %v9202_v20  ;;  %1030 = vmatpush1.bf16.msra.mxu0 %v9205_v21  ;;  %v1299_v21 = vpop.permute.xlu0 %1298 }
 0x2ac   :  { %988 = vmatprep.subr.bf16.mxu1 %v9210_v22  ;;  %1031 = vmatprep.subr.bf16.mxu0 %v9213_v23 }
 0x2af   :  { %989 = vmatpush1.bf16.msra.mxu1 %v9208_v24  ;;  %1032 = vmatpush1.bf16.msra.mxu0 %v9211_v25  ;;  %v11818_v25 = vsub.s32 3, %v9921_v3 }
 0x2b0   :  { %990 = vmatprep.subr.bf16.mxu1 %v9216_v26  ;;  %1033 = vmatprep.subr.bf16.mxu0 %v9219_v27  ;;  %v11819_v26 = vsub.s32 2, %v9921_v3 }
 0x2b3   :  { %991 = vmatpush1.bf16.msra.mxu1 %v9214_v28  ;;  %1034 = vmatpush1.bf16.msra.mxu0 %v9217_v29  ;;  %v461_v28 = vrot.slane %v9929_v7, %v11818_v25  ;;  %v457_v29 = vrot.slane %v9929_v7, %v11819_v26 }
 0x2b4   :  { %992 = vmatprep.subr.bf16.mxu1 %v9222_v30  ;;  %1035 = vmatprep.subr.bf16.mxu0 %v9225_v31 }
 0x2b7   :  { %993 = vmatpush1.bf16.msra.mxu1 %v9220_v32  ;;  %1036 = vmatpush1.bf16.msra.mxu0 %v9223_v33 }
 0x2b8   :  { %994 = vmatprep.subr.bf16.mxu1 %v9228_v34  ;;  %1037 = vmatprep.subr.bf16.mxu0 %v9231_v35 }
 0x2bb   :  { %995 = vmatpush1.bf16.msra.mxu1 %v9226_v36  ;;  %1038 = vmatpush1.bf16.msra.mxu0 %v9229_v37 }
 0x2bc   :  { %996 = vmatprep.subr.bf16.mxu1 %v9234_v38  ;;  %1039 = vmatprep.subr.bf16.mxu0 %v9237_v39  ;;  %v11817_v38 = vsub.s32 4, %v9921_v3 }
 0x2be   :  { %v465_v40 = vrot.slane %v9929_v7, %v11817_v38 }
 0x2bf   :  { %997 = vmatpush1.bf16.msra.mxu1 %v9232_v41  ;;  %1040 = vmatpush1.bf16.msra.mxu0 %v9235_v42 }
 0x2c0   :  { %1068 = vmatprep.subr.bf16.mxu1 %v9240_v43  ;;  %8741 = vmatprep.subr.msk.bf16.mxu0 %vm1174_vm1, %v9881_v44 }
 0x2c2   :  { %1015 = vmatmul.mubr.bf16.vlgmr.msra.gmra.mxu1 %v9872_v13  ;;  %1058 = vmatmul.mubr.bf16.vlgmr.msra.gmra.mxu0 %v9872_v13 }
 0x2c3   :  { %1069 = vmatpush1.bf16.msra.mxu1 %v9238_v46  ;;  %1100 = vmatprep.mubr.bf16.mxu1 %v11820_v4 }
 0x2c4   :  { %1070 = vmatprep.subr.bf16.mxu1 %v9243_v47  ;;  %1196 = vmatpush1.bf16.msra.mxu0 %v9886_v48 }
 0x2c5   :  { %1213 = vmatprep.mubr.bf16.mxu0 %v11820_v4  ;;  %1259 = vmatprep.subr.bf16.mxu0 %v9896_v62 }
 0x2c7   :  { %1071 = vmatpush1.bf16.msra.mxu1 %v9241_v49  ;;  %v11816_v49 = vsub.s32 6, %v9921_v3 }
 0x2c8   :  { %1072 = vmatprep.subr.bf16.mxu1 %v9246_v50  ;;  %v11815_v50 = vsub.s32 5, %v9921_v3 }
 0x2ca   :  { %8742 = vmatmul.mubr.msk.bf16.vlgmr.msra.gmra.mxu0 %vm1170_vm2, %v9868_v5 }
 0x2cb   :  { %1073 = vmatpush1.bf16.msra.mxu1 %v9244_v51  ;;  %1260 = vmatpush1.bf16.msra.mxu0 %v9898_v63 }
 0x2cc   :  { %1074 = vmatprep.subr.bf16.mxu1 %v9249_v52  ;;  %1279 = vmatprep.mubr.bf16.mxu0 %v11820_v4 }
 0x2cd   :  { %1261 = vmatprep.subr.bf16.mxu0 %v9909_v0 }
 0x2cf   :  { %1075 = vmatpush1.bf16.msra.mxu1 %v9247_v53  ;;  %1262 = vmatpush1.bf16.msra.mxu0 %v9913_v1  ;;  %v469_v53 = vrot.slane %v9929_v7, %v11815_v50 }
 0x2d0   :  { %1076 = vmatprep.subr.bf16.mxu1 %v9252_v54  ;;  %8748 = vmatprep.subr.msk.bf16.mxu0 %vm1174_vm1, %v9881_v44 }
 0x2d3   :  { %1077 = vmatpush1.bf16.msra.mxu1 %v9250_v55 }
 0x2d4   :  { %1078 = vmatprep.subr.bf16.mxu1 %v9255_v56 }
 0x2d7   :  { %1079 = vmatpush1.bf16.msra.mxu1 %v9253_v57 }
 0x2d8   :  { %1080 = vmatprep.subr.bf16.mxu1 %v9258_v58 }
 0x2db   :  { %1081 = vmatpush1.bf16.msra.mxu1 %v9256_v59 }
 0x2dc   :  { %1082 = vmatprep.subr.bf16.mxu1 %v9261_v60 }
 0x2df   :  { %1083 = vmatpush1.bf16.msra.mxu1 %v9259_v61 }
 0x2e0   :  { %8751 = vmatprep.subr.msk.bf16.mxu1 %vm1174_vm1, %v9881_v44 }
 0x2e2   :  { %1101 = vmatmul.mubr.bf16.vlgmr.msra.gmra.mxu1 %v9872_v13 }
 0x2e3   :  { %1423 = vmatpush1.bf16.msra.mxu1 %v9886_v48  ;;  %1440 = vmatprep.mubr.bf16.mxu1 %v11820_v4 }
 0x2e4   :  { %8754 = vmatprep.subr.msk.bf16.mxu1 %vm1174_vm1, %v9881_v44 }
 0x362   :  { %v930_v9 = vpop.f32.mrf.mxu1  ;;  %v973_v22 = vpop.f32.mrf.mxu0 }
 0x363   :  { %v931_v14 = vadd.f32 %v930_v9, %v449_v10  ;;  %v974_v34 = vadd.f32 %v973_v22, %v457_v29  ;;  %v485_v22 = vrot.slane %v443_v2, %v9932_v8 }
 0x364   :  { %v932_v11 = vpop.f32.mrf.mxu1  ;;  %v975_v23 = vpop.f32.mrf.mxu0 }
 0x365   :  { %v933_v17 = vadd.f32 %v932_v11, %v453_v12  ;;  %v976_v32 = vadd.f32 %v975_v23, %v461_v28  ;;  %v11814_v11 = vsub.s32 7, %v9921_v3 }
 0x366   :  { %v934_v13 = vpop.f32.mrf.mxu1  ;;  %v977_v24 = vpop.f32.mrf.mxu0 }
 0x367   :  { %v935_v15 = vadd.f32 %v934_v13, %v449_v10  ;;  %v978_v33 = vadd.f32 %v977_v24, %v457_v29  ;;  %v481_v10 = vrot.slane %v443_v2, %v9924_v6 }
 0x368   :  { %v936_v16 = vpop.f32.mrf.mxu1  ;;  %v979_v27 = vpop.f32.mrf.mxu0 }
 0x369   :  { %v1111_v18 = vpack.c.bf16 %v935_v15, %v931_v14  ;;  %v937_v19 = vadd.f32 %v936_v16, %v453_v12  ;;  %v980_v30 = vadd.f32 %v979_v27, %v461_v28  ;;  %v9987_v37 = vpack.c.bf16 %v978_v33, %v974_v34 }
 0x36a   :  { %v477_v15 = vrot.slane %v9929_v7, %v11814_v11 }
 0x36b   :  { %v9938_v20 = vpack.c.bf16 %v937_v19, %v933_v17  ;;  %1347 = vrot.lane.b32.xlu1 %v1111_v18, %s9705_s2  ;;  %8747 = vmatmul.mubr.msk.bf16.vlgmr.msra.gmra.mxu0 %vm223_vm0, %v1111_v18  ;;  %v9983_v35 = vpack.c.bf16 %v980_v30, %v976_v32  ;;  %v1508_v30 = vpop.permute.xlu0 %1507 }
 0x36c   :  { %1318 = vmatpush1.bf16.msra.mxu0 %v9886_v48  ;;  %1335 = vmatprep.mubr.bf16.mxu0 %v11820_v4 }
 0x36d   :  { %1762 = vrot.lane.b32.xlu0 %v9938_v20, %s9705_s2  ;;  %1364 = vmatprep.subr.bf16.mxu0 %v9896_v62 }
 0x36f   :  { %1403 = vrot.lane.b32.xlu1 %v9868_v5, %s9706_s30  ;;  %v1612_v32 = vpop.permute.xlu0 %1611 }
 0x371   :  { %1866 = vrot.lane.b32.xlu0 %v9938_v20, %s9700_s9 }
 0x373   :  { %1451 = vrot.lane.b32.xlu1 %v1111_v18, %s9700_s9  ;;  %8749 = vmatmul.mubr.msk.bf16.vlgmr.msra.gmra.mxu0 %vm1170_vm2, %v1299_v21 }
 0x374   :  { %1365 = vmatpush1.bf16.msra.mxu0 %v9898_v63  ;;  %1384 = vmatprep.mubr.bf16.mxu0 %v11820_v4 }
 0x375   :  { %1970 = vrot.lane.b32.xlu0 %v9938_v20, %s9691_s1  ;;  %1366 = vmatprep.subr.bf16.mxu0 %v9909_v0 }
 0x377   :  { %1555 = vrot.lane.b32.xlu1 %v1111_v18, %s9691_s1 }
 0x378   :  { %1367 = vmatpush1.bf16.msra.mxu0 %v9913_v1 }
 0x379   :  { %2128 = vrot.lane.b32.xlu0 %v9868_v5, %s9707_s0  ;;  %1468 = vmatprep.subr.bf16.mxu0 %v9896_v62 }
 0x37b   :  { %1713 = vrot.lane.b32.xlu1 %v9868_v5, %s9708_s4 }
 0x37d   :  { %2233 = vrot.lane.b32.xlu0 %v9868_v5, %s9709_s17 }
 0x37f   :  { %1818 = vrot.lane.b32.xlu1 %v9868_v5, %s9710_s13 }
 0x381   :  { %2337 = vrot.lane.b32.xlu0 %v9868_v5, %s9696_s29 }
 0x382   :  { %v1016_v31 = vpop.f32.mrf.mxu1  ;;  %v1059_v46 = vpop.f32.mrf.mxu0 }
 0x383   :  { %1922 = vrot.lane.b32.xlu1 %v9868_v5, %s9711_s5  ;;  %v1017_v42 = vadd.f32 %v1016_v31, %v465_v40 }
 0x384   :  { %v1018_v36 = vpop.f32.mrf.mxu1  ;;  %v1061_v47 = vpop.f32.mrf.mxu0 }
 0x385   :  { %2441 = vrot.lane.b32.xlu0 %v9868_v5, %s9691_s1  ;;  %v1019_v57 = vadd.f32 %v1018_v36, %v469_v53  ;;  %v1062_v18 = vadd.f32 %v1061_v47, %v477_v15 }
 0x386   :  { %v1020_v39 = vpop.f32.mrf.mxu1  ;;  %v1063_v51 = vpop.f32.mrf.mxu0 }
 0x387   :  { %2026 = vrot.lane.b32.xlu1 %v9868_v5, %s9700_s9  ;;  %v1021_v41 = vadd.f32 %v1020_v39, %v465_v40 }
 0x388   :  { %v1022_v52 = vpop.f32.mrf.mxu1  ;;  %v1065_v14 = vpop.f32.mrf.mxu0 }
 0x389   :  { %2592 = vrot.lane.b32.xlu0 %v9983_v35, %s9705_s2  ;;  %v10003_v43 = vpack.c.bf16 %v1021_v41, %v1017_v42  ;;  %v1023_v56 = vadd.f32 %v1022_v52, %v469_v53  ;;  %v1066_v17 = vadd.f32 %v1065_v14, %v477_v15 }
 0x38b   :  { %2177 = vrot.lane.b32.xlu1 %v9987_v37, %s9705_s2  ;;  %v10047_v59 = vpack.c.bf16 %v1023_v56, %v1019_v57  ;;  %v10087_v21 = vpack.c.bf16 %v1066_v17, %v1062_v18 }
 0x38d   :  { %2696 = vrot.lane.b32.xlu0 %v9983_v35, %s9700_s9 }
 0x38f   :  { %2281 = vrot.lane.b32.xlu1 %v9987_v37, %s9700_s9 }
 0x391   :  { %2800 = vrot.lane.b32.xlu0 %v9983_v35, %s9691_s1 }
 0x393   :  { %2385 = vrot.lane.b32.xlu1 %v9987_v37, %s9691_s1 }
 0x395   :  { %3008 = vrot.lane.b32.xlu0 %v10003_v43, %s9705_s2 }
 0x397   :  { %2543 = vrot.lane.b32.xlu1 %v9868_v5, %s9712_s18 }
 0x399   :  { %3112 = vrot.lane.b32.xlu0 %v10003_v43, %s9700_s9 }
 0x39b   :  { %2648 = vrot.lane.b32.xlu1 %v9868_v5, %s9713_s19 }
 0x39d   :  { %3216 = vrot.lane.b32.xlu0 %v10003_v43, %s9691_s1 }
 0x39f   :  { %2752 = vrot.lane.b32.xlu1 %v9868_v5, %s9684_s27  ;;  %v473_v5 = vrot.slane %v9929_v7, %v11816_v49 }
 0x3a1   :  { %3374 = vrot.lane.b32.xlu0 %v10017_v45, %s9708_s4  ;;  %v1064_v54 = vadd.f32 %v1063_v51, %v473_v5  ;;  %v1060_v55 = vadd.f32 %v1059_v46, %v473_v5 }
 0x3a2   :  { %v1102_v60 = vpop.f32.mrf.mxu1 }
 0x3a3   :  { %2959 = vrot.lane.b32.xlu1 %v10017_v45, %s9703_s12  ;;  %v10043_v58 = vpack.c.bf16 %v1064_v54, %v1060_v55  ;;  %v1103_v13 = vadd.f32 %v1102_v60, %v481_v10 }
 0x3a4   :  { %v1104_v61 = vpop.f32.mrf.mxu1 }
 0x3a5   :  { %3479 = vrot.lane.b32.xlu0 %v10017_v45, %s9710_s13  ;;  %v1105_v23 = vadd.f32 %v1104_v61, %v485_v22 }
 0x3a6   :  { %v1106_v9 = vpop.f32.mrf.mxu1 }
 0x3a7   :  { %3064 = vrot.lane.b32.xlu1 %v10017_v45, %s9706_s30  ;;  %v1107_v12 = vadd.f32 %v1106_v9, %v481_v10 }
 0x3a8   :  { %v1108_v19 = vpop.f32.mrf.mxu1 }
 0x3a9   :  { %3583 = vrot.lane.b32.xlu0 %v10017_v45, %s9711_s5  ;;  %v10079_v16 = vpack.c.bf16 %v1107_v12, %v1103_v13  ;;  %v1109_v7 = vadd.f32 %v1108_v19, %v485_v22  ;;  %v10315_v12 = vpop.f32.mrf.mxu0 }
 0x3ab   :  { %3168 = vrot.lane.b32.xlu1 %v10017_v45, %s9704_s10  ;;  %v10096_v24 = vpack.c.bf16 %v1109_v7, %v1105_v23  ;;  %v10324_v13 = vpop.f32.mrf.mxu0 }
 0x3ad   :  { %3687 = vrot.lane.b32.xlu0 %v10017_v45, %s9700_s9  ;;  %11889 = vst [vmem:[#allocation35_spill] sm:$0xff] %v10096_v24  ;;  %v10331_v15 = vpop.f32.mrf.mxu0 }
 0x3af   :  { %3272 = vrot.lane.b32.xlu1 %v10017_v45, %s9705_s2  ;;  %v10340_v17 = vpop.f32.mrf.mxu0 }
 0x3b1   :  { %3838 = vrot.lane.b32.xlu0 %v10043_v58, %s9705_s2 }
 0x3b3   :  { %3423 = vrot.lane.b32.xlu1 %v10047_v59, %s9705_s2 }
 0x3b5   :  { %3942 = vrot.lane.b32.xlu0 %v10043_v58, %s9700_s9 }
 0x3b7   :  { %3527 = vrot.lane.b32.xlu1 %v10047_v59, %s9700_s9 }
 0x3b9   :  { %4046 = vrot.lane.b32.xlu0 %v10043_v58, %s9691_s1 }
 0x3bb   :  { %3631 = vrot.lane.b32.xlu1 %v10047_v59, %s9691_s1 }
 0x3bd   :  { %4204 = vrot.lane.b32.xlu0 %v10017_v45, %s9712_s18 }
 0x3bf   :  { %3789 = vrot.lane.b32.xlu1 %v10017_v45, %s9707_s0 }
 0x3c1   :  { %4309 = vrot.lane.b32.xlu0 %v10017_v45, %s9713_s19 }
 0x3c3   :  { %3894 = vrot.lane.b32.xlu1 %v10017_v45, %s9709_s17 }
 0x3c5   :  { %4413 = vrot.lane.b32.xlu0 %v10017_v45, %s9684_s27 }
 0x3c7   :  { %3998 = vrot.lane.b32.xlu1 %v10017_v45, %s9696_s29 }
 0x3c9   :  { %5098 = vrot.lane.b32.xlu0 %v10079_v16, %s9705_s2 }
 0x3cb   :  { %4102 = vrot.lane.b32.xlu1 %v10017_v45, %s9691_s1 }
 0x3cd   :  { %5485 = vrot.lane.b32.xlu0 %v10079_v16, %s9700_s9 }
 0x3cf   :  { %4253 = vrot.lane.b32.xlu1 %v10087_v21, %s9705_s2 }
 0x3d1   :  { %5871 = vrot.lane.b32.xlu0 %v10079_v16, %s9691_s1 }
 0x3d3   :  { %4357 = vrot.lane.b32.xlu1 %v10087_v21, %s9700_s9 }
 0x3d5   :  { %6640 = vrot.lane.b32.xlu0 %v10096_v24, %s9705_s2 }
 0x3d7   :  { %4461 = vrot.lane.b32.xlu1 %v10087_v21, %s9691_s1 }
 0x3d9   :  { %7027 = vrot.lane.b32.xlu0 %v10096_v24, %s9700_s9 }
 0x3dd   :  { %7413 = vrot.lane.b32.xlu0 %v10096_v24, %s9691_s1  ;;  %v1348_v27 = vpop.permute.xlu1 %1347 }
 0x3de   :  { %8750 = vmatmul.mubr.msk.bf16.vlgmr.msra.gmra.mxu0 %vm223_vm0, %v1348_v27 }
 0x3df   :  { %1469 = vmatpush1.bf16.msra.mxu0 %v9898_v63  ;;  %1488 = vmatprep.mubr.bf16.mxu0 %v11820_v4  ;;  %v1763_v34 = vpop.permute.xlu0 %1762 }
 0x3e0   :  { %1470 = vmatprep.subr.bf16.mxu0 %v9909_v0 }
 0x3e1   :  { %v1404_v28 = vpop.permute.xlu1 %1403 }
 0x3e2   :  { %8752 = vmatmul.mubr.msk.bf16.vlgmr.msra.gmra.mxu1 %vm1170_vm2, %v1404_v28 }
 0x3e3   :  { %1471 = vmatpush1.bf16.msra.mxu0 %v9913_v1  ;;  %1527 = vmatpush1.bf16.msra.mxu1 %v9886_v48  ;;  %v1867_v36 = vpop.permute.xlu0 %1866 }
 0x3e4   :  { %1572 = vmatprep.subr.bf16.mxu0 %v9896_v62  ;;  %1544 = vmatprep.mubr.bf16.mxu1 %v11820_v4 }
 0x3e5   :  { %v1452_v29 = vpop.permute.xlu1 %1451  ;;  %8757 = vmatprep.subr.msk.bf16.mxu1 %vm1174_vm1, %v9881_v44 }
 0x3e6   :  { %8753 = vmatmul.mubr.msk.bf16.vlgmr.msra.gmra.mxu0 %vm223_vm0, %v1452_v29 }
 0x3e7   :  { %1573 = vmatpush1.bf16.msra.mxu0 %v9898_v63  ;;  %1592 = vmatprep.mubr.bf16.mxu0 %v11820_v4  ;;  %v1971_v40 = vpop.permute.xlu0 %1970 }
 0x3e8   :  { %1574 = vmatprep.subr.bf16.mxu0 %v9909_v0 }
 0x3e9   :  { %v1556_v31 = vpop.permute.xlu1 %1555 }
 0x3ea   :  { %8755 = vmatmul.mubr.msk.bf16.vlgmr.msra.gmra.mxu1 %vm1170_vm2, %v1508_v30 }
 0x3eb   :  { %1575 = vmatpush1.bf16.msra.mxu0 %v9913_v1  ;;  %1631 = vmatpush1.bf16.msra.mxu1 %v9886_v48  ;;  %v2129_v42 = vpop.permute.xlu0 %2128 }
 0x3ec   :  { %1674 = vmatprep.subr.bf16.mxu0 %v9896_v62  ;;  %1648 = vmatprep.mubr.bf16.mxu1 %v11820_v4 }
 0x3ed   :  { %8760 = vmatprep.subr.msk.bf16.mxu1 %vm1174_vm1, %v9881_v44  ;;  %v1714_v33 = vpop.permute.xlu1 %1713 }
 0x3ee   :  { %8756 = vmatmul.mubr.msk.bf16.vlgmr.msra.gmra.mxu0 %vm223_vm0, %v1556_v31 }
 0x3ef   :  { %1675 = vmatpush1.bf16.msra.mxu0 %v9898_v63  ;;  %1694 = vmatprep.mubr.bf16.mxu0 %v11820_v4 }
 0x3f0   :  { %1676 = vmatprep.subr.bf16.mxu0 %v9909_v0 }
 0x3f2   :  { %8758 = vmatmul.mubr.msk.bf16.vlgmr.msra.gmra.mxu1 %vm1170_vm2, %v1612_v32 }
 0x3f3   :  { %1677 = vmatpush1.bf16.msra.mxu0 %v9913_v1  ;;  %1733 = vmatpush1.bf16.msra.mxu1 %v9886_v48 }
 0x3f4   :  { %1779 = vmatprep.subr.bf16.mxu0 %v9896_v62  ;;  %1750 = vmatprep.mubr.bf16.mxu1 %v11820_v4 }
 0x3f5   :  { %8763 = vmatprep.subr.msk.bf16.mxu1 %vm1174_vm1, %v9881_v44 }
 0x3f6   :  { %8759 = vmatmul.mubr.msk.bf16.vlgmr.msra.gmra.mxu0 %vm223_vm0, %v9938_v20  ;;  %v1819_v20 = vpop.permute.xlu1 %1818 }
 0x3f7   :  { %1780 = vmatpush1.bf16.msra.mxu0 %v9898_v63  ;;  %1799 = vmatprep.mubr.bf16.mxu0 %v11820_v4 }
 0x3f8   :  { %1781 = vmatprep.subr.bf16.mxu0 %v9909_v0 }
 0x3fa   :  { %8761 = vmatmul.mubr.msk.bf16.vlgmr.msra.gmra.mxu1 %vm1170_vm2, %v1714_v33  ;;  %v1923_v39 = vpop.permute.xlu1 %1922 }
 0x3fb   :  { %1782 = vmatpush1.bf16.msra.mxu0 %v9913_v1  ;;  %1838 = vmatpush1.bf16.msra.mxu1 %v9886_v48 }
 0x3fc   :  { %1883 = vmatprep.subr.bf16.mxu0 %v9896_v62  ;;  %1855 = vmatprep.mubr.bf16.mxu1 %v11820_v4 }
 0x3fd   :  { %8766 = vmatprep.subr.msk.bf16.mxu1 %vm1174_vm1, %v9881_v44 }
 0x3fe   :  { %8762 = vmatmul.mubr.msk.bf16.vlgmr.msra.gmra.mxu0 %vm223_vm0, %v1763_v34  ;;  %v2027_v41 = vpop.permute.xlu1 %2026 }
 0x3ff   :  { %1884 = vmatpush1.bf16.msra.mxu0 %v9898_v63  ;;  %1903 = vmatprep.mubr.bf16.mxu0 %v11820_v4 }
 0x400   :  { %1885 = vmatprep.subr.bf16.mxu0 %v9909_v0 }
 0x402   :  { %8764 = vmatmul.mubr.msk.bf16.vlgmr.msra.gmra.mxu1 %vm1170_vm2, %v1819_v20  ;;  %v2178_v46 = vpop.permute.xlu1 %2177 }
 0x403   :  { %1886 = vmatpush1.bf16.msra.mxu0 %v9913_v1  ;;  %1942 = vmatpush1.bf16.msra.mxu1 %v9886_v48 }
 0x404   :  { %1987 = vmatprep.subr.bf16.mxu0 %v9896_v62  ;;  %1959 = vmatprep.mubr.bf16.mxu1 %v11820_v4 }
 0x405   :  { %8769 = vmatprep.subr.msk.bf16.mxu1 %vm1174_vm1, %v9881_v44 }
 0x406   :  { %8765 = vmatmul.mubr.msk.bf16.vlgmr.msra.gmra.mxu0 %vm223_vm0, %v1867_v36  ;;  %v2282_v47 = vpop.permute.xlu1 %2281 }
 0x407   :  { %1988 = vmatpush1.bf16.msra.mxu0 %v9898_v63  ;;  %2007 = vmatprep.mubr.bf16.mxu0 %v11820_v4 }
 0x408   :  { %1989 = vmatprep.subr.bf16.mxu0 %v9909_v0 }
 0x40a   :  { %8767 = vmatmul.mubr.msk.bf16.vlgmr.msra.gmra.mxu1 %vm1170_vm2, %v1923_v39  ;;  %v2386_v5 = vpop.permute.xlu1 %2385 }
 0x40b   :  { %1990 = vmatpush1.bf16.msra.mxu0 %v9913_v1  ;;  %2046 = vmatpush1.bf16.msra.mxu1 %v9886_v48 }
 0x40c   :  { %2089 = vmatprep.subr.bf16.mxu0 %v9896_v62  ;;  %2063 = vmatprep.mubr.bf16.mxu1 %v11820_v4 }
 0x40d   :  { %8772 = vmatprep.subr.msk.bf16.mxu1 %vm1174_vm1, %v9881_v44 }
 0x40e   :  { %8768 = vmatmul.mubr.msk.bf16.vlgmr.msra.gmra.mxu0 %vm223_vm0, %v1971_v40  ;;  %v2544_v53 = vpop.permute.xlu1 %2543 }
 0x40f   :  { %2090 = vmatpush1.bf16.msra.mxu0 %v9898_v63  ;;  %2109 = vmatprep.mubr.bf16.mxu0 %v11820_v4 }
 0x410   :  { %2091 = vmatprep.subr.bf16.mxu0 %v9909_v0 }
 0x412   :  { %8770 = vmatmul.mubr.msk.bf16.vlgmr.msra.gmra.mxu1 %vm1170_vm2, %v2027_v41 }
 0x413   :  { %2092 = vmatpush1.bf16.msra.mxu0 %v9913_v1  ;;  %2148 = vmatpush1.bf16.msra.mxu1 %v9886_v48 }
 0x414   :  { %2194 = vmatprep.subr.bf16.mxu0 %v9896_v62  ;;  %2165 = vmatprep.mubr.bf16.mxu1 %v11820_v4 }
 0x415   :  { %8775 = vmatprep.subr.msk.bf16.mxu1 %vm1174_vm1, %v9881_v44 }
 0x416   :  { %8771 = vmatmul.mubr.msk.bf16.vlgmr.msra.gmra.mxu0 %vm223_vm0, %v9987_v37  ;;  %v2234_v37 = vpop.permute.xlu0 %2233 }
 0x417   :  { %2195 = vmatpush1.bf16.msra.mxu0 %v9898_v63  ;;  %2214 = vmatprep.mubr.bf16.mxu0 %v11820_v4 }
 0x418   :  { %2196 = vmatprep.subr.bf16.mxu0 %v9909_v0 }
 0x41a   :  { %8773 = vmatmul.mubr.msk.bf16.vlgmr.msra.gmra.mxu1 %vm1170_vm2, %v2129_v42  ;;  %v2338_v51 = vpop.permute.xlu0 %2337 }
 0x41b   :  { %2197 = vmatpush1.bf16.msra.mxu0 %v9913_v1  ;;  %2253 = vmatpush1.bf16.msra.mxu1 %v9886_v48 }
 0x41c   :  { %2298 = vmatprep.subr.bf16.mxu0 %v9896_v62  ;;  %2270 = vmatprep.mubr.bf16.mxu1 %v11820_v4 }
 0x41d   :  { %8778 = vmatprep.subr.msk.bf16.mxu1 %vm1174_vm1, %v9881_v44 }
 0x41e   :  { %8774 = vmatmul.mubr.msk.bf16.vlgmr.msra.gmra.mxu0 %vm223_vm0, %v2178_v46  ;;  %v2442_v52 = vpop.permute.xlu0 %2441 }
 0x41f   :  { %2299 = vmatpush1.bf16.msra.mxu0 %v9898_v63  ;;  %2318 = vmatprep.mubr.bf16.mxu0 %v11820_v4 }
 0x420   :  { %2300 = vmatprep.subr.bf16.mxu0 %v9909_v0 }
 0x422   :  { %8776 = vmatmul.mubr.msk.bf16.vlgmr.msra.gmra.mxu1 %vm1170_vm2, %v2234_v37  ;;  %v2593_v54 = vpop.permute.xlu0 %2592 }
 0x423   :  { %2301 = vmatpush1.bf16.msra.mxu0 %v9913_v1  ;;  %2357 = vmatpush1.bf16.msra.mxu1 %v9886_v48 }
 0x424   :  { %2402 = vmatprep.subr.bf16.mxu0 %v9896_v62  ;;  %2374 = vmatprep.mubr.bf16.mxu1 %v11820_v4 }
 0x425   :  { %8781 = vmatprep.subr.msk.bf16.mxu1 %vm1174_vm1, %v9881_v44 }
 0x426   :  { %8777 = vmatmul.mubr.msk.bf16.vlgmr.msra.gmra.mxu0 %vm223_vm0, %v2282_v47  ;;  %v2697_v55 = vpop.permute.xlu0 %2696 }
 0x427   :  { %2403 = vmatpush1.bf16.msra.mxu0 %v9898_v63  ;;  %2422 = vmatprep.mubr.bf16.mxu0 %v11820_v4 }
 0x428   :  { %2404 = vmatprep.subr.bf16.mxu0 %v9909_v0 }
 0x42a   :  { %8779 = vmatmul.mubr.msk.bf16.vlgmr.msra.gmra.mxu1 %vm1170_vm2, %v2338_v51  ;;  %v2801_v57 = vpop.permute.xlu0 %2800 }
 0x42b   :  { %2405 = vmatpush1.bf16.msra.mxu0 %v9913_v1  ;;  %2461 = vmatpush1.bf16.msra.mxu1 %v9886_v48  ;;  %v1281_v19 = vpop.f32.mrf.mxu0 }
 0x42c   :  { %2504 = vmatprep.subr.bf16.mxu0 %v9896_v62  ;;  %2478 = vmatprep.mubr.bf16.mxu1 %v11820_v4  ;;  %v1290_v39 = vmul.f32 %v1281_v19, %v10315_v12 }
 0x42d   :  { %8784 = vmatprep.subr.msk.bf16.mxu1 %vm1174_vm1, %v9881_v44  ;;  %v1283_v7 = vpop.f32.mrf.mxu0 }
 0x42e   :  { %8780 = vmatmul.mubr.msk.bf16.vlgmr.msra.gmra.mxu0 %vm223_vm0, %v2386_v5  ;;  %v3009_v60 = vpop.permute.xlu0 %3008  ;;  %v1291_v42 = vmul.f32 %v1283_v7, %v10324_v13 }
 0x42f   :  { %2505 = vmatpush1.bf16.msra.mxu0 %v9898_v63  ;;  %2524 = vmatprep.mubr.bf16.mxu0 %v11820_v4  ;;  %v1285_v27 = vpop.f32.mrf.mxu0 }
 0x430   :  { %2506 = vmatprep.subr.bf16.mxu0 %v9909_v0 }
 0x431   :  { %v10364_v29 = vpop.f32.mrf.mxu0 }
 0x432   :  { %8782 = vmatmul.mubr.msk.bf16.vlgmr.msra.gmra.mxu1 %vm1170_vm2, %v2442_v52  ;;  %v3113_v61 = vpop.permute.xlu0 %3112  ;;  %v1292_v52 = vmul.f32 %v1285_v27, %v10331_v15  ;;  %v1293_v15 = vmul.f32 %v10364_v29, %v10340_v17 }
 0x433   :  { %2507 = vmatpush1.bf16.msra.mxu0 %v9913_v1  ;;  %2563 = vmatpush1.bf16.msra.mxu1 %v9886_v48  ;;  %v1337_v30 = vpop.f32.mrf.mxu0 }
 0x434   :  { %2609 = vmatprep.subr.bf16.mxu0 %v9896_v62  ;;  %2580 = vmatprep.mubr.bf16.mxu1 %v11820_v4 }
 0x435   :  { %8787 = vmatprep.subr.msk.bf16.mxu1 %vm1174_vm1, %v9881_v44  ;;  %v1339_v32 = vpop.f32.mrf.mxu0 }
 0x436   :  { %8783 = vmatmul.mubr.msk.bf16.vlgmr.msra.gmra.mxu0 %vm223_vm0, %v9983_v35  ;;  %v2649_v35 = vpop.permute.xlu1 %2648  ;;  %v3217_v9 = vpop.permute.xlu0 %3216 }
 0x437   :  { %2610 = vmatpush1.bf16.msra.mxu0 %v9898_v63  ;;  %2629 = vmatprep.mubr.bf16.mxu0 %v11820_v4  ;;  %v1341_v33 = vpop.f32.mrf.mxu0 }
 0x438   :  { %2611 = vmatprep.subr.bf16.mxu0 %v9909_v0 }
 0x439   :  { %v1343_v20 = vpop.f32.mrf.mxu0 }
 0x43a   :  { %8785 = vmatmul.mubr.msk.bf16.vlgmr.msra.gmra.mxu1 %vm1170_vm2, %v2544_v53  ;;  %v2753_v56 = vpop.permute.xlu1 %2752  ;;  %v3375_v14 = vpop.permute.xlu0 %3374 }
 0x43b   :  { %2612 = vmatpush1.bf16.msra.mxu0 %v9913_v1  ;;  %2668 = vmatpush1.bf16.msra.mxu1 %v9886_v48 }
 0x43c   :  { %2713 = vmatprep.subr.bf16.mxu0 %v9896_v62  ;;  %2685 = vmatprep.mubr.bf16.mxu1 %v11820_v4 }
 0x43d   :  { %8790 = vmatprep.subr.msk.bf16.mxu1 %vm1174_vm1, %v9881_v44 }
 0x43e   :  { %8786 = vmatmul.mubr.msk.bf16.vlgmr.msra.gmra.mxu0 %vm223_vm0, %v2593_v54  ;;  %v3480_v18 = vpop.permute.xlu0 %3479 }
 0x43f   :  { %2714 = vmatpush1.bf16.msra.mxu0 %v9898_v63  ;;  %2733 = vmatprep.mubr.bf16.mxu0 %v11820_v4 }
 0x440   :  { %2715 = vmatprep.subr.bf16.mxu0 %v9909_v0 }
 0x442   :  { %8788 = vmatmul.mubr.msk.bf16.vlgmr.msra.gmra.mxu1 %vm1170_vm2, %v2649_v35  ;;  %v3584_v23 = vpop.permute.xlu0 %3583 }
 0x443   :  { %2716 = vmatpush1.bf16.msra.mxu0 %v9913_v1  ;;  %2772 = vmatpush1.bf16.msra.mxu1 %v9886_v48 }
 0x444   :  { %2817 = vmatprep.subr.bf16.mxu0 %v9896_v62  ;;  %2789 = vmatprep.mubr.bf16.mxu1 %v11820_v4 }
 0x445   :  { %8794 = vmatprep.subr.msk.bf16.mxu1 %vm1174_vm1, %v9881_v44 }
 0x446   :  { %8789 = vmatmul.mubr.msk.bf16.vlgmr.msra.gmra.mxu0 %vm223_vm0, %v2697_v55  ;;  %v3688_v31 = vpop.permute.xlu0 %3687 }
 0x447   :  { %2818 = vmatpush1.bf16.msra.mxu0 %v9898_v63  ;;  %2837 = vmatprep.mubr.bf16.mxu0 %v11820_v4 }
 0x448   :  { %2819 = vmatprep.subr.bf16.mxu0 %v9909_v0 }
 0x44a   :  { %8791 = vmatmul.mubr.msk.bf16.vlgmr.msra.gmra.mxu1 %vm1170_vm2, %v2753_v56 }
 0x44b   :  { %2820 = vmatpush1.bf16.msra.mxu0 %v9913_v1  ;;  %2877 = vmatpush1.bf16.msra.mxu1 %v9886_v48 }
 0x44c   :  { %2920 = vmatprep.subr.bf16.mxu0 %v9896_v62  ;;  %2894 = vmatprep.mubr.bf16.mxu1 %v11820_v4 }
 0x44d   :  { %8797 = vmatprep.subr.msk.bf16.mxu1 %vm1174_vm1, %v9881_v44 }
 0x44e   :  { %8792 = vmatmul.mubr.msk.bf16.vlgmr.msra.gmra.mxu0 %vm223_vm0, %v2801_v57 }
 0x44f   :  { %2921 = vmatpush1.bf16.msra.mxu0 %v9898_v63  ;;  %2940 = vmatprep.mubr.bf16.mxu0 %v11820_v4 }
 0x450   :  { %2922 = vmatprep.subr.bf16.mxu0 %v9909_v0 }
 0x452   :  { %8795 = vmatmul.mubr.msk.bf16.vlgmr.msra.gmra.mxu1 %vm1170_vm2, %v10017_v45  ;;  %v2960_v45 = vpop.permute.xlu1 %2959 }
 0x453   :  { %2923 = vmatpush1.bf16.msra.mxu0 %v9913_v1  ;;  %2979 = vmatpush1.bf16.msra.mxu1 %v9886_v48 }
 0x454   :  { %3025 = vmatprep.subr.bf16.mxu0 %v9896_v62  ;;  %2996 = vmatprep.mubr.bf16.mxu1 %v11820_v4 }
 0x455   :  { %8800 = vmatprep.subr.msk.bf16.mxu1 %vm1174_vm1, %v9881_v44 }
 0x456   :  { %8796 = vmatmul.mubr.msk.bf16.vlgmr.msra.gmra.mxu0 %vm223_vm0, %v10003_v43  ;;  %v3065_v43 = vpop.permute.xlu1 %3064 }
 0x457   :  { %3026 = vmatpush1.bf16.msra.mxu0 %v9898_v63  ;;  %3045 = vmatprep.mubr.bf16.mxu0 %v11820_v4 }
 0x458   :  { %3027 = vmatprep.subr.bf16.mxu0 %v9909_v0 }
 0x45a   :  { %8798 = vmatmul.mubr.msk.bf16.vlgmr.msra.gmra.mxu1 %vm1170_vm2, %v2960_v45  ;;  %v3169_v2 = vpop.permute.xlu1 %3168 }
 0x45b   :  { %3028 = vmatpush1.bf16.msra.mxu0 %v9913_v1  ;;  %3084 = vmatpush1.bf16.msra.mxu1 %v9886_v48 }
 0x45c   :  { %3129 = vmatprep.subr.bf16.mxu0 %v9896_v62  ;;  %3101 = vmatprep.mubr.bf16.mxu1 %v11820_v4 }
 0x45d   :  { %8803 = vmatprep.subr.msk.bf16.mxu1 %vm1174_vm1, %v9881_v44 }
 0x45e   :  { %8799 = vmatmul.mubr.msk.bf16.vlgmr.msra.gmra.mxu0 %vm223_vm0, %v3009_v60  ;;  %v3273_v10 = vpop.permute.xlu1 %3272 }
 0x45f   :  { %3130 = vmatpush1.bf16.msra.mxu0 %v9898_v63  ;;  %3149 = vmatprep.mubr.bf16.mxu0 %v11820_v4 }
 0x460   :  { %3131 = vmatprep.subr.bf16.mxu0 %v9909_v0 }
 0x462   :  { %8801 = vmatmul.mubr.msk.bf16.vlgmr.msra.gmra.mxu1 %vm1170_vm2, %v3065_v43 }
 0x463   :  { %3132 = vmatpush1.bf16.msra.mxu0 %v9913_v1  ;;  %3188 = vmatpush1.bf16.msra.mxu1 %v9886_v48 }
 0x464   :  { %3233 = vmatprep.subr.bf16.mxu0 %v9896_v62  ;;  %3205 = vmatprep.mubr.bf16.mxu1 %v11820_v4 }
 0x465   :  { %8806 = vmatprep.subr.msk.bf16.mxu1 %vm1174_vm1, %v9881_v44 }
 0x466   :  { %8802 = vmatmul.mubr.msk.bf16.vlgmr.msra.gmra.mxu0 %vm223_vm0, %v3113_v61 }
 0x467   :  { %3234 = vmatpush1.bf16.msra.mxu0 %v9898_v63  ;;  %3253 = vmatprep.mubr.bf16.mxu0 %v11820_v4 }
 0x468   :  { %3235 = vmatprep.subr.bf16.mxu0 %v9909_v0 }
 0x46a   :  { %8804 = vmatmul.mubr.msk.bf16.vlgmr.msra.gmra.mxu1 %vm1170_vm2, %v3169_v2 }
 0x46b   :  { %3236 = vmatpush1.bf16.msra.mxu0 %v9913_v1  ;;  %3292 = vmatpush1.bf16.msra.mxu1 %v9886_v48 }
 0x46c   :  { %3335 = vmatprep.subr.bf16.mxu0 %v9896_v62  ;;  %3309 = vmatprep.mubr.bf16.mxu1 %v11820_v4 }
 0x46d   :  { %8809 = vmatprep.subr.msk.bf16.mxu1 %vm1174_vm1, %v9881_v44 }
 0x46e   :  { %8805 = vmatmul.mubr.msk.bf16.vlgmr.msra.gmra.mxu0 %vm223_vm0, %v3217_v9 }
 0x46f   :  { %3336 = vmatpush1.bf16.msra.mxu0 %v9898_v63  ;;  %3355 = vmatprep.mubr.bf16.mxu0 %v11820_v4 }
 0x470   :  { %3337 = vmatprep.subr.bf16.mxu0 %v9909_v0 }
 0x472   :  { %8807 = vmatmul.mubr.msk.bf16.vlgmr.msra.gmra.mxu1 %vm1170_vm2, %v3273_v10 }
 0x473   :  { %3338 = vmatpush1.bf16.msra.mxu0 %v9913_v1  ;;  %3394 = vmatpush1.bf16.msra.mxu1 %v9886_v48 }
 0x474   :  { %3440 = vmatprep.subr.bf16.mxu0 %v9896_v62  ;;  %3411 = vmatprep.mubr.bf16.mxu1 %v11820_v4 }
 0x475   :  { %8812 = vmatprep.subr.msk.bf16.mxu1 %vm1174_vm1, %v9881_v44 }
 0x476   :  { %8808 = vmatmul.mubr.msk.bf16.vlgmr.msra.gmra.mxu0 %vm223_vm0, %v10047_v59  ;;  %v3424_v59 = vpop.permute.xlu1 %3423 }
 0x477   :  { %3441 = vmatpush1.bf16.msra.mxu0 %v9898_v63  ;;  %3460 = vmatprep.mubr.bf16.mxu0 %v11820_v4 }
 0x478   :  { %3442 = vmatprep.subr.bf16.mxu0 %v9909_v0 }
 0x47a   :  { %8810 = vmatmul.mubr.msk.bf16.vlgmr.msra.gmra.mxu1 %vm1170_vm2, %v3375_v14  ;;  %v3528_v22 = vpop.permute.xlu1 %3527 }
 0x47b   :  { %3443 = vmatpush1.bf16.msra.mxu0 %v9913_v1  ;;  %3499 = vmatpush1.bf16.msra.mxu1 %v9886_v48 }
 0x47c   :  { %3544 = vmatprep.subr.bf16.mxu0 %v9896_v62  ;;  %3516 = vmatprep.mubr.bf16.mxu1 %v11820_v4 }
 0x47d   :  { %8815 = vmatprep.subr.msk.bf16.mxu1 %vm1174_vm1, %v9881_v44 }
 0x47e   :  { %8811 = vmatmul.mubr.msk.bf16.vlgmr.msra.gmra.mxu0 %vm223_vm0, %v3424_v59  ;;  %v3632_v28 = vpop.permute.xlu1 %3631 }
 0x47f   :  { %3545 = vmatpush1.bf16.msra.mxu0 %v9898_v63  ;;  %3564 = vmatprep.mubr.bf16.mxu0 %v11820_v4 }
 0x480   :  { %3546 = vmatprep.subr.bf16.mxu0 %v9909_v0 }
 0x482   :  { %8813 = vmatmul.mubr.msk.bf16.vlgmr.msra.gmra.mxu1 %vm1170_vm2, %v3480_v18  ;;  %v3790_v34 = vpop.permute.xlu1 %3789 }
 0x483   :  { %3547 = vmatpush1.bf16.msra.mxu0 %v9913_v1  ;;  %3603 = vmatpush1.bf16.msra.mxu1 %v9886_v48 }
 0x484   :  { %3648 = vmatprep.subr.bf16.mxu0 %v9896_v62  ;;  %3620 = vmatprep.mubr.bf16.mxu1 %v11820_v4 }
 0x485   :  { %8818 = vmatprep.subr.msk.bf16.mxu1 %vm1174_vm1, %v9881_v44 }
 0x486   :  { %8814 = vmatmul.mubr.msk.bf16.vlgmr.msra.gmra.mxu0 %vm223_vm0, %v3528_v22  ;;  %v3895_v46 = vpop.permute.xlu1 %3894  ;;  %v10412_v22 = vld [vmem:[#allocation17 + $0x14] ss:$8 sps:$4 sm:$0xff]  }
 0x487   :  { %3649 = vmatpush1.bf16.msra.mxu0 %v9898_v63  ;;  %3668 = vmatprep.mubr.bf16.mxu0 %v11820_v4 }
 0x488   :  { %3650 = vmatprep.subr.bf16.mxu0 %v9909_v0 }
 0x48a   :  { %8816 = vmatmul.mubr.msk.bf16.vlgmr.msra.gmra.mxu1 %vm1170_vm2, %v3584_v23 }
 0x48b   :  { %3651 = vmatpush1.bf16.msra.mxu0 %v9913_v1  ;;  %3707 = vmatpush1.bf16.msra.mxu1 %v9886_v48 }
 0x48c   :  { %3750 = vmatprep.subr.bf16.mxu0 %v9896_v62  ;;  %3724 = vmatprep.mubr.bf16.mxu1 %v11820_v4 }
 0x48d   :  { %8821 = vmatprep.subr.msk.bf16.mxu1 %vm1174_vm1, %v9881_v44 }
 0x48e   :  { %8817 = vmatmul.mubr.msk.bf16.vlgmr.msra.gmra.mxu0 %vm223_vm0, %v3632_v28 }
 0x48f   :  { %3751 = vmatpush1.bf16.msra.mxu0 %v9898_v63  ;;  %3770 = vmatprep.mubr.bf16.mxu0 %v11820_v4 }
 0x490   :  { %3752 = vmatprep.subr.bf16.mxu0 %v9909_v0 }
 0x492   :  { %8819 = vmatmul.mubr.msk.bf16.vlgmr.msra.gmra.mxu1 %vm1170_vm2, %v3688_v31 }
 0x493   :  { %3753 = vmatpush1.bf16.msra.mxu0 %v9913_v1  ;;  %3809 = vmatpush1.bf16.msra.mxu1 %v9886_v48 }
 0x494   :  { %3855 = vmatprep.subr.bf16.mxu0 %v9896_v62  ;;  %3826 = vmatprep.mubr.bf16.mxu1 %v11820_v4 }
 0x495   :  { %8824 = vmatprep.subr.msk.bf16.mxu1 %vm1174_vm1, %v9881_v44 }
 0x496   :  { %8820 = vmatmul.mubr.msk.bf16.vlgmr.msra.gmra.mxu0 %vm223_vm0, %v10043_v58  ;;  %v3839_v58 = vpop.permute.xlu0 %3838 }
 0x497   :  { %3856 = vmatpush1.bf16.msra.mxu0 %v9898_v63  ;;  %3875 = vmatprep.mubr.bf16.mxu0 %v11820_v4 }
 0x498   :  { %3857 = vmatprep.subr.bf16.mxu0 %v9909_v0 }
 0x49a   :  { %8822 = vmatmul.mubr.msk.bf16.vlgmr.msra.gmra.mxu1 %vm1170_vm2, %v3790_v34  ;;  %v3943_v56 = vpop.permute.xlu0 %3942 }
 0x49b   :  { %3858 = vmatpush1.bf16.msra.mxu0 %v9913_v1  ;;  %3914 = vmatpush1.bf16.msra.mxu1 %v9886_v48 }
 0x49c   :  { %3959 = vmatprep.subr.bf16.mxu0 %v9896_v62  ;;  %3931 = vmatprep.mubr.bf16.mxu1 %v11820_v4 }
 0x49d   :  { %8827 = vmatprep.subr.msk.bf16.mxu1 %vm1174_vm1, %v9881_v44 }
 0x49e   :  { %v1386_v36 = vpop.f32.mrf.mxu0  ;;  %8823 = vmatmul.mubr.msk.bf16.vlgmr.msra.gmra.mxu0 %vm223_vm0, %v3839_v58 }
 0x49f   :  { %v1395_v40 = vmul.f32 %v1386_v36, %v1337_v30  ;;  %3960 = vmatpush1.bf16.msra.mxu0 %v9898_v63  ;;  %3979 = vmatprep.mubr.bf16.mxu0 %v11820_v4  ;;  %v10419_v30 = vld [vmem:[#allocation17 + $0x10] ss:$8 sps:$4 sm:$0xff]  }
 0x4a0   :  { %v1388_v41 = vpop.f32.mrf.mxu0  ;;  %3961 = vmatprep.subr.bf16.mxu0 %v9909_v0 }
 0x4a1   :  { %v1399_v37 = vadd.f32 %v1395_v40, %v1290_v39  ;;  %v1396_v47 = vmul.f32 %v1388_v41, %v1339_v32 }
 0x4a2   :  { %v1390_v51 = vpop.f32.mrf.mxu0  ;;  %v1442_v5 = vpop.f32.mrf.mxu1  ;;  %8825 = vmatmul.mubr.msk.bf16.vlgmr.msra.gmra.mxu1 %vm1170_vm2, %v3895_v46 }
 0x4a3   :  { %v1400_v53 = vadd.f32 %v1396_v47, %v1291_v42  ;;  %v1397_v54 = vmul.f32 %v1390_v51, %v1341_v33  ;;  %3962 = vmatpush1.bf16.msra.mxu0 %v9913_v1  ;;  %4018 = vmatpush1.bf16.msra.mxu1 %v9886_v48  ;;  %v10423_v33 = vld [vmem:[#allocation17 + $0x4] ss:$8 sps:$4 sm:$0xff]   ;;  %v10427_v42 = vld [vmem:[#allocation17] ss:$8 sps:$4 sm:$0xff]  }
 0x4a4   :  { %v1392_v35 = vpop.f32.mrf.mxu0  ;;  %v1444_v55 = vpop.f32.mrf.mxu1  ;;  %4063 = vmatprep.subr.bf16.mxu0 %v9896_v62  ;;  %4035 = vmatprep.mubr.bf16.mxu1 %v11820_v4 }
 0x4a5   :  { %v1401_v57 = vadd.f32 %v1397_v54, %v1292_v52  ;;  %v1398_v45 = vmul.f32 %v1392_v35, %v1343_v20  ;;  %8830 = vmatprep.subr.msk.bf16.mxu1 %vm1174_vm1, %v9881_v44  ;;  %v3999_v62 = vpop.permute.xlu1 %3998 }
 0x4a6   :  { %v1446_v60 = vpop.f32.mrf.mxu1  ;;  %v1490_v43 = vpop.f32.mrf.mxu0  ;;  %8826 = vmatmul.mubr.msk.bf16.vlgmr.msra.gmra.mxu0 %vm223_vm0, %v3943_v56 }
 0x4a7   :  { %v1499_v61 = vmul.f32 %v1490_v43, %v1442_v5  ;;  %4064 = vmatpush1.bf16.msra.mxu0 %v9898_v63  ;;  %4083 = vmatprep.mubr.bf16.mxu0 %v11820_v4  ;;  %v1402_v7 = vadd.f32 %v1398_v45, %v1293_v15  ;;  %v1136_v15 = vld [vmem:[#allocation19 + $0x40] sm:$0xff] }
 0x4a8   :  { %v1448_v2 = vpop.f32.mrf.mxu1  ;;  %v1492_v9 = vpop.f32.mrf.mxu0  ;;  %4065 = vmatprep.subr.bf16.mxu0 %v9909_v0 }
 0x4a9   :  { %v1503_v10 = vadd.f32 %v1499_v61, %v1399_v37  ;;  %v1500_v12 = vmul.f32 %v1492_v9, %v1444_v55  ;;  %v4047_v0 = vpop.permute.xlu0 %4046  ;;  %v4103_v34 = vpop.permute.xlu1 %4102 }
 0x4aa   :  { %v1494_v13 = vpop.f32.mrf.mxu0  ;;  %v1546_v14 = vpop.f32.mrf.mxu1  ;;  %8828 = vmatmul.mubr.msk.bf16.vlgmr.msra.gmra.mxu1 %vm1170_vm2, %v3999_v62 }
 0x4ab   :  { %v1504_v59 = vadd.f32 %v1500_v12, %v1400_v53  ;;  %v1501_v18 = vmul.f32 %v1494_v13, %v1446_v60  ;;  %4066 = vmatpush1.bf16.msra.mxu0 %v9913_v1  ;;  %4122 = vmatpush1.bf16.msra.mxu1 %v9886_v48 }
 0x4ac   :  { %v1496_v63 = vpop.f32.mrf.mxu0  ;;  %v1548_v19 = vpop.f32.mrf.mxu1  ;;  %4165 = vmatprep.subr.bf16.mxu0 %v10412_v22  ;;  %4139 = vmatprep.mubr.bf16.mxu1 %v11820_v4 }
 0x4ad   :  { %v1505_v23 = vadd.f32 %v1501_v18, %v1401_v57  ;;  %v1502_v27 = vmul.f32 %v1496_v63, %v1448_v2  ;;  %8833 = vmatprep.subr.msk.bf16.mxu1 %vm1174_vm1, %v9881_v44  ;;  %v4205_v56 = vpop.permute.xlu0 %4204  ;;  %v4254_v62 = vpop.permute.xlu1 %4253 }
 0x4ae   :  { %v1550_v17 = vpop.f32.mrf.mxu1  ;;  %v1594_v28 = vpop.f32.mrf.mxu0  ;;  %8829 = vmatmul.mubr.msk.bf16.vlgmr.msra.gmra.mxu0 %vm223_vm0, %v4047_v0 }
 0x4af   :  { %v1506_v1 = vadd.f32 %v1502_v27, %v1402_v7  ;;  %v1603_v29 = vmul.f32 %v1594_v28, %v1546_v14  ;;  %4166 = vmatpush1.bf16.msra.mxu0 %v10419_v30  ;;  %4185 = vmatprep.mubr.bf16.mxu0 %v11820_v4 }
 0x4b0   :  { %v1552_v31 = vpop.f32.mrf.mxu1  ;;  %v1596_v32 = vpop.f32.mrf.mxu0  ;;  %4167 = vmatprep.subr.bf16.mxu0 %v10423_v33 }
 0x4b1   :  { %v1607_v20 = vadd.f32 %v1603_v29, %v1503_v10  ;;  %v1604_v58 = vmul.f32 %v1596_v32, %v1548_v19  ;;  %v4310_v7 = vpop.permute.xlu0 %4309 }
 0x4b2   :  { %v1598_v36 = vpop.f32.mrf.mxu0  ;;  %v1650_v39 = vpop.f32.mrf.mxu1  ;;  %8831 = vmatmul.mubr.msk.bf16.vlgmr.msra.gmra.mxu1 %vm1170_vm2, %v4103_v34  ;;  %v1128_v34 = vld [vmem:[#allocation19] sm:$0xff] }
 0x4b3   :  { %v1608_v40 = vadd.f32 %v1604_v58, %v1504_v59  ;;  %v1605_v41 = vmul.f32 %v1598_v36, %v1550_v17  ;;  %4168 = vmatpush1.bf16.msra.mxu0 %v10427_v42  ;;  %4224 = vmatpush1.bf16.msra.mxu1 %v9886_v48  ;;  %v1140_v59 = vld [vmem:[#allocation19 + $0x60] sm:$0xff] }
 0x4b4   :  { %v1600_v46 = vpop.f32.mrf.mxu0  ;;  %v1652_v37 = vpop.f32.mrf.mxu1  ;;  %4270 = vmatprep.subr.bf16.mxu0 %v10412_v22  ;;  %4241 = vmatprep.mubr.bf16.mxu1 %v11820_v4 }
 0x4b5   :  { %v1609_v47 = vadd.f32 %v1605_v41, %v1505_v23  ;;  %v1606_v51 = vmul.f32 %v1600_v46, %v1552_v31  ;;  %8836 = vmatprep.subr.msk.bf16.mxu1 %vm1174_vm1, %v9881_v44  ;;  %v1141_v41 = vld [vmem:[#allocation19 + $0x68] sm:$0xff] }
 0x4b6   :  { %v1654_v5 = vpop.f32.mrf.mxu1  ;;  %v1696_v52 = vpop.f32.mrf.mxu0  ;;  %8832 = vmatmul.mubr.msk.bf16.vlgmr.msra.gmra.mxu0 %vm223_vm0, %v10087_v21 }
 0x4b7   :  { %v1610_v53 = vadd.f32 %v1606_v51, %v1506_v1  ;;  %v1705_v54 = vmul.f32 %v1696_v52, %v1650_v39  ;;  %4271 = vmatpush1.bf16.msra.mxu0 %v10419_v30  ;;  %4290 = vmatprep.mubr.bf16.mxu0 %v11820_v4  ;;  %v1132_v39 = vld [vmem:[#allocation19 + $0x20] sm:$0xff] }
 0x4b8   :  { %v1656_v35 = vpop.f32.mrf.mxu1  ;;  %v1698_v55 = vpop.f32.mrf.mxu0  ;;  %4272 = vmatprep.subr.bf16.mxu0 %v10423_v33  ;;  %v10469_v52 = vcombine.high %v1128_v34, %v1132_v39 }
 0x4b9   :  { %v1709_v57 = vadd.f32 %v1705_v54, %v1607_v20  ;;  %v1706_v45 = vmul.f32 %v1698_v55, %v1652_v37  ;;  %v4358_v20 = vpop.permute.xlu1 %4357  ;;  %v1129_v54 = vld [vmem:[#allocation19 + $0x8] sm:$0xff] }
 0x4ba   :  { %v1700_v60 = vpop.f32.mrf.mxu0  ;;  %v1752_v43 = vpop.f32.mrf.mxu1  ;;  %8834 = vmatmul.mubr.msk.bf16.vlgmr.msra.gmra.mxu1 %vm1170_vm2, %v4205_v56  ;;  %11892 = vst [vmem:[#allocation38_spill] sm:$0xff] %v10469_v52 }
 0x4bb   :  { %v1710_v61 = vadd.f32 %v1706_v45, %v1608_v40  ;;  %v1707_v2 = vmul.f32 %v1700_v60, %v1654_v5  ;;  %4273 = vmatpush1.bf16.msra.mxu0 %v10427_v42  ;;  %4329 = vmatpush1.bf16.msra.mxu1 %v9886_v48  ;;  %v1137_v40 = vld [vmem:[#allocation19 + $0x48] sm:$0xff]  ;;  %v1138_v45 = vld [vmem:[#allocation19 + $0x50] sm:$0xff] }
 0x4bc   :  { %v1702_v21 = vpop.f32.mrf.mxu0  ;;  %v1754_v9 = vpop.f32.mrf.mxu1  ;;  %4374 = vmatprep.subr.bf16.mxu0 %v10412_v22  ;;  %4346 = vmatprep.mubr.bf16.mxu1 %v11820_v4 }
 0x4bd   :  { %v1711_v10 = vadd.f32 %v1707_v2, %v1609_v47  ;;  %v1708_v12 = vmul.f32 %v1702_v21, %v1656_v35  ;;  %8839 = vmatprep.subr.msk.bf16.mxu1 %vm1174_vm1, %v9881_v44  ;;  %v10451_v44 = vcombine.high %v1136_v15, %v1140_v59  ;;  %v4414_v35 = vpop.permute.xlu0 %4413 }
 0x4be   :  { %v1756_v13 = vpop.f32.mrf.mxu1  ;;  %v1801_v14 = vpop.f32.mrf.mxu0  ;;  %8835 = vmatmul.mubr.msk.bf16.vlgmr.msra.gmra.mxu0 %vm223_vm0, %v4254_v62 }
 0x4bf   :  { %v1712_v18 = vadd.f32 %v1708_v12, %v1610_v53  ;;  %v1810_v63 = vmul.f32 %v1801_v14, %v1752_v43  ;;  %4375 = vmatpush1.bf16.msra.mxu0 %v10419_v30  ;;  %4394 = vmatprep.mubr.bf16.mxu0 %v11820_v4  ;;  %11890 = vst [vmem:[#allocation36_spill] sm:$0xff] %v10451_v44  ;;  %v4462_v14 = vpop.permute.xlu1 %4461 }
 0x4c0   :  { %v1758_v19 = vpop.f32.mrf.mxu1  ;;  %v1803_v0 = vpop.f32.mrf.mxu0  ;;  %4376 = vmatprep.subr.bf16.mxu0 %v10423_v33  ;;  %v10471_v53 = vcombine.high %v1137_v40, %v1141_v41 }
 0x4c1   :  { %v1814_v23 = vadd.f32 %v1810_v63, %v1709_v57  ;;  %v1811_v27 = vmul.f32 %v1803_v0, %v1754_v9  ;;  %v1133_v57 = vld [vmem:[#allocation19 + $0x28] sm:$0xff] }
 0x4c2   :  { %v1805_v17 = vpop.f32.mrf.mxu0  ;;  %v1857_v28 = vpop.f32.mrf.mxu1  ;;  %8837 = vmatmul.mubr.msk.bf16.vlgmr.msra.gmra.mxu1 %vm1170_vm2, %v4310_v7  ;;  %11893 = vst [vmem:[#allocation39_spill] sm:$0xff] %v10471_v53  ;;  %v10492_v7 = vcombine.low %v1129_v54, %v1133_v57 }
 0x4c3   :  { %v1815_v1 = vadd.f32 %v1811_v27, %v1710_v61  ;;  %v1812_v29 = vmul.f32 %v1805_v17, %v1756_v13  ;;  %4377 = vmatpush1.bf16.msra.mxu0 %v10427_v42  ;;  %4433 = vmatpush1.bf16.msra.mxu1 %v9886_v48  ;;  %v10474_v61 = vcombine.low %v1128_v34, %v1132_v39  ;;  %v1130_v13 = vld [vmem:[#allocation19 + $0x10] sm:$0xff]  ;;  %v1135_v34 = vld [vmem:[#allocation19 + $0x38] sm:$0xff] }
 0x4c4   :  { %v1807_v31 = vpop.f32.mrf.mxu0  ;;  %v1859_v32 = vpop.f32.mrf.mxu1  ;;  %4478 = vmatprep.subr.bf16.mxu0 %v10412_v22  ;;  %4450 = vmatprep.mubr.bf16.mxu1 %v11820_v4  ;;  %v10463_v22 = vcombine.low %v1136_v15, %v1140_v59  ;;  %v1139_v59 = vld [vmem:[#allocation19 + $0x58] sm:$0xff]  ;;  %11898 = vst [vmem:[#allocation44_spill] sm:$0xff] %v10492_v7 }
 0x4c5   :  { %v1816_v58 = vadd.f32 %v1812_v29, %v1711_v10  ;;  %v1813_v36 = vmul.f32 %v1807_v31, %v1758_v19  ;;  %4650 = vmatprep.subr.bf16.mxu1 %v10451_v44  ;;  %11894 = vst [vmem:[#allocation40_spill] sm:$0xff] %v10474_v61  ;;  %v10484_v10 = vcombine.high %v1129_v54, %v1133_v57 }
 0x4c6   :  { %v1861_v46 = vpop.f32.mrf.mxu1  ;;  %v1905_v37 = vpop.f32.mrf.mxu0  ;;  %8838 = vmatmul.mubr.msk.bf16.vlgmr.msra.gmra.mxu0 %vm223_vm0, %v4358_v20  ;;  %11891 = vst [vmem:[#allocation37_spill] sm:$0xff] %v10463_v22 }
 0x4c7   :  { %v10460_v48 = vadd.f32 %v1813_v36, %v1712_v18  ;;  %v1914_v47 = vmul.f32 %v1905_v37, %v1857_v28  ;;  %4479 = vmatpush1.bf16.msra.mxu0 %v10419_v30  ;;  %4498 = vmatprep.mubr.bf16.mxu0 %v11820_v4  ;;  %v1142_v30 = vld [vmem:[#allocation19 + $0x70] sm:$0xff]  ;;  %11896 = vst [vmem:[#allocation42_spill] sm:$0xff] %v10484_v10  ;;  %v1143_v18 = vld [vmem:[#allocation19 + $0x78] sm:$0xff] }
 0x4c8   :  { %v10466_v51 = vpop.f32.mrf.mxu1  ;;  %v1907_v5 = vpop.f32.mrf.mxu0  ;;  %4480 = vmatprep.subr.bf16.mxu0 %v10423_v33  ;;  %v10478_v33 = vcombine.low %v1137_v40, %v1141_v41  ;;  %v10486_v12 = vcombine.high %v1138_v45, %v1142_v30  ;;  %v10511_v41 = vcombine.low %v1139_v59, %v1143_v18 }
 0x4c9   :  { %v1918_v55 = vadd.f32 %v1914_v47, %v1814_v23  ;;  %v1915_v56 = vmul.f32 %v1907_v5, %v1859_v32  ;;  %v10494_v23 = vcombine.low %v1138_v45, %v1142_v30  ;;  %v1131_v32 = vld [vmem:[#allocation19 + $0x18] sm:$0xff] }
 0x4ca   :  { %v1909_v60 = vpop.f32.mrf.mxu0  ;;  %v1961_v43 = vpop.f32.mrf.mxu1  ;;  %8840 = vmatmul.mubr.msk.bf16.vlgmr.msra.gmra.mxu1 %vm1170_vm2, %v4414_v35  ;;  %11895 = vst [vmem:[#allocation41_spill] sm:$0xff] %v10478_v33  ;;  %11897 = vst [vmem:[#allocation43_spill] sm:$0xff] %v10486_v12  ;;  %v10517_v47 = vcombine.high %v1131_v32, %v1135_v34 }
 0x4cb   :  { %v1919_v2 = vadd.f32 %v1915_v56, %v1815_v1  ;;  %v1916_v21 = vmul.f32 %v1909_v60, %v1861_v46  ;;  %4481 = vmatpush1.bf16.msra.mxu0 %v10427_v42  ;;  %4651 = vmatpush1.bf16.msra.mxu1 %v10463_v22  ;;  %v1134_v42 = vld [vmem:[#allocation19 + $0x30] sm:$0xff]  ;;  %11899 = vst [vmem:[#allocation45_spill] sm:$0xff] %v10494_v23  ;;  %11903 = vst [vmem:[#allocation49_spill] sm:$0xff] %v10511_v41 }
 0x4cc   :  { %v10480_v9 = vpop.f32.mrf.mxu0  ;;  %v1963_v62 = vpop.f32.mrf.mxu1  ;;  %4652 = vmatprep.subr.bf16.mxu1 %v10469_v52  ;;  %4693 = vmatprep.subr.bf16.mxu0 %v10471_v53  ;;  %v10500_v28 = vcombine.high %v1130_v13, %v1134_v42  ;;  %v10502_v1 = vcombine.high %v1139_v59, %v1143_v18  ;;  %v10507_v36 = vcombine.low %v1130_v13, %v1134_v42 }
 0x4cd   :  { %v1920_v15 = vadd.f32 %v1916_v21, %v1816_v58  ;;  %4670 = vmatprep.mubr.bf16.mxu1 %v11820_v4  ;;  %11904 = vst [vmem:[#allocation50_spill] sm:$0xff] %v10517_v47  ;;  %v10524_v56 = vcombine.low %v1131_v32, %v1135_v34 }
 0x4ce   :  { %v1965_v63 = vpop.f32.mrf.mxu1  ;;  %v2009_v19 = vpop.f32.mrf.mxu0  ;;  %8841 = vmatmul.mubr.msk.bf16.vlgmr.msra.gmra.mxu0 %vm223_vm0, %v4462_v14  ;;  %11900 = vst [vmem:[#allocation46_spill] sm:$0xff] %v10500_v28  ;;  %11901 = vst [vmem:[#allocation47_spill] sm:$0xff] %v10502_v1 }
 0x4cf   :  { %v2018_v0 = vmul.f32 %v2009_v19, %v1961_v43  ;;  %4653 = vmatpush1.bf16.msra.mxu1 %v10474_v61  ;;  %4694 = vmatpush1.bf16.msra.mxu0 %v10478_v33  ;;  %11902 = vst [vmem:[#allocation48_spill] sm:$0xff] %v10507_v36  ;;  %11905 = vst [vmem:[#allocation51_spill] sm:$0xff] %v10524_v56 }
 0x4d0   :  { %v10496_v27 = vpop.f32.mrf.mxu1  ;;  %v2011_v17 = vpop.f32.mrf.mxu0  ;;  %4695 = vmatprep.subr.bf16.mxu0 %v10484_v10  ;;  %4736 = vmatprep.subr.bf16.mxu1 %v10486_v12 }
 0x4d1   :  { %v2022_v29 = vadd.f32 %v2018_v0, %v1918_v55  ;;  %v2019_v31 = vmul.f32 %v2011_v17, %v1963_v62  ;;  %4713 = vmatprep.mubr.bf16.mxu0 %v11820_v4 }
 0x4d2   :  { %v2013_v20 = vpop.f32.mrf.mxu0  ;;  %v2065_v58 = vpop.f32.mrf.mxu1  ;;  %8858 = vmatmul.mubr.msk.bf16.vlgmr.msra.gmra.mxu1 %vm223_vm0, %v10079_v16 }
 0x4d3   :  { %v2023_v39 = vadd.f32 %v2019_v31, %v1919_v2  ;;  %v2020_v40 = vmul.f32 %v2013_v20, %v1965_v63  ;;  %4696 = vmatpush1.bf16.msra.mxu0 %v10492_v7  ;;  %4737 = vmatpush1.bf16.msra.mxu1 %v10494_v23 }
 0x4d4   :  { %v10513_v46 = vpop.f32.mrf.mxu0  ;;  %v2067_v37 = vpop.f32.mrf.mxu1  ;;  %4738 = vmatprep.subr.bf16.mxu1 %v10500_v28  ;;  %4779 = vmatprep.subr.bf16.mxu0 %v10502_v1 }
 0x4d5   :  { %v2024_v5 = vadd.f32 %v2020_v40, %v1920_v15  ;;  %4756 = vmatprep.mubr.bf16.mxu1 %v11820_v4 }
 0x4d6   :  { %v2069_v54 = vpop.f32.mrf.mxu1  ;;  %v2111_v35 = vpop.f32.mrf.mxu0  ;;  %8859 = vmatmul.mubr.msk.bf16.vlgmr.msra.gmra.mxu0 %vm223_vm0, %v10079_v16 }
 0x4d7   :  { %v2120_v55 = vmul.f32 %v2111_v35, %v2065_v58  ;;  %4739 = vmatpush1.bf16.msra.mxu1 %v10507_v36  ;;  %4780 = vmatpush1.bf16.msra.mxu0 %v10511_v41 }
 0x4d8   :  { %v10526_v57 = vpop.f32.mrf.mxu1  ;;  %v2113_v45 = vpop.f32.mrf.mxu0  ;;  %4781 = vmatprep.subr.bf16.mxu0 %v10517_v47  ;;  %4799 = vmatprep.mubr.bf16.mxu0 %v11820_v4 }
 0x4d9   :  { %v2124_v30 = vadd.f32 %v2120_v55, %v2022_v29  ;;  %v2121_v60 = vmul.f32 %v2113_v45, %v2067_v37 }
 0x4da   :  { %v2115_v43 = vpop.f32.mrf.mxu0  ;;  %v2167_v2 = vpop.f32.mrf.mxu1  ;;  %8860 = vmatmul.mubr.msk.bf16.vlgmr.msra.gmra.mxu1 %vm223_vm0, %v10079_v16 }
 0x4db   :  { %v2125_v21 = vadd.f32 %v2121_v60, %v2023_v39  ;;  %v2122_v62 = vmul.f32 %v2115_v43, %v2069_v54  ;;  %4782 = vmatpush1.bf16.msra.mxu0 %v10524_v56  ;;  %4925 = vmatprep.mubr.bf16.mxu1 %v11820_v4 }
 0x4dc   :  { %v10534_v13 = vpop.f32.mrf.mxu0  ;;  %v2169_v14 = vpop.f32.mrf.mxu1 }
 0x4dd   :  { %v2126_v15 = vadd.f32 %v2122_v62, %v2024_v5 }
 0x4de   :  { %v2171_v42 = vpop.f32.mrf.mxu1  ;;  %v2216_v59 = vpop.f32.mrf.mxu0  ;;  %8861 = vmatmul.mubr.msk.bf16.vlgmr.msra.gmra.mxu0 %vm223_vm0, %v10079_v16 }
 0x4df   :  { %v2225_v18 = vmul.f32 %v2216_v59, %v2167_v2  ;;  %4968 = vmatprep.mubr.bf16.mxu0 %v11820_v4 }
 0x4e0   :  { %v10539_v63 = vpop.f32.mrf.mxu1  ;;  %v2218_v19 = vpop.f32.mrf.mxu0 }
 0x4e1   :  { %v2229_v0 = vadd.f32 %v2225_v18, %v2124_v30  ;;  %v2226_v17 = vmul.f32 %v2218_v19, %v2169_v14 }
 0x4e2   :  { %v2220_v29 = vpop.f32.mrf.mxu0  ;;  %v2272_v31 = vpop.f32.mrf.mxu1 }
 0x4e3   :  { %v2230_v32 = vadd.f32 %v2226_v17, %v2125_v21  ;;  %v2227_v34 = vmul.f32 %v2220_v29, %v2171_v42 }
 0x4e4   :  { %v10541_v20 = vpop.f32.mrf.mxu0  ;;  %v2274_v58 = vpop.f32.mrf.mxu1 }
 0x4e5   :  { %v2231_v39 = vadd.f32 %v2227_v34, %v2126_v15 }
 0x4e6   :  { %v2276_v40 = vpop.f32.mrf.mxu1  ;;  %v2320_v37 = vpop.f32.mrf.mxu0 }
 0x4e7   :  { %v2329_v5 = vmul.f32 %v2320_v37, %v2272_v31 }
 0x4e8   :  { %v10543_v16 = vpop.f32.mrf.mxu1  ;;  %v2322_v54 = vpop.f32.mrf.mxu0 }
 0x4e9   :  { %v2333_v35 = vadd.f32 %v2329_v5, %v2229_v0  ;;  %v2330_v55 = vmul.f32 %v2322_v54, %v2274_v58 }
 0x4ea   :  { %v2324_v45 = vpop.f32.mrf.mxu0  ;;  %v2376_v60 = vpop.f32.mrf.mxu1 }
 0x4eb   :  { %v2334_v30 = vadd.f32 %v2330_v55, %v2230_v32  ;;  %v2331_v43 = vmul.f32 %v2324_v45, %v2276_v40 }
 0x4ec   :  { %v10545_v2 = vpop.f32.mrf.mxu0  ;;  %v2378_v21 = vpop.f32.mrf.mxu1 }
 0x4ed   :  { %v2335_v62 = vadd.f32 %v2331_v43, %v2231_v39 }
 0x4ee   :  { %v2380_v14 = vpop.f32.mrf.mxu1  ;;  %v2424_v42 = vpop.f32.mrf.mxu0 }
 0x4ef   :  { %v2433_v59 = vmul.f32 %v2424_v42, %v2376_v60 }
 0x4f0   :  { %v10547_v15 = vpop.f32.mrf.mxu1  ;;  %v2426_v18 = vpop.f32.mrf.mxu0 }
 0x4f1   :  { %v2437_v19 = vadd.f32 %v2433_v59, %v2333_v35  ;;  %v2434_v17 = vmul.f32 %v2426_v18, %v2378_v21 }
 0x4f2   :  { %v2428_v29 = vpop.f32.mrf.mxu0  ;;  %v2480_v31 = vpop.f32.mrf.mxu1 }
 0x4f3   :  { %v2438_v0 = vadd.f32 %v2434_v17, %v2334_v30  ;;  %v2435_v34 = vmul.f32 %v2428_v29, %v2380_v14 }
 0x4f4   :  { %v10549_v58 = vpop.f32.mrf.mxu0  ;;  %v2482_v32 = vpop.f32.mrf.mxu1 }
 0x4f5   :  { %v2439_v40 = vadd.f32 %v2435_v34, %v2335_v62 }
 0x4f6   :  { %v2484_v37 = vpop.f32.mrf.mxu1  ;;  %v2526_v5 = vpop.f32.mrf.mxu0 }
 0x4f7   :  { %v2535_v54 = vmul.f32 %v2526_v5, %v2480_v31 }
 0x4f8   :  { %v10551_v39 = vpop.f32.mrf.mxu1  ;;  %v2528_v55 = vpop.f32.mrf.mxu0 }
 0x4f9   :  { %v2539_v45 = vadd.f32 %v2535_v54, %v2437_v19  ;;  %v2536_v60 = vmul.f32 %v2528_v55, %v2482_v32 }
 0x4fa   :  { %v2530_v43 = vpop.f32.mrf.mxu0  ;;  %v2582_v42 = vpop.f32.mrf.mxu1 }
 0x4fb   :  { %v2540_v35 = vadd.f32 %v2536_v60, %v2438_v0  ;;  %v2537_v21 = vmul.f32 %v2530_v43, %v2484_v37 }
 0x4fc   :  { %v10553_v59 = vpop.f32.mrf.mxu0  ;;  %v2584_v30 = vpop.f32.mrf.mxu1 }
 0x4fd   :  { %v2541_v14 = vadd.f32 %v2537_v21, %v2439_v40 }
 0x4fe   :  { %v2586_v18 = vpop.f32.mrf.mxu1  ;;  %v2631_v17 = vpop.f32.mrf.mxu0 }
 0x4ff   :  { %v2640_v29 = vmul.f32 %v2631_v17, %v2582_v42 }
 0x500   :  { %v10555_v62 = vpop.f32.mrf.mxu1  ;;  %v2633_v34 = vpop.f32.mrf.mxu0 }
 0x501   :  { %v2644_v31 = vadd.f32 %v2640_v29, %v2539_v45  ;;  %v2641_v5 = vmul.f32 %v2633_v34, %v2584_v30 }
 0x502   :  { %v2635_v11 = vpop.f32.mrf.mxu0  ;;  %v2687_v50 = vpop.f32.mrf.mxu1 }
 0x503   :  { %v2645_v19 = vadd.f32 %v2641_v5, %v2540_v35  ;;  %v2642_v32 = vmul.f32 %v2635_v11, %v2586_v18 }
 0x504   :  { %v10557_v54 = vpop.f32.mrf.mxu0  ;;  %v2689_v0 = vpop.f32.mrf.mxu1 }
 0x505   :  { %v2646_v37 = vadd.f32 %v2642_v32, %v2541_v14 }
 0x506   :  { %v2691_v55 = vpop.f32.mrf.mxu1  ;;  %v2735_v60 = vpop.f32.mrf.mxu0 }
 0x507   :  { %v2744_v43 = vmul.f32 %v2735_v60, %v2687_v50 }
 0x508   :  { %v10559_v40 = vpop.f32.mrf.mxu1  ;;  %v2737_v21 = vpop.f32.mrf.mxu0 }
 0x509   :  { %v2748_v42 = vadd.f32 %v2744_v43, %v2644_v31  ;;  %v2745_v17 = vmul.f32 %v2737_v21, %v2689_v0 }
 0x50a   :  { %v2739_v49 = vpop.f32.mrf.mxu0  ;;  %v2791_v38 = vpop.f32.mrf.mxu1 }
 0x50b   :  { %v2749_v45 = vadd.f32 %v2745_v17, %v2645_v19  ;;  %v2746_v30 = vmul.f32 %v2739_v49, %v2691_v55 }
 0x50c   :  { %v10561_v29 = vpop.f32.mrf.mxu0  ;;  %v2793_v35 = vpop.f32.mrf.mxu1 }
 0x50d   :  { %v2750_v11 = vadd.f32 %v2746_v30, %v2646_v37 }
 0x50e   :  { %v2795_v18 = vpop.f32.mrf.mxu1  ;;  %v2839_v34 = vpop.f32.mrf.mxu0 }
 0x50f   :  { %v2848_v5 = vmul.f32 %v2839_v34, %v2791_v38 }
 0x510   :  { %v10563_v14 = vpop.f32.mrf.mxu1  ;;  %v2841_v32 = vpop.f32.mrf.mxu0 }
 0x511   :  { %v2852_v50 = vadd.f32 %v2848_v5, %v2748_v42  ;;  %v2849_v60 = vmul.f32 %v2841_v32, %v2793_v35 }
 0x512   :  { %v2843_v25 = vpop.f32.mrf.mxu0  ;;  %v2896_v26 = vpop.f32.mrf.mxu1 }
 0x513   :  { %v2853_v31 = vadd.f32 %v2849_v60, %v2749_v45  ;;  %v2850_v0 = vmul.f32 %v2843_v25, %v2795_v18 }
 0x514   :  { %v10565_v43 = vpop.f32.mrf.mxu0  ;;  %v2898_v19 = vpop.f32.mrf.mxu1 }
 0x515   :  { %v2854_v49 = vadd.f32 %v2850_v0, %v2750_v11 }
 0x516   :  { %v2900_v55 = vpop.f32.mrf.mxu1  ;;  %v2942_v21 = vpop.f32.mrf.mxu0 }
 0x517   :  { %v2951_v17 = vmul.f32 %v2942_v21, %v2896_v26 }
 0x518   :  { %v10567_v37 = vpop.f32.mrf.mxu1  ;;  %v2944_v30 = vpop.f32.mrf.mxu0 }
 0x519   :  { %v2955_v38 = vadd.f32 %v2951_v17, %v2852_v50  ;;  %v2952_v34 = vmul.f32 %v2944_v30, %v2898_v19  ;;  %v1156_v30 = vld [vmem:[#allocation20 + $0x60] sm:$0xff] }
 0x51a   :  { %v2946_v4 = vpop.f32.mrf.mxu0  ;;  %v2998_v3 = vpop.f32.mrf.mxu1 }
 0x51b   :  { %v2956_v42 = vadd.f32 %v2952_v34, %v2853_v31  ;;  %v2953_v35 = vmul.f32 %v2946_v4, %v2900_v55  ;;  %v1152_v55 = vld [vmem:[#allocation20 + $0x40] sm:$0xff]  ;;  %v1153_v34 = vld [vmem:[#allocation20 + $0x48] sm:$0xff] }
 0x51c   :  { %v10569_v5 = vpop.f32.mrf.mxu0  ;;  %v3000_v45 = vpop.f32.mrf.mxu1  ;;  %v10575_v36 = vcombine.high %v1152_v55, %v1156_v30 }
 0x51d   :  { %v2957_v25 = vadd.f32 %v2953_v35, %v2854_v49 }
 0x51e   :  { %v3002_v18 = vpop.f32.mrf.mxu1  ;;  %v3047_v32 = vpop.f32.mrf.mxu0  ;;  %11906 = vst [vmem:[#allocation52_spill] sm:$0xff] %v10575_v36  ;;  %4905 = vmatprep.subr.bf16.mxu1 %v10575_v36 }
 0x51f   :  { %v3056_v60 = vmul.f32 %v3047_v32, %v2998_v3  ;;  %v1157_v3 = vld [vmem:[#allocation20 + $0x68] sm:$0xff] }
 0x520   :  { %v10571_v11 = vpop.f32.mrf.mxu1  ;;  %v3049_v0 = vpop.f32.mrf.mxu0  ;;  %v10577_v47 = vcombine.high %v1153_v34, %v1157_v3 }
 0x521   :  { %v3060_v26 = vadd.f32 %v3056_v60, %v2955_v38  ;;  %v3057_v21 = vmul.f32 %v3049_v0, %v3000_v45  ;;  %v10579_v38 = vcombine.low %v1152_v55, %v1156_v30  ;;  %v1144_v60 = vld [vmem:[#allocation20] sm:$0xff]  ;;  %v1149_v30 = vld [vmem:[#allocation20 + $0x28] sm:$0xff] }
 0x522   :  { %v3051_v24 = vpop.f32.mrf.mxu0  ;;  %v3103_v56 = vpop.f32.mrf.mxu1  ;;  %11907 = vst [vmem:[#allocation53_spill] sm:$0xff] %v10577_v47  ;;  %4948 = vmatprep.subr.bf16.mxu0 %v10577_v47  ;;  %v1148_v0 = vld [vmem:[#allocation20 + $0x20] sm:$0xff] }
 0x523   :  { %v3061_v50 = vadd.f32 %v3057_v21, %v2956_v42  ;;  %v3058_v19 = vmul.f32 %v3051_v24, %v3002_v18  ;;  %11908 = vst [vmem:[#allocation54_spill] sm:$0xff] %v10579_v38  ;;  %v10584_v42 = vcombine.low %v1153_v34, %v1157_v3  ;;  %4906 = vmatpush1.bf16.msra.mxu1 %v10579_v38  ;;  %v1158_v38 = vld [vmem:[#allocation20 + $0x70] sm:$0xff] }
 0x524   :  { %v10573_v17 = vpop.f32.mrf.mxu0  ;;  %v3105_v31 = vpop.f32.mrf.mxu1  ;;  %v10589_v55 = vcombine.high %v1144_v60, %v1148_v0 }
 0x525   :  { %v3062_v4 = vadd.f32 %v3058_v19, %v2957_v25  ;;  %11909 = vst [vmem:[#allocation55_spill] sm:$0xff] %v10584_v42  ;;  %4949 = vmatpush1.bf16.msra.mxu0 %v10584_v42  ;;  %v1154_v42 = vld [vmem:[#allocation20 + $0x50] sm:$0xff] }
 0x526   :  { %v3107_v49 = vpop.f32.mrf.mxu1  ;;  %v3151_v35 = vpop.f32.mrf.mxu0  ;;  %11910 = vst [vmem:[#allocation56_spill] sm:$0xff] %v10589_v55  ;;  %4907 = vmatprep.subr.bf16.mxu1 %v10589_v55 }
 0x527   :  { %v3160_v32 = vmul.f32 %v3151_v35, %v3103_v56  ;;  %v1145_v56 = vld [vmem:[#allocation20 + $0x8] sm:$0xff] }
 0x528   :  { %v10581_v45 = vpop.f32.mrf.mxu1  ;;  %v3153_v24 = vpop.f32.mrf.mxu0  ;;  %v10591_v34 = vcombine.high %v1145_v56, %v1149_v30 }
 0x529   :  { %v3164_v25 = vadd.f32 %v3160_v32, %v3060_v26  ;;  %v3161_v18 = vmul.f32 %v3153_v24, %v3105_v31  ;;  %v10593_v26 = vcombine.low %v1144_v60, %v1148_v0  ;;  %v10598_v32 = vcombine.low %v1145_v56, %v1149_v30  ;;  %v1159_v0 = vld [vmem:[#allocation20 + $0x78] sm:$0xff] }
 0x52a   :  { %v3155_v21 = vpop.f32.mrf.mxu0  ;;  %v3207_v19 = vpop.f32.mrf.mxu1  ;;  %11911 = vst [vmem:[#allocation57_spill] sm:$0xff] %v10591_v34  ;;  %4950 = vmatprep.subr.bf16.mxu0 %v10591_v34  ;;  %v10603_v60 = vcombine.high %v1154_v42, %v1158_v38  ;;  %v10607_v56 = vcombine.low %v1154_v42, %v1158_v38 }
 0x52b   :  { %v3165_v35 = vadd.f32 %v3161_v18, %v3061_v50  ;;  %v3162_v36 = vmul.f32 %v3155_v21, %v3107_v49  ;;  %11912 = vst [vmem:[#allocation58_spill] sm:$0xff] %v10593_v26  ;;  %11913 = vst [vmem:[#allocation59_spill] sm:$0xff] %v10598_v32  ;;  %4908 = vmatpush1.bf16.msra.mxu1 %v10593_v26  ;;  %v1155_v50 = vld [vmem:[#allocation20 + $0x58] sm:$0xff]  ;;  %4951 = vmatpush1.bf16.msra.mxu0 %v10598_v32 }
 0x52c   :  { %v10595_v31 = vpop.f32.mrf.mxu0  ;;  %v3209_v3 = vpop.f32.mrf.mxu1  ;;  %11914 = vst [vmem:[#allocation60_spill] sm:$0xff] %v10603_v60  ;;  %v10605_v47 = vcombine.high %v1155_v50, %v1159_v0  ;;  %11916 = vst [vmem:[#allocation62_spill] sm:$0xff] %v10607_v56  ;;  %4991 = vmatprep.subr.bf16.mxu1 %v10603_v60  ;;  %v10612_v30 = vcombine.low %v1155_v50, %v1159_v0 }
 0x52d   :  { %v3166_v24 = vadd.f32 %v3162_v36, %v3062_v4 }
 0x52e   :  { %v3211_v49 = vpop.f32.mrf.mxu1  ;;  %v3255_v18 = vpop.f32.mrf.mxu0  ;;  %11915 = vst [vmem:[#allocation61_spill] sm:$0xff] %v10605_v47  ;;  %11917 = vst [vmem:[#allocation63_spill] sm:$0xff] %v10612_v30  ;;  %5034 = vmatprep.subr.bf16.mxu0 %v10605_v47 }
 0x52f   :  { %v3264_v21 = vmul.f32 %v3255_v18, %v3207_v19 }
 0x530   :  { %v10609_v36 = vpop.f32.mrf.mxu1  ;;  %v3257_v4 = vpop.f32.mrf.mxu0 }
 0x531   :  { %v3268_v26 = vadd.f32 %v3264_v21, %v3164_v25  ;;  %v3265_v34 = vmul.f32 %v3257_v4, %v3209_v3 }
 0x532   :  { %v3259_v32 = vpop.f32.mrf.mxu0  ;;  %v3311_v55 = vpop.f32.mrf.mxu1 }
 0x533   :  { %v3269_v28 = vadd.f32 %v3265_v34, %v3165_v35  ;;  %v3266_v41 = vmul.f32 %v3259_v32, %v3211_v49 }
 0x534   :  { %v10615_v19 = vpop.f32.mrf.mxu0  ;;  %v3313_v18 = vpop.f32.mrf.mxu1 }
 0x535   :  { %v3270_v38 = vadd.f32 %v3266_v41, %v3166_v24 }
 0x536   :  { %v3315_v42 = vpop.f32.mrf.mxu1  ;;  %v3357_v23 = vpop.f32.mrf.mxu0 }
 0x537   :  { %v3366_v1 = vmul.f32 %v3357_v23, %v3311_v55 }
 0x538   :  { %v10617_v12 = vpop.f32.mrf.mxu1  ;;  %v3359_v60 = vpop.f32.mrf.mxu0 }
 0x539   :  { %v3370_v50 = vadd.f32 %v3366_v1, %v3268_v26  ;;  %v3367_v0 = vmul.f32 %v3359_v60, %v3313_v18 }
 0x53a   :  { %v3361_v25 = vpop.f32.mrf.mxu0  ;;  %v3413_v3 = vpop.f32.mrf.mxu1 }
 0x53b   :  { %v3371_v21 = vadd.f32 %v3367_v0, %v3269_v28  ;;  %v3368_v4 = vmul.f32 %v3361_v25, %v3315_v42 }
 0x53c   :  { %v10619_v47 = vpop.f32.mrf.mxu0  ;;  %v3415_v35 = vpop.f32.mrf.mxu1 }
 0x53d   :  { %v10621_v34 = vadd.f32 %v3368_v4, %v3270_v38 }
 0x53e   :  { %v10623_v32 = vpop.f32.mrf.mxu1  ;;  %v3462_v41 = vpop.f32.mrf.mxu0 }
 0x53f   :  { %v3471_v24 = vmul.f32 %v3462_v41, %v3413_v3 }
 0x540   :  { %v10625_v49 = vpop.f32.mrf.mxu1  ;;  %v3464_v23 = vpop.f32.mrf.mxu0 }
 0x541   :  { %v10627_v55 = vadd.f32 %v3471_v24, %v3370_v50  ;;  %v3472_v1 = vmul.f32 %v3464_v23, %v3415_v35 }
 0x542   :  { %v10629_v26 = vpop.f32.mrf.mxu0  ;;  %v10631_v60 = vpop.f32.mrf.mxu1 }
 0x543   :  { %v3476_v28 = vadd.f32 %v3472_v1, %v3371_v21 }
 0x544   :  { %v10633_v18 = vpop.f32.mrf.mxu0  ;;  %v3520_v42 = vpop.f32.mrf.mxu1 }
 0x546   :  { %v10635_v38 = vpop.f32.mrf.mxu1  ;;  %v10637_v0 = vpop.f32.mrf.mxu0 }
 0x548   :  { %v10639_v25 = vpop.f32.mrf.mxu1  ;;  %v3568_v3 = vpop.f32.mrf.mxu0 }
 0x549   :  { %v3576_v4 = vmul.f32 %v3568_v3, %v3520_v42 }
 0x54a   :  { %v10641_v41 = vpop.f32.mrf.mxu0  ;;  %v10643_v50 = vpop.f32.mrf.mxu1 }
 0x54b   :  { %v10645_v35 = vadd.f32 %v3576_v4, %v3476_v28 }
 0x54c   :  { %v10647_v24 = vpop.f32.mrf.mxu0  ;;  %v10649_v21 = vpop.f32.mrf.mxu1 }
 0x54d   :  { %11918 = vst [vmem:[#allocation64_spill] sm:$0xff] %v10645_v35  ;;  %11919 = vst [vmem:[#allocation65_spill] sm:$0xff] %v10647_v24 }
 0x54e   :  { %v10651_v23 = vpop.f32.mrf.mxu1  ;;  %v10653_v1 = vpop.f32.mrf.mxu0 }
 0x550   :  { %v10655_v7 = vpop.f32.mrf.mxu1  ;;  %v10657_v61 = vpop.f32.mrf.mxu0 }
 0x551   :  { %11920 = vst [vmem:[#allocation66_spill] sm:$0xff] %v10655_v7 }
 0x552   :  { %v10659_v10 = vpop.f32.mrf.mxu0  ;;  %v10661_v42 = vpop.f32.mrf.mxu1 }
 0x554   :  { %v10663_v3 = vpop.f32.mrf.mxu0  ;;  %v10665_v28 = vpop.f32.mrf.mxu1 }
 0x555   :  { %11921 = vst [vmem:[#allocation67_spill] sm:$0xff] %v10663_v3 }
 0x556   :  { %v10667_v4 = vpop.f32.mrf.mxu1  ;;  %v10669_v52 = vpop.f32.mrf.mxu0 }
 0x557   :  { %11922 = vst [vmem:[#allocation68_spill] sm:$0xff] %v10667_v4 }
 0x558   :  { %v10671_v33 = vpop.f32.mrf.mxu1  ;;  %v10673_v22 = vpop.f32.mrf.mxu0 }
 0x559   :  { %11923 = vst [vmem:[#allocation69_spill] sm:$0xff] %v10671_v33  ;;  %v1917_v33 = vmul.f32 %v10480_v9, %v10466_v51  ;;  %v2228_v9 = vmul.f32 %v10541_v20, %v10539_v63  ;;  %v2538_v20 = vmul.f32 %v10553_v59, %v10551_v39  ;;  %v2851_v59 = vmul.f32 %v10565_v43, %v10563_v14 }
 0x55a   :  { %v10675_v53 = vpop.f32.mrf.mxu0  ;;  %v10677_v44 = vpop.f32.mrf.mxu1  ;;  %v3163_v43 = vmul.f32 %v10595_v31, %v10581_v45  ;;  %v3679_v45 = vmul.f32 %v10653_v1, %v10643_v50 }
 0x55b   :  { %11924 = vst [vmem:[#allocation70_spill] sm:$0xff] %v10675_v53 }
 0x55c   :  { %v10679_v30 = vpop.f32.mrf.mxu0  ;;  %v10681_v56 = vpop.f32.mrf.mxu1 }
 0x55d   :  { %11925 = vst [vmem:[#allocation71_spill] sm:$0xff] %v10679_v30  ;;  %11926 = vst [vmem:[#allocation72_spill] sm:$0xff] %v10681_v56  ;;  %v2021_v30 = vmul.f32 %v10513_v46, %v10496_v27 }
 0x55e   :  { %v10683_v8 = vpop.f32.mrf.mxu1  ;;  %v10685_v6 = vpop.f32.mrf.mxu0 }
 0x55f   :  { %11927 = vst [vmem:[#allocation73_spill] sm:$0xff] %v10683_v8  ;;  %v1921_v8 = vadd.f32 %v1917_v33, %v10460_v48 }
 0x560   :  { %v10687_v3 = vpop.f32.mrf.mxu1  ;;  %v10689_v7 = vpop.f32.mrf.mxu0 }
 0x561   :  { %11928 = vst [vmem:[#allocation74_spill] sm:$0xff] %v10687_v3  ;;  %11929 = vst [vmem:[#allocation75_spill] sm:$0xff] %v10689_v7  ;;  %v2123_v3 = vmul.f32 %v10534_v13, %v10526_v57  ;;  %v2025_v51 = vadd.f32 %v2021_v30, %v1921_v8  ;;  %v2436_v13 = vmul.f32 %v10549_v58, %v10547_v15 }
 0x562   :  { %v10693_v35 = vpop.f32.mrf.mxu0  ;;  %v10695_v53 = vpop.f32.mrf.mxu1  ;;  %v2747_v58 = vmul.f32 %v10561_v29, %v10559_v40  ;;  %v3059_v29 = vmul.f32 %v10573_v17, %v10571_v11  ;;  %v3473_v11 = vmul.f32 %v10629_v26, %v10623_v32  ;;  %v3680_v32 = vmul.f32 %v10657_v61, %v10649_v21 }
 0x563   :  { %11930 = vst [vmem:[#allocation76_spill] sm:$0xff] %v10693_v35  ;;  %v2127_v46 = vadd.f32 %v2123_v3, %v2025_v51  ;;  %v3781_v26 = vmul.f32 %v10669_v52, %v10661_v42  ;;  %v3886_v61 = vmul.f32 %v10685_v6, %v10677_v44 }
 0x564   :  { %v10699_v4 = vpop.f32.mrf.mxu0  ;;  %v10701_v56 = vpop.f32.mrf.mxu1  ;;  %v3477_v50 = vadd.f32 %v3473_v11, %v10621_v34  ;;  %v11933_v34 = vld [vmem:[#allocation65_spill] sm:$0xff]  ;;  %v11940_v11 = vld [vmem:[#allocation67_spill] sm:$0xff] }
 0x565   :  { %11931 = vst [vmem:[#allocation77_spill] sm:$0xff] %v10699_v4  ;;  %v2332_v4 = vmul.f32 %v10545_v2, %v10543_v16  ;;  %v2232_v57 = vadd.f32 %v2228_v9, %v2127_v46  ;;  %v2643_v2 = vmul.f32 %v10557_v54, %v10555_v62  ;;  %v2954_v54 = vmul.f32 %v10569_v5, %v10567_v37 }
 0x566   :  { %v10706_v7 = vpop.f32.mrf.mxu1  ;;  %v10708_v24 = vpop.f32.mrf.mxu0  ;;  %v3575_v37 = vmul.f32 %v10637_v0, %v10631_v60  ;;  %v3577_v60 = vmul.f32 %v10641_v41, %v10635_v38  ;;  %v3578_v42 = vmul.f32 %v11933_v34, %v10639_v25  ;;  %v11941_v25 = vld [vmem:[#allocation73_spill] sm:$0xff] }
 0x567   :  { %v2336_v63 = vadd.f32 %v2332_v4, %v2232_v57 }
 0x568   :  { %v10712_v35 = vpop.f32.mrf.mxu1  ;;  %v10714_v27 = vpop.f32.mrf.mxu0  ;;  %v3581_v21 = vadd.f32 %v3577_v60, %v3477_v50 }
 0x569   :  { %v2440_v16 = vadd.f32 %v2436_v13, %v2336_v63 }
 0x56a   :  { %v10718_v48 = vpop.f32.mrf.mxu0  ;;  %v10720_v33 = vpop.f32.mrf.mxu1 }
 0x56b   :  { %v2542_v15 = vadd.f32 %v2538_v20, %v2440_v16 }
 0x56c   :  { %v10724_v8 = vpop.f32.mrf.mxu0  ;;  %v10726_v30 = vpop.f32.mrf.mxu1 }
 0x56d   :  { %v2647_v39 = vadd.f32 %v2643_v2, %v2542_v15 }
 0x56e   :  { %v10730_v3 = vpop.f32.mrf.mxu1  ;;  %v10732_v51 = vpop.f32.mrf.mxu0 }
 0x56f   :  { %v2751_v62 = vadd.f32 %v2747_v58, %v2647_v39  ;;  %v3267_v39 = vmul.f32 %v10615_v19, %v10609_v36  ;;  %v3579_v19 = vadd.f32 %v3575_v37, %v10627_v55  ;;  %v3782_v55 = vmul.f32 %v10673_v22, %v10665_v28  ;;  %v11937_v37 = vld [vmem:[#allocation72_spill] sm:$0xff]  ;;  %v11939_v28 = vld [vmem:[#allocation66_spill] sm:$0xff] }
 0x570   :  { %v10736_v9 = vpop.f32.mrf.mxu1  ;;  %v10738_v46 = vpop.f32.mrf.mxu0  ;;  %v3990_v22 = vmul.f32 %v10708_v24, %v10695_v53  ;;  %v11943_v24 = vld [vmem:[#allocation69_spill] sm:$0xff] }
 0x571   :  { %11932 = vst [vmem:[#allocation78_spill] sm:$0xff] %v10736_v9  ;;  %v2855_v40 = vadd.f32 %v2851_v59, %v2751_v62  ;;  %v3369_v62 = vmul.f32 %v10619_v47, %v10617_v12  ;;  %v3474_v12 = vmul.f32 %v10633_v18, %v10625_v49  ;;  %v3681_v47 = vmul.f32 %v10659_v10, %v10651_v23  ;;  %v11935_v49 = vld [vmem:[#allocation70_spill] sm:$0xff]  ;;  %v11936_v23 = vld [vmem:[#allocation64_spill] sm:$0xff] }
 0x572   :  { %v10742_v4 = vpop.f32.mrf.mxu0  ;;  %v10744_v57 = vpop.f32.mrf.mxu1  ;;  %v3683_v1 = vadd.f32 %v3679_v45, %v3579_v19  ;;  %v3682_v45 = vmul.f32 %v11940_v11, %v11939_v28 }
 0x573   :  { %v2958_v14 = vadd.f32 %v2954_v54, %v2855_v40  ;;  %v11934_v40 = vld [vmem:[#allocation68_spill] sm:$0xff]  ;;  %v3685_v44 = vadd.f32 %v3681_v47, %v3581_v21 }
 0x574   :  { %v10748_v13 = vpop.f32.mrf.mxu0  ;;  %v10750_v63 = vpop.f32.mrf.mxu1  ;;  %v3783_v18 = vmul.f32 %v11935_v49, %v11934_v40 }
 0x575   :  { %v3063_v5 = vadd.f32 %v3059_v29, %v2958_v14  ;;  %v3684_v14 = vadd.f32 %v3680_v32, %v11936_v23  ;;  %v3991_v32 = vmul.f32 %v10714_v27, %v10701_v56 }
 0x576   :  { %v10754_v20 = vpop.f32.mrf.mxu1  ;;  %v4187_v16 = vpop.f32.mrf.mxu0  ;;  %v3787_v53 = vadd.f32 %v3783_v18, %v3685_v44  ;;  %v4096_v18 = vmul.f32 %v10742_v4, %v10730_v3  ;;  %v4517_v44 = vld [vmem:[#allocation14] sm:$0x3] }
 0x577   :  { %v3167_v31 = vadd.f32 %v3163_v43, %v3063_v5  ;;  %v3785_v43 = vadd.f32 %v3781_v26, %v3683_v1  ;;  %v11938_v5 = vld [vmem:[#allocation75_spill] sm:$0xff]  ;;  %v4094_v26 = vmul.f32 %v10732_v51, %v10720_v33  ;;  %v4196_v56 = vmul.f32 %v4187_v16, %v10744_v57  ;;  %v11945_v33 = vld [vmem:[#allocation74_spill] sm:$0xff]  ;;  %v11946_v51 = vld [vmem:[#allocation77_spill] sm:$0xff] }
 0x578   :  { %v10758_v9 = vpop.f32.mrf.mxu1  ;;  %v10760_v2 = vpop.f32.mrf.mxu0  ;;  %v3993_v57 = vmul.f32 %v10724_v8, %v10712_v35 }
 0x579   :  { %v3271_v54 = vadd.f32 %v3267_v39, %v3167_v31  ;;  %v3887_v39 = vmul.f32 %v11938_v5, %v11937_v37  ;;  %v11942_v31 = vld [vmem:[#allocation76_spill] sm:$0xff]  ;;  %v3890_v50 = vadd.f32 %v3886_v61, %v3785_v43  ;;  %v4197_v43 = vmul.f32 %v10760_v2, %v10750_v63  ;;  %v11947_v2 = vld [vmem:[#allocation78_spill] sm:$0xff] }
 0x57a   :  { %v10764_v15 = vpop.f32.mrf.mxu0  ;;  %v10766_v58 = vpop.f32.mrf.mxu1 }
 0x57b   :  { %v3373_v52 = vadd.f32 %v3369_v62, %v3271_v54  ;;  %v3888_v62 = vmul.f32 %v11942_v31, %v11941_v25  ;;  %v3786_v54 = vadd.f32 %v3782_v55, %v3684_v14  ;;  %v3994_v49 = vadd.f32 %v3990_v22, %v3890_v50 }
 0x57c   :  { %v10774_v17 = vpop.f32.mrf.mxu0  ;;  %v10776_v59 = vpop.f32.mrf.mxu1  ;;  %v4095_v55 = vmul.f32 %v10738_v46, %v10726_v30  ;;  %v4198_v16 = vmul.f32 %v10764_v15, %v10754_v20 }
 0x57d   :  { %v3478_v6 = vadd.f32 %v3474_v12, %v3373_v52  ;;  %v11944_v12 = vld [vmem:[#allocation71_spill] sm:$0xff]  ;;  %v3992_v52 = vmul.f32 %v10718_v48, %v10706_v7  ;;  %v3891_v40 = vadd.f32 %v3887_v39, %v3786_v54  ;;  %v3892_v61 = vadd.f32 %v3888_v62, %v3787_v53  ;;  %v11949_v53 = vld [vmem:[#allocation34_spill] sm:$0xff] }
 0x57e   :  { %v10784_v0 = vpop.f32.mrf.mxu1  ;;  %v4292_v36 = vpop.f32.mrf.mxu0  ;;  %v3784_v47 = vmul.f32 %v11944_v12, %v11943_v24  ;;  %v4098_v48 = vadd.f32 %v4094_v26, %v3994_v49  ;;  %v4199_v31 = vmul.f32 %v10774_v17, %v10758_v9 }
 0x57f   :  { %v3582_v1 = vadd.f32 %v3578_v42, %v3478_v6  ;;  %v3889_v42 = vmul.f32 %v11946_v51, %v11945_v33  ;;  %v3995_v7 = vadd.f32 %v3991_v32, %v3891_v40  ;;  %v4301_v37 = vmul.f32 %v4292_v36, %v10766_v58 }
 0x580   :  { %v10796_v38 = vpop.f32.mrf.mxu1  ;;  %v4294_v41 = vpop.f32.mrf.mxu0  ;;  %v3996_v46 = vadd.f32 %v3992_v52, %v3892_v61  ;;  %v4200_v4 = vadd.f32 %v4196_v56, %v4098_v48  ;;  %v4097_v58 = vmul.f32 %v10748_v13, %v11947_v2 }
 0x581   :  { %v3686_v27 = vadd.f32 %v3682_v45, %v3582_v1  ;;  %v4099_v3 = vadd.f32 %v4095_v55, %v3995_v7  ;;  %v4302_v22 = vmul.f32 %v4294_v41, %v10776_v59  ;;  %v11948_v41 = vld [vmem:[#allocation33_spill] sm:$0xff] }
 0x582   :  { %v4296_v29 = vpop.f32.mrf.mxu0  ;;  %v4348_v10 = vpop.f32.mrf.mxu1  ;;  %v4100_v63 = vadd.f32 %v4096_v18, %v3996_v46  ;;  %v4305_v45 = vadd.f32 %v4301_v37, %v4200_v4  ;;  %v1150_v4 = vld [vmem:[#allocation20 + $0x30] sm:$0xff] }
 0x583   :  { %v3788_v30 = vadd.f32 %v3784_v47, %v3686_v27  ;;  %v4201_v11 = vadd.f32 %v4197_v43, %v4099_v3  ;;  %v4303_v35 = vmul.f32 %v4296_v29, %v10784_v0  ;;  %v4526_v0 = vrot.slane %v4517_v44, %v11949_v53  ;;  %v1146_v3 = vld [vmem:[#allocation20 + $0x10] sm:$0xff] }
 0x584   :  { %v4298_v60 = vpop.f32.mrf.mxu0  ;;  %v4350_v19 = vpop.f32.mrf.mxu1  ;;  %v4202_v25 = vadd.f32 %v4198_v16, %v4100_v63  ;;  %v1151_v63 = vld [vmem:[#allocation20 + $0x38] sm:$0xff] }
 0x585   :  { %v3893_v28 = vadd.f32 %v3889_v42, %v3788_v30  ;;  %v4306_v62 = vadd.f32 %v4302_v22, %v4201_v11  ;;  %v4304_v26 = vmul.f32 %v4298_v60, %v10796_v38 }
 0x586   :  { %v4352_v21 = vpop.f32.mrf.mxu1  ;;  %v4396_v34 = vpop.f32.mrf.mxu0  ;;  %v4307_v29 = vadd.f32 %v4303_v35, %v4202_v25  ;;  %v11950_v25 = vld [vmem:[#allocation62_spill] sm:$0xff] }
 0x587   :  { %v4405_v6 = vmul.f32 %v4396_v34, %v4348_v10  ;;  %v3997_v15 = vadd.f32 %v3993_v57, %v3893_v28  ;;  %v4522_v10 = vrot.slane %v4517_v44, %v11948_v41  ;;  %v1147_v28 = vld [vmem:[#allocation20 + $0x18] sm:$0xff] }
 0x588   :  { %v4354_v23 = vpop.f32.mrf.mxu1  ;;  %v4398_v14 = vpop.f32.mrf.mxu0 }
 0x589   :  { %v4406_v8 = vmul.f32 %v4398_v14, %v4350_v19  ;;  %v4409_v54 = vadd.f32 %v4405_v6, %v4305_v45  ;;  %v4101_v13 = vadd.f32 %v4097_v58, %v3997_v15  ;;  %v10846_v45 = vcombine.high %v1146_v3, %v1150_v4 }
 0x58a   :  { %v4400_v5 = vpop.f32.mrf.mxu0  ;;  %v4452_v39 = vpop.f32.mrf.mxu1 }
 0x58b   :  { %v4407_v50 = vmul.f32 %v4400_v5, %v4352_v21  ;;  %v4410_v19 = vadd.f32 %v4406_v8, %v4306_v62  ;;  %v4203_v52 = vadd.f32 %v4199_v31, %v4101_v13  ;;  %v10856_v31 = vcombine.low %v1146_v3, %v1150_v4  ;;  %v11956_v13 = vld [vmem:[#allocation41_spill] sm:$0xff] }
 0x58c   :  { %v4402_v36 = vpop.f32.mrf.mxu0  ;;  %v4454_v20 = vpop.f32.mrf.mxu1  ;;  %v11952_v62 = vmov 0  }
 0x58d   :  { %v4408_v9 = vmul.f32 %v4402_v36, %v4354_v23  ;;  %v4411_v34 = vadd.f32 %v4407_v50, %v4307_v29  ;;  %v4308_v21 = vadd.f32 %v4304_v26, %v4203_v52  ;;  %v11954_v50 = vld [vmem:[#allocation39_spill] sm:$0xff]  ;;  %v11957_v26 = vld [vmem:[#allocation38_spill] sm:$0xff]  ;;  %v11960_v29 = vld [vmem:[#allocation44_spill] sm:$0xff] }
 0x58e   :  { %v4500_v59 = vpop.f32.mrf.mxu0  ;;  %v4456_v24 = vpop.f32.mrf.mxu1  ;;  %v11964_v52 = vld [vmem:[#allocation49_spill] sm:$0xff] }
 0x58f   :  { %v4509_v32 = vmul.f32 %v4500_v59, %v4452_v39  ;;  %v4412_v33 = vadd.f32 %v4408_v9, %v4308_v21  ;;  %v11951_v59 = vld [vmem:[#allocation63_spill] sm:$0xff]  ;;  %v11965_v9 = vld [vmem:[#allocation46_spill] sm:$0xff] }
 0x590   :  { %v4502_v1 = vpop.f32.mrf.mxu0  ;;  %v4458_v61 = vpop.f32.mrf.mxu1  ;;  %v11971_v21 = vld [vmem:[#allocation54_spill] sm:$0xff] }
 0x591   :  { %v4513_v12 = vadd.f32 %v4509_v32, %v4409_v54  ;;  %v4510_v47 = vmul.f32 %v4502_v1, %v4454_v20  ;;  %v10848_v20 = vcombine.high %v1147_v28, %v1151_v63  ;;  %v11953_v54 = vld [vmem:[#allocation36_spill] sm:$0xff]  ;;  %v11955_v32 = vld [vmem:[#allocation37_spill] sm:$0xff]  ;;  %v11958_v1 = vld [vmem:[#allocation42_spill] sm:$0xff] }
 0x592   :  { %v4504_v17 = vpop.f32.mrf.mxu0 }
 0x593   :  { %v4529_v40 = vadd.f32 %v4522_v10, %v4513_v12  ;;  %v4514_v49 = vadd.f32 %v4510_v47, %v4410_v19  ;;  %v4511_v55 = vmul.f32 %v4504_v17, %v4456_v24  ;;  %v11961_v19 = vld [vmem:[#allocation43_spill] sm:$0xff]  ;;  %v5099_v24 = vpop.permute.xlu0 %5098  ;;  %v11963_v47 = vld [vmem:[#allocation45_spill] sm:$0xff]  ;;  %v11966_v17 = vld [vmem:[#allocation50_spill] sm:$0xff] }
 0x594   :  { %v4506_v56 = vpop.f32.mrf.mxu0  ;;  %v11962_v12 = vld [vmem:[#allocation47_spill] sm:$0xff] }
 0x595   :  { %v4537_v27 = vmul.f32 0.70710677, %v4529_v40  ;;  %v4530_v38 = vadd.f32 %v4526_v0, %v4514_v49  ;;  %v4515_v60 = vadd.f32 %v4511_v55, %v4411_v34  ;;  %v4512_v51 = vmul.f32 %v4506_v56, %v4458_v61  ;;  %v11967_v34 = vld [vmem:[#allocation48_spill] sm:$0xff]  ;;  %v11970_v55 = vld [vmem:[#allocation53_spill] sm:$0xff]  ;;  %v11972_v56 = vld [vmem:[#allocation55_spill] sm:$0xff] }
 0x596   :  { %v4533_v57 = vmul.f32 0.5, %v4529_v40  ;;  %v11968_v40 = vld [vmem:[#allocation51_spill] sm:$0xff]  ;;  %v11969_v49 = vld [vmem:[#allocation52_spill] sm:$0xff]  ;;  %v11974_v61 = vld [vmem:[#allocation57_spill] sm:$0xff] }
 0x597   :  { %9341 = verf.f32 %v4537_v27  ;;  %v4538_v42 = vmul.f32 0.70710677, %v4530_v38  ;;  %v4531_v18 = vadd.f32 %v4522_v10, %v4515_v60  ;;  %v4516_v14 = vadd.f32 %v4512_v51, %v4412_v33  ;;  %v11973_v27 = vld [vmem:[#allocation56_spill] sm:$0xff]  ;;  %v11976_v60 = vld [vmem:[#allocation59_spill] sm:$0xff]  ;;  %v11978_v51 = vld [vmem:[#allocation61_spill] sm:$0xff] }
 0x598   :  { %v4534_v2 = vmul.f32 0.5, %v4530_v38  ;;  %v10860_v10 = vcombine.low %v1147_v28, %v1151_v63  ;;  %v11975_v38 = vld [vmem:[#allocation58_spill] sm:$0xff]  ;;  %v11977_v33 = vld [vmem:[#allocation60_spill] sm:$0xff] }
 0x599   :  { %v4539_v7 = vmul.f32 0.70710677, %v4531_v18  ;;  %9343 = verf.f32 %v4538_v42  ;;  %v4532_v23 = vadd.f32 %v4526_v0, %v4516_v14  ;;  %v4535_v16 = vmul.f32 0.5, %v4531_v18  ;;  %v11959_v0 = vld [vmem:[#allocation40_spill] sm:$0xff]  ;;  %v5486_v18 = vpop.permute.xlu0 %5485 }
 0x59b   :  { %9345 = verf.f32 %v4539_v7  ;;  %v4540_v48 = vmul.f32 0.70710677, %v4532_v23  ;;  %v4536_v58 = vmul.f32 0.5, %v4532_v23 }
 0x59d   :  { %9347 = verf.f32 %v4540_v48  ;;  %v5872_v7 = vpop.permute.xlu0 %5871  ;;  %v11979_v48 = vld [vmem:[#allocation35_spill] sm:$0xff] }
 0x5a4   :  { %v9342_v43 = vpop.eup %9341 }
 0x5a5   :  { %v4545_v30 = vadd.f32 1.0, %v9342_v43  ;;  %v11071_v43 = vpop.f32.mrf.mxu1 }
 0x5a6   :  { %v9344_v37 = vpop.eup %9343 }
 0x5a7   :  { %v4546_v39 = vadd.f32 1.0, %v9344_v37  ;;  %v4549_v6 = vmul.f32 %v4545_v30, %v4533_v57  ;;  %v11073_v37 = vpop.f32.mrf.mxu0  ;;  %v11079_v30 = vpop.f32.mrf.mxu1 }
 0x5a8   :  { %v9346_v46 = vpop.eup %9345 }
 0x5a9   :  { %v4547_v5 = vadd.f32 1.0, %v9346_v46  ;;  %v4550_v35 = vmul.f32 %v4546_v39, %v4534_v2  ;;  %v11081_v46 = vpop.f32.mrf.mxu0  ;;  %v11093_v57 = vpop.f32.mrf.mxu1 }
 0x5aa   :  { %v9348_v22 = vpop.eup %9347 }
 0x5ab   :  { %v4551_v44 = vmul.f32 %v4547_v5, %v4535_v16  ;;  %v4548_v36 = vadd.f32 1.0, %v9348_v22  ;;  %v11095_v16 = vpop.f32.mrf.mxu0  ;;  %v6641_v5 = vpop.permute.xlu0 %6640 }
 0x5ac   :  { %v11101_v39 = vpop.f32.mrf.mxu1 }
 0x5ad   :  { %v4553_v11 = vpack.c.bf16 %v4551_v44, %v4549_v6  ;;  %v4552_v8 = vmul.f32 %v4548_v36, %v4536_v58  ;;  %11980 = vst [vmem:[#allocation65_spill] sm:$0xff] %v11101_v39  ;;  %v11103_v3 = vpop.f32.mrf.mxu0 }
 0x5ae   :  { %11981 = vst [vmem:[#allocation68_spill] sm:$0xff] %v11103_v3  ;;  %v11113_v4 = vpop.f32.mrf.mxu1 }
 0x5af   :  { %5276 = vrot.lane.b32.xlu1 %v4553_v11, %s9705_s2  ;;  %8878 = vmatmul.mubr.msk.bf16.vlgmr.msra.gmra.mxu1 %vm223_vm0, %v4553_v11  ;;  %v10852_v15 = vpack.c.bf16 %v4552_v8, %v4550_v35  ;;  %v11115_v22 = vpop.f32.mrf.mxu0 }
 0x5b0   :  { %8879 = vmatmul.mubr.msk.bf16.vlgmr.msra.gmra.mxu0 %vm223_vm0, %v4553_v11  ;;  %4992 = vmatpush1.bf16.msra.mxu1 %v11950_v25  ;;  %v11121_v6 = vpop.f32.mrf.mxu1 }
 0x5b1   :  { %5035 = vmatpush1.bf16.msra.mxu0 %v11951_v59  ;;  %4993 = vmatprep.subr.bf16.mxu1 %v10846_v45  ;;  %v11123_v44 = vpop.f32.mrf.mxu0 }
 0x5b2   :  { %5036 = vmatprep.subr.bf16.mxu0 %v10848_v20  ;;  %5011 = vmatprep.mubr.bf16.mxu1 %v11952_v62  ;;  %v11133_v28 = vpop.f32.mrf.mxu1 }
 0x5b3   :  { %5662 = vrot.lane.b32.xlu1 %v4553_v11, %s9700_s9  ;;  %5054 = vmatprep.mubr.bf16.mxu0 %v11952_v62  ;;  %v11135_v63 = vpop.f32.mrf.mxu0 }
 0x5b4   :  { %4994 = vmatpush1.bf16.msra.mxu1 %v10856_v31  ;;  %v11141_v58 = vpop.f32.mrf.mxu1 }
 0x5b5   :  { %5037 = vmatpush1.bf16.msra.mxu0 %v10860_v10  ;;  %5115 = vmatprep.subr.bf16.mxu1 %v11953_v54  ;;  %11982 = vst [vmem:[#allocation70_spill] sm:$0xff] %v11141_v58  ;;  %v11143_v36 = vpop.f32.mrf.mxu0 }
 0x5b6   :  { %5158 = vmatprep.subr.bf16.mxu0 %v11954_v50  ;;  %11983 = vst [vmem:[#allocation64_spill] sm:$0xff] %v11143_v36 }
 0x5b7   :  { %6048 = vrot.lane.b32.xlu1 %v4553_v11, %s9691_s1  ;;  %8880 = vmatmul.mubr.msk.bf16.vlgmr.msra.gmra.mxu1 %vm223_vm0, %v4553_v11 }
 0x5b8   :  { %8881 = vmatmul.mubr.msk.bf16.vlgmr.msra.gmra.mxu0 %vm223_vm0, %v4553_v11  ;;  %5116 = vmatpush1.bf16.msra.mxu1 %v11955_v32 }
 0x5b9   :  { %5159 = vmatpush1.bf16.msra.mxu0 %v11956_v13  ;;  %5117 = vmatprep.subr.bf16.mxu1 %v11957_v26 }
 0x5ba   :  { %5160 = vmatprep.subr.bf16.mxu0 %v11958_v1  ;;  %5135 = vmatprep.mubr.bf16.mxu1 %v11952_v62 }
 0x5bb   :  { %6818 = vrot.lane.b32.xlu1 %v10852_v15, %s9705_s2  ;;  %5178 = vmatprep.mubr.bf16.mxu0 %v11952_v62 }
 0x5bc   :  { %5118 = vmatpush1.bf16.msra.mxu1 %v11959_v0 }
 0x5bd   :  { %5161 = vmatpush1.bf16.msra.mxu0 %v11960_v29  ;;  %5201 = vmatprep.subr.bf16.mxu1 %v11961_v19 }
 0x5be   :  { %5244 = vmatprep.subr.bf16.mxu0 %v11962_v12 }
 0x5bf   :  { %7204 = vrot.lane.b32.xlu1 %v10852_v15, %s9700_s9  ;;  %8882 = vmatmul.mubr.msk.bf16.vlgmr.msra.gmra.mxu1 %vm223_vm0, %v5099_v24 }
 0x5c0   :  { %8883 = vmatmul.mubr.msk.bf16.vlgmr.msra.gmra.mxu0 %vm223_vm0, %v5099_v24  ;;  %5202 = vmatpush1.bf16.msra.mxu1 %v11963_v47 }
 0x5c1   :  { %5245 = vmatpush1.bf16.msra.mxu0 %v11964_v52  ;;  %5203 = vmatprep.subr.bf16.mxu1 %v11965_v9 }
 0x5c2   :  { %5246 = vmatprep.subr.bf16.mxu0 %v11966_v17  ;;  %5221 = vmatprep.mubr.bf16.mxu1 %v11952_v62 }
 0x5c3   :  { %7590 = vrot.lane.b32.xlu1 %v10852_v15, %s9691_s1  ;;  %5264 = vmatprep.mubr.bf16.mxu0 %v11952_v62 }
 0x5c4   :  { %5204 = vmatpush1.bf16.msra.mxu1 %v11967_v34 }
 0x5c5   :  { %5247 = vmatpush1.bf16.msra.mxu0 %v11968_v40  ;;  %5293 = vmatprep.subr.bf16.mxu1 %v11969_v49 }
 0x5c6   :  { %5336 = vmatprep.subr.bf16.mxu0 %v11970_v55 }
 0x5c7   :  { %8884 = vmatmul.mubr.msk.bf16.vlgmr.msra.gmra.mxu1 %vm223_vm0, %v5099_v24 }
 0x5c8   :  { %8885 = vmatmul.mubr.msk.bf16.vlgmr.msra.gmra.mxu0 %vm223_vm0, %v5099_v24  ;;  %5294 = vmatpush1.bf16.msra.mxu1 %v11971_v21 }
 0x5c9   :  { %5337 = vmatpush1.bf16.msra.mxu0 %v11972_v56  ;;  %5295 = vmatprep.subr.bf16.mxu1 %v11973_v27 }
 0x5ca   :  { %5338 = vmatprep.subr.bf16.mxu0 %v11974_v61  ;;  %5313 = vmatprep.mubr.bf16.mxu1 %v11952_v62 }
 0x5cb   :  { %5356 = vmatprep.mubr.bf16.mxu0 %v11952_v62 }
 0x5cc   :  { %5296 = vmatpush1.bf16.msra.mxu1 %v11975_v38 }
 0x5cd   :  { %5339 = vmatpush1.bf16.msra.mxu0 %v11976_v60  ;;  %5379 = vmatprep.subr.bf16.mxu1 %v11977_v33 }
 0x5ce   :  { %5422 = vmatprep.subr.bf16.mxu0 %v11978_v51 }
 0x621   :  { %v5277_v42 = vpop.permute.xlu1 %5276 }
 0x622   :  { %8886 = vmatmul.mubr.msk.bf16.vlgmr.msra.gmra.mxu1 %vm223_vm0, %v5277_v42  ;;  %8887 = vmatmul.mubr.msk.bf16.vlgmr.msra.gmra.mxu0 %vm223_vm0, %v5277_v42 }
 0x623   :  { %5380 = vmatpush1.bf16.msra.mxu1 %v11950_v25  ;;  %5423 = vmatpush1.bf16.msra.mxu0 %v11951_v59 }
 0x624   :  { %5381 = vmatprep.subr.bf16.mxu1 %v10846_v45  ;;  %5424 = vmatprep.subr.bf16.mxu0 %v10848_v20 }
 0x625   :  { %5399 = vmatprep.mubr.bf16.mxu1 %v11952_v62  ;;  %5442 = vmatprep.mubr.bf16.mxu0 %v11952_v62  ;;  %v5663_v14 = vpop.permute.xlu1 %5662 }
 0x627   :  { %5382 = vmatpush1.bf16.msra.mxu1 %v10856_v31  ;;  %5425 = vmatpush1.bf16.msra.mxu0 %v10860_v10 }
 0x628   :  { %5502 = vmatprep.subr.bf16.mxu1 %v11953_v54  ;;  %5545 = vmatprep.subr.bf16.mxu0 %v11954_v50 }
 0x629   :  { %v6049_v23 = vpop.permute.xlu1 %6048 }
 0x62a   :  { %8888 = vmatmul.mubr.msk.bf16.vlgmr.msra.gmra.mxu1 %vm223_vm0, %v5277_v42  ;;  %8889 = vmatmul.mubr.msk.bf16.vlgmr.msra.gmra.mxu0 %vm223_vm0, %v5277_v42 }
 0x62b   :  { %5503 = vmatpush1.bf16.msra.mxu1 %v11955_v32  ;;  %5546 = vmatpush1.bf16.msra.mxu0 %v11956_v13 }
 0x62c   :  { %5504 = vmatprep.subr.bf16.mxu1 %v11957_v26  ;;  %5547 = vmatprep.subr.bf16.mxu0 %v11958_v1 }
 0x62d   :  { %5522 = vmatprep.mubr.bf16.mxu1 %v11952_v62  ;;  %5565 = vmatprep.mubr.bf16.mxu0 %v11952_v62  ;;  %v6819_v2 = vpop.permute.xlu1 %6818 }
 0x62f   :  { %5505 = vmatpush1.bf16.msra.mxu1 %v11959_v0  ;;  %5548 = vmatpush1.bf16.msra.mxu0 %v11960_v29 }
 0x630   :  { %5588 = vmatprep.subr.bf16.mxu1 %v11961_v19  ;;  %5631 = vmatprep.subr.bf16.mxu0 %v11962_v12 }
 0x631   :  { %v7205_v58 = vpop.permute.xlu1 %7204 }
 0x632   :  { %8890 = vmatmul.mubr.msk.bf16.vlgmr.msra.gmra.mxu1 %vm223_vm0, %v5486_v18  ;;  %8891 = vmatmul.mubr.msk.bf16.vlgmr.msra.gmra.mxu0 %vm223_vm0, %v5486_v18 }
 0x633   :  { %5589 = vmatpush1.bf16.msra.mxu1 %v11963_v47  ;;  %5632 = vmatpush1.bf16.msra.mxu0 %v11964_v52 }
 0x634   :  { %5590 = vmatprep.subr.bf16.mxu1 %v11965_v9  ;;  %5633 = vmatprep.subr.bf16.mxu0 %v11966_v17 }
 0x635   :  { %5608 = vmatprep.mubr.bf16.mxu1 %v11952_v62  ;;  %5651 = vmatprep.mubr.bf16.mxu0 %v11952_v62 }
 0x637   :  { %5591 = vmatpush1.bf16.msra.mxu1 %v11967_v34  ;;  %5634 = vmatpush1.bf16.msra.mxu0 %v11968_v40 }
 0x638   :  { %5679 = vmatprep.subr.bf16.mxu1 %v11969_v49  ;;  %5722 = vmatprep.subr.bf16.mxu0 %v11970_v55 }
 0x63a   :  { %8892 = vmatmul.mubr.msk.bf16.vlgmr.msra.gmra.mxu1 %vm223_vm0, %v5486_v18  ;;  %8893 = vmatmul.mubr.msk.bf16.vlgmr.msra.gmra.mxu0 %vm223_vm0, %v5486_v18 }
 0x63b   :  { %5680 = vmatpush1.bf16.msra.mxu1 %v11971_v21  ;;  %5723 = vmatpush1.bf16.msra.mxu0 %v11972_v56 }
 0x63c   :  { %5681 = vmatprep.subr.bf16.mxu1 %v11973_v27  ;;  %5724 = vmatprep.subr.bf16.mxu0 %v11974_v61 }
 0x63d   :  { %5699 = vmatprep.mubr.bf16.mxu1 %v11952_v62  ;;  %5742 = vmatprep.mubr.bf16.mxu0 %v11952_v62 }
 0x63f   :  { %5682 = vmatpush1.bf16.msra.mxu1 %v11975_v38  ;;  %5725 = vmatpush1.bf16.msra.mxu0 %v11976_v60 }
 0x640   :  { %5765 = vmatprep.subr.bf16.mxu1 %v11977_v33  ;;  %5808 = vmatprep.subr.bf16.mxu0 %v11978_v51 }
 0x642   :  { %8894 = vmatmul.mubr.msk.bf16.vlgmr.msra.gmra.mxu1 %vm223_vm0, %v5663_v14  ;;  %8895 = vmatmul.mubr.msk.bf16.vlgmr.msra.gmra.mxu0 %vm223_vm0, %v5663_v14 }
 0x643   :  { %5766 = vmatpush1.bf16.msra.mxu1 %v11950_v25  ;;  %5809 = vmatpush1.bf16.msra.mxu0 %v11951_v59 }
 0x644   :  { %5767 = vmatprep.subr.bf16.mxu1 %v10846_v45  ;;  %5810 = vmatprep.subr.bf16.mxu0 %v10848_v20 }
 0x645   :  { %5785 = vmatprep.mubr.bf16.mxu1 %v11952_v62  ;;  %5828 = vmatprep.mubr.bf16.mxu0 %v11952_v62 }
 0x647   :  { %5768 = vmatpush1.bf16.msra.mxu1 %v10856_v31  ;;  %5811 = vmatpush1.bf16.msra.mxu0 %v10860_v10 }
 0x648   :  { %5888 = vmatprep.subr.bf16.mxu1 %v11953_v54  ;;  %5931 = vmatprep.subr.bf16.mxu0 %v11954_v50 }
 0x64a   :  { %8896 = vmatmul.mubr.msk.bf16.vlgmr.msra.gmra.mxu1 %vm223_vm0, %v5663_v14  ;;  %8897 = vmatmul.mubr.msk.bf16.vlgmr.msra.gmra.mxu0 %vm223_vm0, %v5663_v14 }
 0x64b   :  { %5889 = vmatpush1.bf16.msra.mxu1 %v11955_v32  ;;  %5932 = vmatpush1.bf16.msra.mxu0 %v11956_v13 }
 0x64c   :  { %5890 = vmatprep.subr.bf16.mxu1 %v11957_v26  ;;  %5933 = vmatprep.subr.bf16.mxu0 %v11958_v1 }
 0x64d   :  { %5908 = vmatprep.mubr.bf16.mxu1 %v11952_v62  ;;  %5951 = vmatprep.mubr.bf16.mxu0 %v11952_v62 }
 0x64f   :  { %5891 = vmatpush1.bf16.msra.mxu1 %v11959_v0  ;;  %5934 = vmatpush1.bf16.msra.mxu0 %v11960_v29 }
 0x650   :  { %5974 = vmatprep.subr.bf16.mxu1 %v11961_v19  ;;  %6017 = vmatprep.subr.bf16.mxu0 %v11962_v12 }
 0x652   :  { %8898 = vmatmul.mubr.msk.bf16.vlgmr.msra.gmra.mxu1 %vm223_vm0, %v5872_v7  ;;  %8899 = vmatmul.mubr.msk.bf16.vlgmr.msra.gmra.mxu0 %vm223_vm0, %v5872_v7 }
 0x653   :  { %5975 = vmatpush1.bf16.msra.mxu1 %v11963_v47  ;;  %6018 = vmatpush1.bf16.msra.mxu0 %v11964_v52 }
 0x654   :  { %5976 = vmatprep.subr.bf16.mxu1 %v11965_v9  ;;  %6019 = vmatprep.subr.bf16.mxu0 %v11966_v17 }
 0x655   :  { %5994 = vmatprep.mubr.bf16.mxu1 %v11952_v62  ;;  %6037 = vmatprep.mubr.bf16.mxu0 %v11952_v62 }
 0x657   :  { %5977 = vmatpush1.bf16.msra.mxu1 %v11967_v34  ;;  %6020 = vmatpush1.bf16.msra.mxu0 %v11968_v40 }
 0x658   :  { %6065 = vmatprep.subr.bf16.mxu1 %v11969_v49  ;;  %6108 = vmatprep.subr.bf16.mxu0 %v11970_v55 }
 0x65a   :  { %8900 = vmatmul.mubr.msk.bf16.vlgmr.msra.gmra.mxu1 %vm223_vm0, %v5872_v7  ;;  %8901 = vmatmul.mubr.msk.bf16.vlgmr.msra.gmra.mxu0 %vm223_vm0, %v5872_v7  ;;  %v7028_v7 = vpop.permute.xlu0 %7027 }
 0x65b   :  { %6066 = vmatpush1.bf16.msra.mxu1 %v11971_v21  ;;  %6109 = vmatpush1.bf16.msra.mxu0 %v11972_v56 }
 0x65c   :  { %6067 = vmatprep.subr.bf16.mxu1 %v11973_v27  ;;  %6110 = vmatprep.subr.bf16.mxu0 %v11974_v61 }
 0x65d   :  { %6085 = vmatprep.mubr.bf16.mxu1 %v11952_v62  ;;  %6128 = vmatprep.mubr.bf16.mxu0 %v11952_v62 }
 0x65f   :  { %6068 = vmatpush1.bf16.msra.mxu1 %v11975_v38  ;;  %6111 = vmatpush1.bf16.msra.mxu0 %v11976_v60 }
 0x660   :  { %6151 = vmatprep.subr.bf16.mxu1 %v11977_v33  ;;  %6194 = vmatprep.subr.bf16.mxu0 %v11978_v51 }
 0x662   :  { %8902 = vmatmul.mubr.msk.bf16.vlgmr.msra.gmra.mxu1 %vm223_vm0, %v6049_v23  ;;  %8903 = vmatmul.mubr.msk.bf16.vlgmr.msra.gmra.mxu0 %vm223_vm0, %v6049_v23 }
 0x663   :  { %6152 = vmatpush1.bf16.msra.mxu1 %v11950_v25  ;;  %6195 = vmatpush1.bf16.msra.mxu0 %v11951_v59 }
 0x664   :  { %6153 = vmatprep.subr.bf16.mxu1 %v10846_v45  ;;  %6196 = vmatprep.subr.bf16.mxu0 %v10848_v20 }
 0x665   :  { %6171 = vmatprep.mubr.bf16.mxu1 %v11952_v62  ;;  %6214 = vmatprep.mubr.bf16.mxu0 %v11952_v62 }
 0x667   :  { %6154 = vmatpush1.bf16.msra.mxu1 %v10856_v31  ;;  %6197 = vmatpush1.bf16.msra.mxu0 %v10860_v10 }
 0x668   :  { %6272 = vmatprep.subr.bf16.mxu1 %v11953_v54  ;;  %6315 = vmatprep.subr.bf16.mxu0 %v11954_v50 }
 0x66a   :  { %8904 = vmatmul.mubr.msk.bf16.vlgmr.msra.gmra.mxu1 %vm223_vm0, %v6049_v23  ;;  %8905 = vmatmul.mubr.msk.bf16.vlgmr.msra.gmra.mxu0 %vm223_vm0, %v6049_v23 }
 0x66b   :  { %6273 = vmatpush1.bf16.msra.mxu1 %v11955_v32  ;;  %6316 = vmatpush1.bf16.msra.mxu0 %v11956_v13 }
 0x66c   :  { %6274 = vmatprep.subr.bf16.mxu1 %v11957_v26  ;;  %6317 = vmatprep.subr.bf16.mxu0 %v11958_v1 }
 0x66d   :  { %6292 = vmatprep.mubr.bf16.mxu1 %v11952_v62  ;;  %6335 = vmatprep.mubr.bf16.mxu0 %v11952_v62 }
 0x66f   :  { %6275 = vmatpush1.bf16.msra.mxu1 %v11959_v0  ;;  %6318 = vmatpush1.bf16.msra.mxu0 %v11960_v29  ;;  %v11149_v11 = vpop.f32.mrf.mxu1 }
 0x670   :  { %6358 = vmatprep.subr.bf16.mxu1 %v11961_v19  ;;  %6401 = vmatprep.subr.bf16.mxu0 %v11962_v12  ;;  %v11151_v35 = vpop.f32.mrf.mxu0 }
 0x671   :  { %v11159_v8 = vpop.f32.mrf.mxu1 }
 0x672   :  { %8906 = vmatmul.mubr.msk.bf16.vlgmr.msra.gmra.mxu1 %vm223_vm0, %v11979_v48  ;;  %8907 = vmatmul.mubr.msk.bf16.vlgmr.msra.gmra.mxu0 %vm223_vm0, %v11979_v48 }
 0x673   :  { %6359 = vmatpush1.bf16.msra.mxu1 %v11963_v47  ;;  %6402 = vmatpush1.bf16.msra.mxu0 %v11964_v52  ;;  %v11169_v24 = vpop.f32.mrf.mxu1 }
 0x674   :  { %6360 = vmatprep.subr.bf16.mxu1 %v11965_v9  ;;  %6403 = vmatprep.subr.bf16.mxu0 %v11966_v17 }
 0x675   :  { %6378 = vmatprep.mubr.bf16.mxu1 %v11952_v62  ;;  %6421 = vmatprep.mubr.bf16.mxu0 %v11952_v62  ;;  %v11179_v18 = vpop.f32.mrf.mxu1 }
 0x676   :  { %11984 = vst [vmem:[#allocation72_spill] sm:$0xff] %v11179_v18 }
 0x677   :  { %6361 = vmatpush1.bf16.msra.mxu1 %v11967_v34  ;;  %6404 = vmatpush1.bf16.msra.mxu0 %v11968_v40  ;;  %v11189_v23 = vpop.f32.mrf.mxu1 }
 0x678   :  { %6447 = vmatprep.subr.bf16.mxu1 %v11969_v49  ;;  %6490 = vmatprep.subr.bf16.mxu0 %v11970_v55 }
 0x67a   :  { %8908 = vmatmul.mubr.msk.bf16.vlgmr.msra.gmra.mxu1 %vm223_vm0, %v11979_v48  ;;  %8909 = vmatmul.mubr.msk.bf16.vlgmr.msra.gmra.mxu0 %vm223_vm0, %v11979_v48 }
 0x67b   :  { %6448 = vmatpush1.bf16.msra.mxu1 %v11971_v21  ;;  %6491 = vmatpush1.bf16.msra.mxu0 %v11972_v56 }
 0x67c   :  { %6449 = vmatprep.subr.bf16.mxu1 %v11973_v27  ;;  %6492 = vmatprep.subr.bf16.mxu0 %v11974_v61 }
 0x67d   :  { %6467 = vmatprep.mubr.bf16.mxu1 %v11952_v62  ;;  %6510 = vmatprep.mubr.bf16.mxu0 %v11952_v62 }
 0x67f   :  { %6450 = vmatpush1.bf16.msra.mxu1 %v11975_v38  ;;  %6493 = vmatpush1.bf16.msra.mxu0 %v11976_v60 }
 0x680   :  { %6533 = vmatprep.subr.bf16.mxu1 %v11977_v33  ;;  %6576 = vmatprep.subr.bf16.mxu0 %v11978_v51 }
 0x682   :  { %8910 = vmatmul.mubr.msk.bf16.vlgmr.msra.gmra.mxu1 %vm223_vm0, %v10852_v15  ;;  %8911 = vmatmul.mubr.msk.bf16.vlgmr.msra.gmra.mxu0 %vm223_vm0, %v10852_v15 }
 0x683   :  { %6534 = vmatpush1.bf16.msra.mxu1 %v11950_v25  ;;  %6577 = vmatpush1.bf16.msra.mxu0 %v11951_v59 }
 0x684   :  { %6535 = vmatprep.subr.bf16.mxu1 %v10846_v45  ;;  %6578 = vmatprep.subr.bf16.mxu0 %v10848_v20 }
 0x685   :  { %6553 = vmatprep.mubr.bf16.mxu1 %v11952_v62  ;;  %6596 = vmatprep.mubr.bf16.mxu0 %v11952_v62 }
 0x687   :  { %6536 = vmatpush1.bf16.msra.mxu1 %v10856_v31  ;;  %6579 = vmatpush1.bf16.msra.mxu0 %v10860_v10 }
 0x688   :  { %6657 = vmatprep.subr.bf16.mxu1 %v11953_v54  ;;  %6700 = vmatprep.subr.bf16.mxu0 %v11954_v50 }
 0x68a   :  { %8912 = vmatmul.mubr.msk.bf16.vlgmr.msra.gmra.mxu1 %vm223_vm0, %v10852_v15  ;;  %8913 = vmatmul.mubr.msk.bf16.vlgmr.msra.gmra.mxu0 %vm223_vm0, %v10852_v15  ;;  %v11161_v15 = vpop.f32.mrf.mxu0 }
 0x68b   :  { %6658 = vmatpush1.bf16.msra.mxu1 %v11955_v32  ;;  %6701 = vmatpush1.bf16.msra.mxu0 %v11956_v13 }
 0x68c   :  { %6659 = vmatprep.subr.bf16.mxu1 %v11957_v26  ;;  %6702 = vmatprep.subr.bf16.mxu0 %v11958_v1  ;;  %v11171_v42 = vpop.f32.mrf.mxu0 }
 0x68d   :  { %6677 = vmatprep.mubr.bf16.mxu1 %v11952_v62  ;;  %6720 = vmatprep.mubr.bf16.mxu0 %v11952_v62 }
 0x68e   :  { %v11181_v14 = vpop.f32.mrf.mxu0 }
 0x68f   :  { %6660 = vmatpush1.bf16.msra.mxu1 %v11959_v0  ;;  %6703 = vmatpush1.bf16.msra.mxu0 %v11960_v29  ;;  %11985 = vst [vmem:[#allocation75_spill] sm:$0xff] %v11181_v14 }
 0x690   :  { %6743 = vmatprep.subr.bf16.mxu1 %v11961_v19  ;;  %6786 = vmatprep.subr.bf16.mxu0 %v11962_v12  ;;  %v11191_v48 = vpop.f32.mrf.mxu0 }
 0x692   :  { %8914 = vmatmul.mubr.msk.bf16.vlgmr.msra.gmra.mxu1 %vm223_vm0, %v6641_v5  ;;  %8915 = vmatmul.mubr.msk.bf16.vlgmr.msra.gmra.mxu0 %vm223_vm0, %v6641_v5 }
 0x693   :  { %6744 = vmatpush1.bf16.msra.mxu1 %v11963_v47  ;;  %6787 = vmatpush1.bf16.msra.mxu0 %v11964_v52 }
 0x694   :  { %6745 = vmatprep.subr.bf16.mxu1 %v11965_v9  ;;  %6788 = vmatprep.subr.bf16.mxu0 %v11966_v17 }
 0x695   :  { %6763 = vmatprep.mubr.bf16.mxu1 %v11952_v62  ;;  %6806 = vmatprep.mubr.bf16.mxu0 %v11952_v62 }
 0x697   :  { %6746 = vmatpush1.bf16.msra.mxu1 %v11967_v34  ;;  %6789 = vmatpush1.bf16.msra.mxu0 %v11968_v40 }
 0x698   :  { %6835 = vmatprep.subr.bf16.mxu1 %v11969_v49  ;;  %6878 = vmatprep.subr.bf16.mxu0 %v11970_v55 }
 0x69a   :  { %8916 = vmatmul.mubr.msk.bf16.vlgmr.msra.gmra.mxu1 %vm223_vm0, %v6641_v5  ;;  %8917 = vmatmul.mubr.msk.bf16.vlgmr.msra.gmra.mxu0 %vm223_vm0, %v6641_v5  ;;  %v11199_v5 = vpop.f32.mrf.mxu1 }
 0x69b   :  { %6836 = vmatpush1.bf16.msra.mxu1 %v11971_v21  ;;  %6879 = vmatpush1.bf16.msra.mxu0 %v11972_v56 }
 0x69c   :  { %6837 = vmatprep.subr.bf16.mxu1 %v11973_v27  ;;  %6880 = vmatprep.subr.bf16.mxu0 %v11974_v61  ;;  %v11209_v53 = vpop.f32.mrf.mxu1 }
 0x69d   :  { %6855 = vmatprep.mubr.bf16.mxu1 %v11952_v62  ;;  %6898 = vmatprep.mubr.bf16.mxu0 %v11952_v62 }
 0x69f   :  { %6838 = vmatpush1.bf16.msra.mxu1 %v11975_v38  ;;  %6881 = vmatpush1.bf16.msra.mxu0 %v11976_v60 }
 0x6a0   :  { %6921 = vmatprep.subr.bf16.mxu1 %v11977_v33  ;;  %6964 = vmatprep.subr.bf16.mxu0 %v11978_v51 }
 0x6a2   :  { %8918 = vmatmul.mubr.msk.bf16.vlgmr.msra.gmra.mxu1 %vm223_vm0, %v6819_v2  ;;  %8919 = vmatmul.mubr.msk.bf16.vlgmr.msra.gmra.mxu0 %vm223_vm0, %v6819_v2 }
 0x6a3   :  { %6922 = vmatpush1.bf16.msra.mxu1 %v11950_v25  ;;  %6965 = vmatpush1.bf16.msra.mxu0 %v11951_v59 }
 0x6a4   :  { %6923 = vmatprep.subr.bf16.mxu1 %v10846_v45  ;;  %6966 = vmatprep.subr.bf16.mxu0 %v10848_v20 }
 0x6a5   :  { %6941 = vmatprep.mubr.bf16.mxu1 %v11952_v62  ;;  %6984 = vmatprep.mubr.bf16.mxu0 %v11952_v62 }
 0x6a7   :  { %6924 = vmatpush1.bf16.msra.mxu1 %v10856_v31  ;;  %6967 = vmatpush1.bf16.msra.mxu0 %v10860_v10 }
 0x6a8   :  { %7044 = vmatprep.subr.bf16.mxu1 %v11953_v54  ;;  %7087 = vmatprep.subr.bf16.mxu0 %v11954_v50 }
 0x6aa   :  { %8920 = vmatmul.mubr.msk.bf16.vlgmr.msra.gmra.mxu1 %vm223_vm0, %v6819_v2  ;;  %8921 = vmatmul.mubr.msk.bf16.vlgmr.msra.gmra.mxu0 %vm223_vm0, %v6819_v2  ;;  %v11201_v2 = vpop.f32.mrf.mxu0 }
 0x6ab   :  { %7045 = vmatpush1.bf16.msra.mxu1 %v11955_v32  ;;  %7088 = vmatpush1.bf16.msra.mxu0 %v11956_v13 }
 0x6ac   :  { %7046 = vmatprep.subr.bf16.mxu1 %v11957_v26  ;;  %7089 = vmatprep.subr.bf16.mxu0 %v11958_v1  ;;  %v11211_v41 = vpop.f32.mrf.mxu0 }
 0x6ad   :  { %7064 = vmatprep.mubr.bf16.mxu1 %v11952_v62  ;;  %7107 = vmatprep.mubr.bf16.mxu0 %v11952_v62 }
 0x6ae   :  { %v11221_v36 = vpop.f32.mrf.mxu0 }
 0x6af   :  { %7047 = vmatpush1.bf16.msra.mxu1 %v11959_v0  ;;  %7090 = vmatpush1.bf16.msra.mxu0 %v11960_v29  ;;  %11987 = vst [vmem:[#allocation67_spill] sm:$0xff] %v11221_v36 }
 0x6b0   :  { %7130 = vmatprep.subr.bf16.mxu1 %v11961_v19  ;;  %7173 = vmatprep.subr.bf16.mxu0 %v11962_v12  ;;  %v11231_v3 = vpop.f32.mrf.mxu0 }
 0x6b2   :  { %8922 = vmatmul.mubr.msk.bf16.vlgmr.msra.gmra.mxu1 %vm223_vm0, %v7028_v7  ;;  %8923 = vmatmul.mubr.msk.bf16.vlgmr.msra.gmra.mxu0 %vm223_vm0, %v7028_v7 }
 0x6b3   :  { %7131 = vmatpush1.bf16.msra.mxu1 %v11963_v47  ;;  %7174 = vmatpush1.bf16.msra.mxu0 %v11964_v52 }
 0x6b4   :  { %7132 = vmatprep.subr.bf16.mxu1 %v11965_v9  ;;  %7175 = vmatprep.subr.bf16.mxu0 %v11966_v17 }
 0x6b5   :  { %7150 = vmatprep.mubr.bf16.mxu1 %v11952_v62  ;;  %7193 = vmatprep.mubr.bf16.mxu0 %v11952_v62 }
 0x6b7   :  { %7133 = vmatpush1.bf16.msra.mxu1 %v11967_v34  ;;  %7176 = vmatpush1.bf16.msra.mxu0 %v11968_v40 }
 0x6b8   :  { %7221 = vmatprep.subr.bf16.mxu1 %v11969_v49  ;;  %7264 = vmatprep.subr.bf16.mxu0 %v11970_v55 }
 0x6ba   :  { %8924 = vmatmul.mubr.msk.bf16.vlgmr.msra.gmra.mxu1 %vm223_vm0, %v7028_v7  ;;  %8925 = vmatmul.mubr.msk.bf16.vlgmr.msra.gmra.mxu0 %vm223_vm0, %v7028_v7  ;;  %v11219_v7 = vpop.f32.mrf.mxu1 }
 0x6bb   :  { %7222 = vmatpush1.bf16.msra.mxu1 %v11971_v21  ;;  %7265 = vmatpush1.bf16.msra.mxu0 %v11972_v56  ;;  %11986 = vst [vmem:[#allocation66_spill] sm:$0xff] %v11219_v7  ;;  %v11241_v7 = vpop.f32.mrf.mxu0 }
 0x6bc   :  { %7223 = vmatprep.subr.bf16.mxu1 %v11973_v27  ;;  %7266 = vmatprep.subr.bf16.mxu0 %v11974_v61  ;;  %v11229_v14 = vpop.f32.mrf.mxu1 }
 0x6bd   :  { %7241 = vmatprep.mubr.bf16.mxu1 %v11952_v62  ;;  %7284 = vmatprep.mubr.bf16.mxu0 %v11952_v62  ;;  %v11251_v39 = vpop.f32.mrf.mxu0 }
 0x6be   :  { %v11239_v36 = vpop.f32.mrf.mxu1 }
 0x6bf   :  { %7224 = vmatpush1.bf16.msra.mxu1 %v11975_v38  ;;  %7267 = vmatpush1.bf16.msra.mxu0 %v11976_v60 }
 0x6c0   :  { %7307 = vmatprep.subr.bf16.mxu1 %v11977_v33  ;;  %7350 = vmatprep.subr.bf16.mxu0 %v11978_v51  ;;  %v11249_v18 = vpop.f32.mrf.mxu1 }
 0x6c2   :  { %8926 = vmatmul.mubr.msk.bf16.vlgmr.msra.gmra.mxu1 %vm223_vm0, %v7205_v58  ;;  %8927 = vmatmul.mubr.msk.bf16.vlgmr.msra.gmra.mxu0 %vm223_vm0, %v7205_v58 }
 0x6c3   :  { %7308 = vmatpush1.bf16.msra.mxu1 %v11950_v25  ;;  %7351 = vmatpush1.bf16.msra.mxu0 %v11951_v59 }
 0x6c4   :  { %7309 = vmatprep.subr.bf16.mxu1 %v10846_v45  ;;  %7352 = vmatprep.subr.bf16.mxu0 %v10848_v20 }
 0x6c5   :  { %7327 = vmatprep.mubr.bf16.mxu1 %v11952_v62  ;;  %7370 = vmatprep.mubr.bf16.mxu0 %v11952_v62 }
 0x6c7   :  { %7310 = vmatpush1.bf16.msra.mxu1 %v10856_v31  ;;  %7353 = vmatpush1.bf16.msra.mxu0 %v10860_v10 }
 0x6c8   :  { %7430 = vmatprep.subr.bf16.mxu1 %v11953_v54  ;;  %7473 = vmatprep.subr.bf16.mxu0 %v11954_v50  ;;  %v11259_v54 = vpop.f32.mrf.mxu1  ;;  %v11261_v50 = vpop.f32.mrf.mxu0 }
 0x6ca   :  { %8928 = vmatmul.mubr.msk.bf16.vlgmr.msra.gmra.mxu1 %vm223_vm0, %v7205_v58  ;;  %8929 = vmatmul.mubr.msk.bf16.vlgmr.msra.gmra.mxu0 %vm223_vm0, %v7205_v58 }
 0x6cb   :  { %7431 = vmatpush1.bf16.msra.mxu1 %v11955_v32  ;;  %7474 = vmatpush1.bf16.msra.mxu0 %v11956_v13  ;;  %v7414_v32 = vpop.permute.xlu0 %7413  ;;  %v11269_v13 = vpop.f32.mrf.mxu1 }
 0x6cc   :  { %7432 = vmatprep.subr.bf16.mxu1 %v11957_v26  ;;  %7475 = vmatprep.subr.bf16.mxu0 %v11958_v1  ;;  %v11271_v26 = vpop.f32.mrf.mxu0 }
 0x6cd   :  { %7450 = vmatprep.mubr.bf16.mxu1 %v11952_v62  ;;  %7493 = vmatprep.mubr.bf16.mxu0 %v11952_v62  ;;  %v11279_v1 = vpop.f32.mrf.mxu1 }
 0x6cf   :  { %7433 = vmatpush1.bf16.msra.mxu1 %v11959_v0  ;;  %7476 = vmatpush1.bf16.msra.mxu0 %v11960_v29  ;;  %v11281_v0 = vpop.f32.mrf.mxu0  ;;  %v11289_v29 = vpop.f32.mrf.mxu1 }
 0x6d0   :  { %7516 = vmatprep.subr.bf16.mxu1 %v11961_v19  ;;  %7559 = vmatprep.subr.bf16.mxu0 %v11962_v12 }
 0x6d1   :  { %v11291_v19 = vpop.f32.mrf.mxu0  ;;  %v11299_v12 = vpop.f32.mrf.mxu1 }
 0x6d2   :  { %8930 = vmatmul.mubr.msk.bf16.vlgmr.msra.gmra.mxu1 %vm223_vm0, %v7414_v32  ;;  %8931 = vmatmul.mubr.msk.bf16.vlgmr.msra.gmra.mxu0 %vm223_vm0, %v7414_v32 }
 0x6d3   :  { %7517 = vmatpush1.bf16.msra.mxu1 %v11963_v47  ;;  %7560 = vmatpush1.bf16.msra.mxu0 %v11964_v52  ;;  %v11301_v47 = vpop.f32.mrf.mxu0  ;;  %v7591_v52 = vpop.permute.xlu1 %7590 }
 0x6d4   :  { %7518 = vmatprep.subr.bf16.mxu1 %v11965_v9  ;;  %7561 = vmatprep.subr.bf16.mxu0 %v11966_v17  ;;  %v5065_v9 = vmul.f32 %v11149_v11, %v11071_v43  ;;  %v5069_v11 = vmul.f32 %v11189_v23, %v11113_v4  ;;  %v5079_v23 = vmul.f32 %v11211_v41, %v11135_v63 }
 0x6d5   :  { %7536 = vmatprep.mubr.bf16.mxu1 %v11952_v62  ;;  %7579 = vmatprep.mubr.bf16.mxu0 %v11952_v62 }
 0x6d7   :  { %7519 = vmatpush1.bf16.msra.mxu1 %v11967_v34  ;;  %7562 = vmatpush1.bf16.msra.mxu0 %v11968_v40  ;;  %v5067_v40 = vmul.f32 %v11151_v35, %v11073_v37  ;;  %v5070_v35 = vmul.f32 %v11199_v5, %v11121_v6 }
 0x6d8   :  { %7607 = vmatprep.subr.bf16.mxu1 %v11969_v49  ;;  %7650 = vmatprep.subr.bf16.mxu0 %v11970_v55 }
 0x6da   :  { %8932 = vmatmul.mubr.msk.bf16.vlgmr.msra.gmra.mxu1 %vm223_vm0, %v7414_v32  ;;  %8933 = vmatmul.mubr.msk.bf16.vlgmr.msra.gmra.mxu0 %vm223_vm0, %v7414_v32 }
 0x6db   :  { %7608 = vmatpush1.bf16.msra.mxu1 %v11971_v21  ;;  %7651 = vmatpush1.bf16.msra.mxu0 %v11972_v56  ;;  %v5066_v21 = vmul.f32 %v11159_v8, %v11079_v30  ;;  %v5068_v56 = vmul.f32 %v11161_v15, %v11081_v46  ;;  %v5072_v8 = vmul.f32 %v11201_v2, %v11123_v44 }
 0x6dc   :  { %7609 = vmatprep.subr.bf16.mxu1 %v11973_v27  ;;  %7652 = vmatprep.subr.bf16.mxu0 %v11974_v61 }
 0x6dd   :  { %7627 = vmatprep.mubr.bf16.mxu1 %v11952_v62  ;;  %7670 = vmatprep.mubr.bf16.mxu0 %v11952_v62 }
 0x6df   :  { %7610 = vmatpush1.bf16.msra.mxu1 %v11975_v38  ;;  %7653 = vmatpush1.bf16.msra.mxu0 %v11976_v60 }
 0x6e0   :  { %7693 = vmatprep.subr.bf16.mxu1 %v11977_v33  ;;  %7736 = vmatprep.subr.bf16.mxu0 %v11978_v51  ;;  %v5073_v33 = vmul.f32 %v11169_v24, %v11093_v57  ;;  %v5075_v51 = vmul.f32 %v11171_v42, %v11095_v16 }
 0x6e2   :  { %v5315_v17 = vpop.f32.mrf.mxu1  ;;  %v5358_v34 = vpop.f32.mrf.mxu0  ;;  %8934 = vmatmul.mubr.msk.bf16.vlgmr.msra.gmra.mxu1 %vm223_vm0, %v7591_v52  ;;  %8935 = vmatmul.mubr.msk.bf16.vlgmr.msra.gmra.mxu0 %vm223_vm0, %v7591_v52 }
 0x6e3   :  { %v5453_v49 = vmul.f32 %v5315_v17, %v11229_v14  ;;  %v5455_v55 = vmul.f32 %v5358_v34, %v11231_v3  ;;  %7694 = vmatpush1.bf16.msra.mxu1 %v11950_v25  ;;  %7737 = vmatpush1.bf16.msra.mxu0 %v11951_v59  ;;  %v5077_v14 = vmul.f32 %v11209_v53, %v11133_v28 }
 0x6e4   :  { %v5317_v27 = vpop.f32.mrf.mxu1  ;;  %v5360_v61 = vpop.f32.mrf.mxu0  ;;  %7695 = vmatprep.subr.bf16.mxu1 %v10846_v45  ;;  %7738 = vmatprep.subr.bf16.mxu0 %v10848_v20 }
 0x6e5   :  { %v11321_v38 = vadd.f32 %v5453_v49, %v5065_v9  ;;  %v11323_v60 = vadd.f32 %v5455_v55, %v5067_v40  ;;  %v5454_v25 = vmul.f32 %v5317_v27, %v11239_v36  ;;  %v5456_v59 = vmul.f32 %v5360_v61, %v11241_v7  ;;  %7713 = vmatprep.mubr.bf16.mxu1 %v11952_v62 }
 0x6e6   :  { %v5319_v43 = vpop.f32.mrf.mxu1  ;;  %v5362_v45 = vpop.f32.mrf.mxu0  ;;  %7756 = vmatprep.mubr.bf16.mxu0 %v11952_v62 }
 0x6e7   :  { %v11333_v20 = vadd.f32 %v5454_v25, %v5066_v21  ;;  %v11335_v37 = vadd.f32 %v5456_v59, %v5068_v56  ;;  %v5461_v30 = vmul.f32 %v5319_v43, %v11249_v18  ;;  %v5463_v46 = vmul.f32 %v5362_v45, %v11251_v39  ;;  %7696 = vmatpush1.bf16.msra.mxu1 %v10856_v31 }
 0x6e8   :  { %7739 = vmatpush1.bf16.msra.mxu0 %v10860_v10  ;;  %v5321_v57 = vpop.f32.mrf.mxu1  ;;  %v5364_v3 = vpop.f32.mrf.mxu0  ;;  %v5071_v39 = vmul.f32 %v11191_v48, %v11115_v22 }
 0x6e9   :  { %v11341_v58 = vadd.f32 %v5461_v30, %v5073_v33  ;;  %v11343_v16 = vadd.f32 %v5463_v46, %v5075_v51  ;;  %v5462_v33 = vmul.f32 %v5321_v57, %v11259_v54  ;;  %v5464_v51 = vmul.f32 %v5364_v3, %v11261_v50 }
 0x6ea   :  { %v5401_v36 = vpop.f32.mrf.mxu1  ;;  %v5444_v62 = vpop.f32.mrf.mxu0  ;;  %8936 = vmatmul.mubr.msk.bf16.vlgmr.msra.gmra.mxu1 %vm223_vm0, %v7591_v52 }
 0x6eb   :  { %v5457_v31 = vmul.f32 %v5401_v36, %v11269_v13  ;;  %v5459_v10 = vmul.f32 %v5444_v62, %v11271_v26  ;;  %8937 = vmatmul.mubr.msk.bf16.vlgmr.msra.gmra.mxu0 %vm223_vm0, %v7591_v52 }
 0x6ec   :  { %v5403_v15 = vpop.f32.mrf.mxu1  ;;  %v5446_v24 = vpop.f32.mrf.mxu0 }
 0x6ed   :  { %v11357_v42 = vadd.f32 %v5457_v31, %v5069_v11  ;;  %v11359_v4 = vadd.f32 %v5459_v10, %v5071_v39  ;;  %v5458_v22 = vmul.f32 %v5403_v15, %v11279_v1  ;;  %v5460_v18 = vmul.f32 %v5446_v24, %v11281_v0  ;;  %v11988_v11 = vld [vmem:[#allocation65_spill] sm:$0xff]  ;;  %v11989_v39 = vld [vmem:[#allocation72_spill] sm:$0xff] }
 0x6ee   :  { %v5405_v6 = vpop.f32.mrf.mxu1  ;;  %v5448_v48 = vpop.f32.mrf.mxu0  ;;  %v5074_v31 = vmul.f32 %v11989_v39, %v11988_v11  ;;  %v11990_v10 = vld [vmem:[#allocation68_spill] sm:$0xff] }
 0x6ef   :  { %v11367_v5 = vadd.f32 %v5458_v22, %v5070_v35  ;;  %v11369_v44 = vadd.f32 %v5460_v18, %v5072_v8  ;;  %v5465_v2 = vmul.f32 %v5405_v6, %v11289_v29  ;;  %v5467_v7 = vmul.f32 %v5448_v48, %v11291_v19  ;;  %v11991_v35 = vld [vmem:[#allocation75_spill] sm:$0xff] }
 0x6f0   :  { %v5407_v32 = vpop.f32.mrf.mxu1  ;;  %v5450_v13 = vpop.f32.mrf.mxu0  ;;  %v5076_v8 = vmul.f32 %v11991_v35, %v11990_v10 }
 0x6f1   :  { %v11373_v26 = vadd.f32 %v5465_v2, %v5077_v14  ;;  %v11375_v1 = vadd.f32 %v5467_v7, %v5079_v23 }
 0x6f2   :  { %v5524_v53 = vpop.f32.mrf.mxu1  ;;  %v5567_v28 = vpop.f32.mrf.mxu0  ;;  %v5480_v24 = vadd.f32 %v5464_v51, %v5076_v8 }
 0x6f4   :  { %v5526_v0 = vpop.f32.mrf.mxu1  ;;  %v5569_v41 = vpop.f32.mrf.mxu0 }
 0x6f6   :  { %v5528_v63 = vpop.f32.mrf.mxu1  ;;  %v5571_v52 = vpop.f32.mrf.mxu0 }
 0x6f8   :  { %v5530_v9 = vpop.f32.mrf.mxu1  ;;  %v5573_v17 = vpop.f32.mrf.mxu0 }
 0x6fa   :  { %v5610_v34 = vpop.f32.mrf.mxu1  ;;  %v5653_v40 = vpop.f32.mrf.mxu0 }
 0x6fc   :  { %v5612_v49 = vpop.f32.mrf.mxu1  ;;  %v5655_v29 = vpop.f32.mrf.mxu0 }
 0x6fe   :  { %v5614_v55 = vpop.f32.mrf.mxu1  ;;  %v5657_v19 = vpop.f32.mrf.mxu0 }
 0x700   :  { %v5616_v21 = vpop.f32.mrf.mxu1  ;;  %v5659_v56 = vpop.f32.mrf.mxu0 }
 0x702   :  { %v5701_v27 = vpop.f32.mrf.mxu1  ;;  %v5744_v61 = vpop.f32.mrf.mxu0 }
 0x703   :  { %v5839_v25 = vmul.f32 %v5701_v27, %v5524_v53  ;;  %v5841_v59 = vmul.f32 %v5744_v61, %v5567_v28  ;;  %v11992_v27 = vld [vmem:[#allocation70_spill] sm:$0xff] }
 0x704   :  { %v5703_v43 = vpop.f32.mrf.mxu1  ;;  %v5746_v45 = vpop.f32.mrf.mxu0  ;;  %v11993_v61 = vld [vmem:[#allocation66_spill] sm:$0xff] }
 0x705   :  { %v11380_v30 = vadd.f32 %v5839_v25, %v11321_v38  ;;  %v11383_v46 = vadd.f32 %v5841_v59, %v11323_v60  ;;  %v5840_v36 = vmul.f32 %v5703_v43, %v5526_v0  ;;  %v5842_v62 = vmul.f32 %v5746_v45, %v5569_v41  ;;  %v11994_v59 = vld [vmem:[#allocation64_spill] sm:$0xff] }
 0x706   :  { %v5705_v15 = vpop.f32.mrf.mxu1  ;;  %v5748_v54 = vpop.f32.mrf.mxu0  ;;  %v5478_v60 = vadd.f32 %v5462_v33, %v5074_v31  ;;  %v5466_v0 = vmul.f32 %v5407_v32, %v11299_v12  ;;  %v5468_v41 = vmul.f32 %v5450_v13, %v11301_v47  ;;  %v5078_v25 = vmul.f32 %v11993_v61, %v11992_v27 }
 0x707   :  { %v11390_v50 = vadd.f32 %v5840_v36, %v11333_v20  ;;  %v11393_v57 = vadd.f32 %v5842_v62, %v11335_v37  ;;  %v5847_v38 = vmul.f32 %v5705_v15, %v5528_v63  ;;  %v5849_v3 = vmul.f32 %v5748_v54, %v5571_v52 }
 0x708   :  { %v5707_v22 = vpop.f32.mrf.mxu1  ;;  %v5750_v18 = vpop.f32.mrf.mxu0 }
 0x709   :  { %v11396_v14 = vadd.f32 %v5847_v38, %v11341_v58  ;;  %v11399_v23 = vadd.f32 %v5849_v3, %v11343_v16  ;;  %v5848_v6 = vmul.f32 %v5707_v22, %v5530_v9  ;;  %v5850_v48 = vmul.f32 %v5750_v18, %v5573_v17 }
 0x70a   :  { %v5787_v2 = vpop.f32.mrf.mxu1  ;;  %v5830_v20 = vpop.f32.mrf.mxu0 }
 0x70b   :  { %v11401_v7 = vadd.f32 %v5848_v6, %v5478_v60  ;;  %v11403_v37 = vadd.f32 %v5850_v48, %v5480_v24  ;;  %v5843_v53 = vmul.f32 %v5787_v2, %v5610_v34  ;;  %v5845_v28 = vmul.f32 %v5830_v20, %v5653_v40  ;;  %v11995_v34 = vld [vmem:[#allocation67_spill] sm:$0xff] }
 0x70c   :  { %v5789_v63 = vpop.f32.mrf.mxu1  ;;  %v5832_v58 = vpop.f32.mrf.mxu0  ;;  %v5080_v40 = vmul.f32 %v11995_v34, %v11994_v59 }
 0x70d   :  { %v11408_v52 = vadd.f32 %v5843_v53, %v11357_v42  ;;  %v11411_v16 = vadd.f32 %v5845_v28, %v11359_v4  ;;  %v5844_v9 = vmul.f32 %v5789_v63, %v5612_v49  ;;  %v5846_v17 = vmul.f32 %v5832_v58, %v5655_v29 }
 0x70e   :  { %v5791_v33 = vpop.f32.mrf.mxu1  ;;  %v5834_v12 = vpop.f32.mrf.mxu0  ;;  %v5482_v4 = vadd.f32 %v5466_v0, %v5078_v25  ;;  %v5484_v51 = vadd.f32 %v5468_v41, %v5080_v40  ;;  %v9273_v0 = vld [vmem:[#allocation22 + $0x78] sm:$0xff]  }
 0x70f   :  { %v11418_v47 = vadd.f32 %v5844_v9, %v11367_v5  ;;  %v11421_v32 = vadd.f32 %v5846_v17, %v11369_v44  ;;  %v5851_v42 = vmul.f32 %v5791_v33, %v5614_v55  ;;  %v5853_v13 = vmul.f32 %v5834_v12, %v5657_v19  ;;  %v9274_v41 = vld [vmem:[#allocation22 + $0xf8] sm:$0xff]   ;;  %9009 = vmatprep.subr.bf16.mxu1 %v9273_v0  ;;  %v9288_v0 = vld [vmem:[#allocation22 + $0xa0] sm:$0xff]  }
 0x710   :  { %v5793_v49 = vpop.f32.mrf.mxu1  ;;  %v5836_v29 = vpop.f32.mrf.mxu0  ;;  %v9276_v25 = vld [vmem:[#allocation22 + $0xb8] sm:$0xff]   ;;  %9031 = vmatprep.subr.bf16.mxu0 %v9274_v41 }
 0x711   :  { %v11424_v43 = vadd.f32 %v5851_v42, %v11373_v26  ;;  %v11427_v45 = vadd.f32 %v5853_v13, %v11375_v1  ;;  %v5852_v36 = vmul.f32 %v5793_v49, %v5616_v21  ;;  %v5854_v62 = vmul.f32 %v5836_v29, %v5659_v56  ;;  %9032 = vmatpush3.bf16.msra.mxu0 %v9276_v25  ;;  %v9277_v49 = vld [vmem:[#allocation22 + $0x70] sm:$0xff]   ;;  %v9292_v25 = vld [vmem:[#allocation22 + $0x98] sm:$0xff]  }
 0x712   :  { %v5910_v11 = vpop.f32.mrf.mxu1  ;;  %v5953_v5 = vpop.f32.mrf.mxu0 }
 0x713   :  { %v11429_v39 = vadd.f32 %v5852_v36, %v5482_v4  ;;  %v11431_v44 = vadd.f32 %v5854_v62, %v5484_v51  ;;  %v9280_v62 = vld [vmem:[#allocation22 + $0xb0] sm:$0xff]  }
 0x714   :  { %v5912_v55 = vpop.f32.mrf.mxu1  ;;  %v5955_v19 = vpop.f32.mrf.mxu0 }
 0x716   :  { %v5914_v31 = vpop.f32.mrf.mxu1  ;;  %v5957_v10 = vpop.f32.mrf.mxu0 }
 0x718   :  { %v5916_v35 = vpop.f32.mrf.mxu1  ;;  %v5959_v8 = vpop.f32.mrf.mxu0 }
 0x71a   :  { %v5996_v15 = vpop.f32.mrf.mxu1  ;;  %v6039_v26 = vpop.f32.mrf.mxu0 }
 0x71c   :  { %v5998_v54 = vpop.f32.mrf.mxu1  ;;  %v6041_v38 = vpop.f32.mrf.mxu0 }
 0x71e   :  { %v6000_v1 = vpop.f32.mrf.mxu1  ;;  %v6043_v3 = vpop.f32.mrf.mxu0 }
 0x720   :  { %v6002_v21 = vpop.f32.mrf.mxu1  ;;  %v6045_v56 = vpop.f32.mrf.mxu0 }
 0x722   :  { %v6087_v60 = vpop.f32.mrf.mxu1  ;;  %v6130_v24 = vpop.f32.mrf.mxu0 }
 0x723   :  { %v6225_v22 = vmul.f32 %v6087_v60, %v5910_v11  ;;  %v6227_v18 = vmul.f32 %v6130_v24, %v5953_v5  ;;  %v9281_v60 = vld [vmem:[#allocation22 + $0x68] sm:$0xff]  }
 0x724   :  { %v6089_v6 = vpop.f32.mrf.mxu1  ;;  %v6132_v48 = vpop.f32.mrf.mxu0  ;;  %v9282_v24 = vld [vmem:[#allocation22 + $0xe8] sm:$0xff]  }
 0x725   :  { %v11434_v2 = vadd.f32 %v6225_v22, %v11380_v30  ;;  %v11437_v20 = vadd.f32 %v6227_v18, %v11383_v46  ;;  %v6226_v53 = vmul.f32 %v6089_v6, %v5912_v55  ;;  %v6228_v28 = vmul.f32 %v6132_v48, %v5955_v19  ;;  %v9275_v30 = vld [vmem:[#allocation22 + $0x38] sm:$0xff]   ;;  %v9286_v48 = vld [vmem:[#allocation22 + $0xe0] sm:$0xff]  }
 0x726   :  { %v6091_v63 = vpop.f32.mrf.mxu1  ;;  %v6134_v58 = vpop.f32.mrf.mxu0  ;;  %9010 = vmatpush3.bf16.msra.mxu1 %v9275_v30  ;;  %v9291_v30 = vld [vmem:[#allocation22 + $0x18] sm:$0xff]  }
 0x727   :  { %v11440_v9 = vadd.f32 %v6226_v53, %v11390_v50  ;;  %v11443_v17 = vadd.f32 %v6228_v28, %v11393_v57  ;;  %v6233_v27 = vmul.f32 %v6091_v63, %v5914_v31  ;;  %v6235_v61 = vmul.f32 %v6134_v58, %v5957_v10  ;;  %9011 = vmatprep.subr.bf16.mxu1 %v9277_v49  ;;  %v9289_v63 = vld [vmem:[#allocation22 + $0x58] sm:$0xff]  }
 0x728   :  { %v6093_v59 = vpop.f32.mrf.mxu1  ;;  %v6136_v46 = vpop.f32.mrf.mxu0  ;;  %v9290_v58 = vld [vmem:[#allocation22 + $0xd8] sm:$0xff]  }
 0x729   :  { %v11446_v34 = vadd.f32 %v6233_v27, %v11396_v14  ;;  %v11449_v40 = vadd.f32 %v6235_v61, %v11399_v23  ;;  %v6234_v33 = vmul.f32 %v6093_v59, %v5916_v35  ;;  %v6236_v50 = vmul.f32 %v6136_v46, %v5959_v8  ;;  %v9278_v14 = vld [vmem:[#allocation22 + $0xf0] sm:$0xff]  }
 0x72a   :  { %v6173_v12 = vpop.f32.mrf.mxu1  ;;  %v6216_v57 = vpop.f32.mrf.mxu0  ;;  %v9279_v23 = vld [vmem:[#allocation22 + $0x30] sm:$0xff]   ;;  %9033 = vmatprep.subr.bf16.mxu0 %v9278_v14 }
 0x72b   :  { %v11452_v42 = vadd.f32 %v6234_v33, %v11401_v7  ;;  %v11455_v13 = vadd.f32 %v6236_v50, %v11403_v37  ;;  %v6229_v4 = vmul.f32 %v6173_v12, %v5996_v15  ;;  %v6231_v51 = vmul.f32 %v6216_v57, %v6039_v26  ;;  %9012 = vmatpush3.bf16.msra.mxu1 %v9279_v23  ;;  %v9293_v33 = vld [vmem:[#allocation22 + $0x50] sm:$0xff]   ;;  %v9297_v23 = vld [vmem:[#allocation22 + $0x48] sm:$0xff]  }
 0x72c   :  { %v6175_v29 = vpop.f32.mrf.mxu1  ;;  %v6218_v36 = vpop.f32.mrf.mxu0  ;;  %9034 = vmatpush3.bf16.msra.mxu0 %v9280_v62  ;;  %9013 = vmatprep.subr.bf16.mxu1 %v9281_v60  ;;  %v9294_v50 = vld [vmem:[#allocation22 + $0xd0] sm:$0xff]   ;;  %v9298_v62 = vld [vmem:[#allocation22 + $0xc8] sm:$0xff]  }
 0x72d   :  { %v11458_v11 = vadd.f32 %v6229_v4, %v11408_v52  ;;  %v11461_v5 = vadd.f32 %v6231_v51, %v11411_v16  ;;  %v6230_v55 = vmul.f32 %v6175_v29, %v5998_v54  ;;  %v6232_v7 = vmul.f32 %v6218_v36, %v6041_v38  ;;  %9035 = vmatprep.subr.bf16.mxu0 %v9282_v24  ;;  %v9295_v4 = vld [vmem:[#allocation22 + $0x10] sm:$0xff]  }
 0x72e   :  { %v6177_v19 = vpop.f32.mrf.mxu1  ;;  %v6220_v37 = vpop.f32.mrf.mxu0  ;;  %v9296_v51 = vld [vmem:[#allocation22 + $0x90] sm:$0xff]  }
 0x72f   :  { %v11464_v31 = vadd.f32 %v6230_v55, %v11418_v47  ;;  %v11467_v10 = vadd.f32 %v6232_v7, %v11421_v32  ;;  %v6237_v35 = vmul.f32 %v6177_v19, %v6000_v1  ;;  %v6239_v8 = vmul.f32 %v6220_v37, %v6043_v3  ;;  %v9283_v3 = vld [vmem:[#allocation22 + $0x28] sm:$0xff]  }
 0x730   :  { %v6179_v52 = vpop.f32.mrf.mxu1  ;;  %v6222_v15 = vpop.f32.mrf.mxu0  ;;  %9014 = vmatpush3.bf16.msra.mxu1 %v9283_v3  ;;  %v9299_v19 = vld [vmem:[#allocation22 + $0x8] sm:$0xff]   ;;  %v9302_v3 = vld [vmem:[#allocation22 + $0xc0] sm:$0xff]  }
 0x731   :  { %v11470_v16 = vadd.f32 %v6237_v35, %v11424_v43  ;;  %v11473_v26 = vadd.f32 %v6239_v8, %v11427_v45  ;;  %v6238_v54 = vmul.f32 %v6179_v52, %v6002_v21  ;;  %v6240_v38 = vmul.f32 %v6222_v15, %v6045_v56  ;;  %v9284_v43 = vld [vmem:[#allocation22 + $0xa8] sm:$0xff]   ;;  %v9285_v56 = vld [vmem:[#allocation22 + $0x60] sm:$0xff]  }
 0x732   :  { %v6294_v47 = vpop.f32.mrf.mxu1  ;;  %v6337_v22 = vpop.f32.mrf.mxu0  ;;  %9036 = vmatpush3.bf16.msra.mxu0 %v9284_v43  ;;  %9015 = vmatprep.subr.bf16.mxu1 %v9285_v56  ;;  %v9300_v37 = vld [vmem:[#allocation22 + $0x88] sm:$0xff]  }
 0x733   :  { %v11476_v32 = vadd.f32 %v6238_v54, %v11429_v39  ;;  %v11479_v1 = vadd.f32 %v6240_v38, %v11431_v44  ;;  %v9287_v39 = vld [vmem:[#allocation22 + $0x20] sm:$0xff]   ;;  %9037 = vmatprep.subr.bf16.mxu0 %v9286_v48 }
 0x734   :  { %v6296_v18 = vpop.f32.mrf.mxu1  ;;  %v6339_v6 = vpop.f32.mrf.mxu0  ;;  %9016 = vmatpush3.bf16.msra.mxu1 %v9287_v39 }
 0x735   :  { %9017 = vmatprep.subr.bf16.mxu1 %v9289_v63  ;;  %v9305_v63 = vld [vmem:[#allocation22 + $0x178] sm:$0xff]  }
 0x736   :  { %v6298_v45 = vpop.f32.mrf.mxu1  ;;  %v6341_v21 = vpop.f32.mrf.mxu0  ;;  %9038 = vmatpush3.bf16.msra.mxu0 %v9288_v0 }
 0x737   :  { %9039 = vmatprep.subr.bf16.mxu0 %v9290_v58 }
 0x738   :  { %v11481_v53 = vpop.f32.mrf.mxu1  ;;  %v11483_v28 = vpop.f32.mrf.mxu0  ;;  %9018 = vmatpush3.bf16.msra.mxu1 %v9291_v30 }
 0x739   :  { %9019 = vmatprep.subr.bf16.mxu1 %v9293_v33 }
 0x73a   :  { %v11485_v44 = vpop.f32.mrf.mxu1  ;;  %v11487_v41 = vpop.f32.mrf.mxu0  ;;  %9040 = vmatpush3.bf16.msra.mxu0 %v9292_v25 }
 0x73b   :  { %9041 = vmatprep.subr.bf16.mxu0 %v9294_v50 }
 0x73c   :  { %v11489_v27 = vpop.f32.mrf.mxu1  ;;  %v11491_v61 = vpop.f32.mrf.mxu0  ;;  %9020 = vmatpush3.bf16.msra.mxu1 %v9295_v4 }
 0x73d   :  { %9021 = vmatprep.subr.bf16.mxu1 %v9297_v23 }
 0x73e   :  { %v11493_v59 = vpop.f32.mrf.mxu1  ;;  %v11495_v46 = vpop.f32.mrf.mxu0  ;;  %9042 = vmatpush3.bf16.msra.mxu0 %v9296_v51 }
 0x73f   :  { %9043 = vmatprep.subr.bf16.mxu0 %v9298_v62 }
 0x740   :  { %v11497_v12 = vpop.f32.mrf.mxu1  ;;  %v11499_v57 = vpop.f32.mrf.mxu0  ;;  %9022 = vmatpush3.bf16.msra.mxu1 %v9299_v19 }
 0x742   :  { %v6469_v49 = vpop.f32.mrf.mxu1  ;;  %v6512_v14 = vpop.f32.mrf.mxu0  ;;  %9044 = vmatpush3.bf16.msra.mxu0 %v9300_v37 }
 0x743   :  { %v6607_v29 = vmul.f32 %v6469_v49, %v6294_v47  ;;  %v6609_v36 = vmul.f32 %v6512_v14, %v6337_v22  ;;  %9045 = vmatprep.subr.bf16.mxu0 %v9302_v3 }
 0x744   :  { %v6471_v55 = vpop.f32.mrf.mxu1  ;;  %v6514_v7 = vpop.f32.mrf.mxu0 }
 0x745   :  { %v11502_v35 = vadd.f32 %v6607_v29, %v11434_v2  ;;  %v11505_v8 = vadd.f32 %v6609_v36, %v11437_v20  ;;  %v6608_v52 = vmul.f32 %v6471_v55, %v6296_v18  ;;  %v6610_v15 = vmul.f32 %v6514_v7, %v6339_v6  ;;  %v9301_v2 = vld [vmem:[#allocation22 + $0x40] sm:$0xff]  }
 0x746   :  { %v6473_v54 = vpop.f32.mrf.mxu1  ;;  %v6516_v38 = vpop.f32.mrf.mxu0  ;;  %v9303_v18 = vld [vmem:[#allocation22] sm:$0xff]   ;;  %9023 = vmatprep.subr.bf16.mxu1 %v9301_v2 }
 0x747   :  { %v11508_v60 = vadd.f32 %v6608_v52, %v11440_v9  ;;  %v11511_v24 = vadd.f32 %v6610_v15, %v11443_v17  ;;  %v6615_v47 = vmul.f32 %v6473_v54, %v6298_v45  ;;  %v6617_v22 = vmul.f32 %v6516_v38, %v6341_v21  ;;  %v9304_v6 = vld [vmem:[#allocation22 + $0x80] sm:$0xff]   ;;  %9024 = vmatpush3.bf16.msra.mxu1 %v9303_v18 }
 0x748   :  { %v6475_v20 = vpop.f32.mrf.mxu1  ;;  %v6518_v43 = vpop.f32.mrf.mxu0  ;;  %9046 = vmatpush3.bf16.msra.mxu0 %v9304_v6  ;;  %9053 = vmatprep.subr.bf16.mxu1 %v9305_v63 }
 0x749   :  { %v11514_v56 = vadd.f32 %v6615_v47, %v11446_v34  ;;  %v11517_v48 = vadd.f32 %v6617_v22, %v11449_v40  ;;  %v6616_v9 = vmul.f32 %v6475_v20, %v11481_v53  ;;  %v6618_v17 = vmul.f32 %v6518_v43, %v11483_v28  ;;  %v9306_v53 = vld [vmem:[#allocation22 + $0x1f8] sm:$0xff]  }
 0x74a   :  { %v6555_v45 = vpop.f32.mrf.mxu1  ;;  %v6598_v21 = vpop.f32.mrf.mxu0  ;;  %9075 = vmatprep.subr.bf16.mxu0 %v9306_v53 }
 0x74b   :  { %v11522_v39 = vadd.f32 %v6616_v9, %v11452_v42  ;;  %v11525_v0 = vadd.f32 %v6618_v17, %v11455_v13  ;;  %v6611_v34 = vmul.f32 %v6555_v45, %v11485_v44  ;;  %v6613_v40 = vmul.f32 %v6598_v21, %v11487_v41 }
 0x74c   :  { %v6557_v58 = vpop.f32.mrf.mxu1  ;;  %v6600_v28 = vpop.f32.mrf.mxu0 }
 0x74d   :  { %v11530_v30 = vadd.f32 %v6611_v34, %v11458_v11  ;;  %v11533_v25 = vadd.f32 %v6613_v40, %v11461_v5  ;;  %v6612_v42 = vmul.f32 %v6557_v58, %v11489_v27  ;;  %v6614_v13 = vmul.f32 %v6600_v28, %v11491_v61 }
 0x74e   :  { %v6559_v33 = vpop.f32.mrf.mxu1  ;;  %v6602_v44 = vpop.f32.mrf.mxu0 }
 0x74f   :  { %v11538_v41 = vadd.f32 %v6612_v42, %v11464_v31  ;;  %v11541_v50 = vadd.f32 %v6614_v13, %v11467_v10  ;;  %v6619_v11 = vmul.f32 %v6559_v33, %v11493_v59  ;;  %v6621_v4 = vmul.f32 %v6602_v44, %v11495_v46 }
 0x750   :  { %v6561_v5 = vpop.f32.mrf.mxu1  ;;  %v6604_v51 = vpop.f32.mrf.mxu0 }
 0x751   :  { %v11546_v27 = vadd.f32 %v6619_v11, %v11470_v16  ;;  %v11549_v61 = vadd.f32 %v6621_v4, %v11473_v26  ;;  %v6620_v49 = vmul.f32 %v6561_v5, %v11497_v12  ;;  %v6622_v31 = vmul.f32 %v6604_v51, %v11499_v57 }
 0x752   :  { %v6679_v14 = vpop.f32.mrf.mxu1  ;;  %v6722_v29 = vpop.f32.mrf.mxu0 }
 0x753   :  { %v11554_v10 = vadd.f32 %v6620_v49, %v11476_v32  ;;  %v11557_v59 = vadd.f32 %v6622_v31, %v11479_v1 }
 0x754   :  { %v6681_v46 = vpop.f32.mrf.mxu1  ;;  %v6724_v36 = vpop.f32.mrf.mxu0 }
 0x756   :  { %v6683_v23 = vpop.f32.mrf.mxu1  ;;  %v6726_v16 = vpop.f32.mrf.mxu0 }
 0x758   :  { %v6685_v62 = vpop.f32.mrf.mxu1  ;;  %v6728_v55 = vpop.f32.mrf.mxu0 }
 0x75a   :  { %v6765_v26 = vpop.f32.mrf.mxu1  ;;  %v6808_v7 = vpop.f32.mrf.mxu0 }
 0x75c   :  { %v6767_v19 = vpop.f32.mrf.mxu1  ;;  %v6810_v12 = vpop.f32.mrf.mxu0 }
 0x75e   :  { %v6769_v37 = vpop.f32.mrf.mxu1  ;;  %v6812_v57 = vpop.f32.mrf.mxu0 }
 0x760   :  { %v6771_v52 = vpop.f32.mrf.mxu1  ;;  %v6814_v15 = vpop.f32.mrf.mxu0 }
 0x762   :  { %v6857_v54 = vpop.f32.mrf.mxu1  ;;  %v6900_v32 = vpop.f32.mrf.mxu0 }
 0x763   :  { %v6995_v38 = vmul.f32 %v6857_v54, %v6679_v14  ;;  %v6997_v47 = vmul.f32 %v6900_v32, %v6722_v29 }
 0x764   :  { %v6859_v1 = vpop.f32.mrf.mxu1  ;;  %v6902_v22 = vpop.f32.mrf.mxu0 }
 0x765   :  { %v11560_v2 = vadd.f32 %v6995_v38, %v11502_v35  ;;  %v11563_v3 = vadd.f32 %v6997_v47, %v11505_v8  ;;  %v6996_v20 = vmul.f32 %v6859_v1, %v6681_v46  ;;  %v6998_v43 = vmul.f32 %v6902_v22, %v6724_v36 }
 0x766   :  { %v6861_v18 = vpop.f32.mrf.mxu1  ;;  %v6904_v6 = vpop.f32.mrf.mxu0 }
 0x767   :  { %v11566_v9 = vadd.f32 %v6996_v20, %v11508_v60  ;;  %v11569_v17 = vadd.f32 %v6998_v43, %v11511_v24  ;;  %v7003_v45 = vmul.f32 %v6861_v18, %v6683_v23  ;;  %v7005_v21 = vmul.f32 %v6904_v6, %v6726_v16 }
 0x768   :  { %v6863_v34 = vpop.f32.mrf.mxu1  ;;  %v6906_v40 = vpop.f32.mrf.mxu0 }
 0x769   :  { %v11572_v35 = vadd.f32 %v7003_v45, %v11514_v56  ;;  %v11575_v8 = vadd.f32 %v7005_v21, %v11517_v48  ;;  %v7004_v63 = vmul.f32 %v6863_v34, %v6685_v62  ;;  %v7006_v53 = vmul.f32 %v6906_v40, %v6728_v55 }
 0x76a   :  { %v6943_v58 = vpop.f32.mrf.mxu1  ;;  %v6986_v28 = vpop.f32.mrf.mxu0 }
 0x76b   :  { %v11578_v60 = vadd.f32 %v7004_v63, %v11522_v39  ;;  %v11581_v24 = vadd.f32 %v7006_v53, %v11525_v0  ;;  %v6999_v42 = vmul.f32 %v6943_v58, %v6765_v26  ;;  %v7001_v13 = vmul.f32 %v6986_v28, %v6808_v7 }
 0x76c   :  { %v6945_v33 = vpop.f32.mrf.mxu1  ;;  %v6988_v44 = vpop.f32.mrf.mxu0 }
 0x76d   :  { %v7015_v56 = vadd.f32 %v6999_v42, %v11530_v30  ;;  %v7017_v11 = vadd.f32 %v7001_v13, %v11533_v25  ;;  %v7000_v48 = vmul.f32 %v6945_v33, %v6767_v19  ;;  %v7002_v4 = vmul.f32 %v6988_v44, %v6810_v12 }
 0x76e   :  { %v6947_v5 = vpop.f32.mrf.mxu1  ;;  %v6990_v51 = vpop.f32.mrf.mxu0 }
 0x76f   :  { %v11586_v49 = vadd.f32 %v7000_v48, %v11538_v41  ;;  %v11589_v39 = vadd.f32 %v7002_v4, %v11541_v50  ;;  %v7007_v0 = vmul.f32 %v6947_v5, %v6769_v37  ;;  %v7009_v31 = vmul.f32 %v6990_v51, %v6812_v57 }
 0x770   :  { %v6949_v14 = vpop.f32.mrf.mxu1  ;;  %v6992_v29 = vpop.f32.mrf.mxu0 }
 0x771   :  { %v7023_v46 = vadd.f32 %v7007_v0, %v11546_v27  ;;  %v7025_v30 = vadd.f32 %v7009_v31, %v11549_v61  ;;  %v7008_v36 = vmul.f32 %v6949_v14, %v6771_v52  ;;  %v7010_v25 = vmul.f32 %v6992_v29, %v6814_v15 }
 0x772   :  { %v7066_v23 = vpop.f32.mrf.mxu1  ;;  %v7109_v16 = vpop.f32.mrf.mxu0 }
 0x773   :  { %v11594_v62 = vadd.f32 %v7008_v36, %v11554_v10  ;;  %v11597_v41 = vadd.f32 %v7010_v25, %v11557_v59 }
 0x774   :  { %v7068_v50 = vpop.f32.mrf.mxu1  ;;  %v7111_v55 = vpop.f32.mrf.mxu0 }
 0x775   :  { %11996 = vst [vmem:[#allocation73_spill] sm:$0xff] %v11594_v62  ;;  %11997 = vst [vmem:[#allocation76_spill] sm:$0xff] %v11597_v41  ;;  %v12003_v41 = vld [vmem:[#allocation33_spill] sm:$0xff] }
 0x776   :  { %v11599_v26 = vpop.f32.mrf.mxu1  ;;  %v11601_v7 = vpop.f32.mrf.mxu0 }
 0x778   :  { %v11603_v19 = vpop.f32.mrf.mxu1  ;;  %v11605_v27 = vpop.f32.mrf.mxu0 }
 0x77a   :  { %v7152_v61 = vpop.f32.mrf.mxu1  ;;  %v7195_v12 = vpop.f32.mrf.mxu0 }
 0x77c   :  { %v11607_v37 = vpop.f32.mrf.mxu1  ;;  %v11609_v57 = vpop.f32.mrf.mxu0 }
 0x77e   :  { %v7156_v10 = vpop.f32.mrf.mxu1  ;;  %v7199_v52 = vpop.f32.mrf.mxu0 }
 0x780   :  { %v11611_v59 = vpop.f32.mrf.mxu1  ;;  %v11613_v15 = vpop.f32.mrf.mxu0 }
 0x782   :  { %v7243_v54 = vpop.f32.mrf.mxu1  ;;  %v7286_v32 = vpop.f32.mrf.mxu0 }
 0x784   :  { %v7245_v38 = vpop.f32.mrf.mxu1  ;;  %v7288_v47 = vpop.f32.mrf.mxu0 }
 0x786   :  { %v7247_v1 = vpop.f32.mrf.mxu1  ;;  %v7290_v22 = vpop.f32.mrf.mxu0 }
 0x788   :  { %v7249_v20 = vpop.f32.mrf.mxu1  ;;  %v7292_v43 = vpop.f32.mrf.mxu0 }
 0x78a   :  { %v7329_v18 = vpop.f32.mrf.mxu1  ;;  %v7372_v6 = vpop.f32.mrf.mxu0 }
 0x78b   :  { %v7385_v45 = vmul.f32 %v7329_v18, %v7152_v61  ;;  %v7387_v21 = vmul.f32 %v7372_v6, %v7195_v12  ;;  %v7382_v18 = vmul.f32 %v7245_v38, %v7068_v50  ;;  %v7384_v6 = vmul.f32 %v7288_v47, %v7111_v55 }
 0x78c   :  { %v11615_v34 = vpop.f32.mrf.mxu1  ;;  %v11617_v40 = vpop.f32.mrf.mxu0 }
 0x78d   :  { %v11619_v63 = vadd.f32 %v7385_v45, %v7015_v56  ;;  %v11621_v53 = vadd.f32 %v7387_v21, %v7017_v11  ;;  %v11641_v45 = vld [vmem:[#allocation16] sm:$0xff]  ;;  %v7398_v55 = vadd.f32 %v7382_v18, %v11566_v9  ;;  %v7400_v38 = vadd.f32 %v7384_v6, %v11569_v17 }
 0x78e   :  { %v7333_v58 = vpop.f32.mrf.mxu1  ;;  %v7376_v28 = vpop.f32.mrf.mxu0 }
 0x78f   :  { %v7393_v42 = vmul.f32 %v7333_v58, %v7156_v10  ;;  %v7395_v13 = vmul.f32 %v7376_v28, %v7199_v52  ;;  %v7381_v10 = vmul.f32 %v7243_v54, %v7066_v23  ;;  %v7804_v23 = vrot.slane %v11641_v45, %v12003_v41  ;;  %v12004_v54 = vld [vmem:[#allocation32_spill] sm:$0xff] }
 0x790   :  { %v11623_v33 = vpop.f32.mrf.mxu1  ;;  %v11625_v44 = vpop.f32.mrf.mxu0  ;;  %v12007_v17 = vsub.s32 3, %v12004_v54 }
 0x791   :  { %v11627_v48 = vadd.f32 %v7393_v42, %v7023_v46  ;;  %v11629_v4 = vadd.f32 %v7395_v13, %v7025_v30  ;;  %v7383_v46 = vmul.f32 %v7286_v32, %v7109_v16  ;;  %v7397_v28 = vadd.f32 %v7381_v10, %v11560_v2 }
 0x792   :  { %v7452_v5 = vpop.f32.mrf.mxu1  ;;  %v7495_v51 = vpop.f32.mrf.mxu0  ;;  %v12005_v32 = vsub.s32 2, %v12004_v54  ;;  %v7391_v2 = vmul.f32 %v7290_v22, %v11601_v7  ;;  %v7392_v10 = vmul.f32 %v7292_v43, %v11605_v27  ;;  %v12008_v7 = vsub.s32 4, %v12004_v54 }
 0x793   :  { %11998 = vst [vmem:[#allocation69_spill] sm:$0xff] %v11627_v48  ;;  %11999 = vst [vmem:[#allocation71_spill] sm:$0xff] %v11629_v4  ;;  %v7399_v42 = vadd.f32 %v7383_v46, %v11563_v3  ;;  %v7390_v3 = vmul.f32 %v7249_v20, %v11603_v19  ;;  %v12009_v27 = vsub.s32 6, %v12004_v54 }
 0x794   :  { %v7454_v0 = vpop.f32.mrf.mxu1  ;;  %v7497_v31 = vpop.f32.mrf.mxu0  ;;  %v7812_v50 = vrot.slane %v11641_v45, %v12005_v32  ;;  %v11668_v19 = vrot.slane %v11641_v45, %v12008_v7 }
 0x795   :  { %v11673_v22 = vrot.slane %v11641_v45, %v12009_v27 }
 0x796   :  { %v7456_v56 = vpop.f32.mrf.mxu1  ;;  %v7499_v14 = vpop.f32.mrf.mxu0 }
 0x798   :  { %v7458_v11 = vpop.f32.mrf.mxu1  ;;  %v7501_v29 = vpop.f32.mrf.mxu0 }
 0x79a   :  { %v7538_v36 = vpop.f32.mrf.mxu1  ;;  %v11631_v25 = vpop.f32.mrf.mxu0 }
 0x79c   :  { %v11633_v61 = vpop.f32.mrf.mxu1  ;;  %v11635_v12 = vpop.f32.mrf.mxu0 }
 0x79e   :  { %v11637_v52 = vpop.f32.mrf.mxu1  ;;  %v11639_v30 = vpop.f32.mrf.mxu0 }
 0x79f   :  { %12000 = vst [vmem:[#allocation74_spill] sm:$0xff] %v11639_v30  ;;  %v12006_v30 = vld [vmem:[#allocation34_spill] sm:$0xff] }
 0x7a0   :  { %v11643_v21 = vpop.f32.mrf.mxu1  ;;  %v11645_v58 = vpop.f32.mrf.mxu0  ;;  %v7808_v9 = vrot.slane %v11641_v45, %v12006_v30  ;;  %v7407_v30 = vadd.f32 %v7391_v2, %v11575_v8 }
 0x7a1   :  { %12001 = vst [vmem:[#allocation77_spill] sm:$0xff] %v11643_v21  ;;  %12002 = vst [vmem:[#allocation78_spill] sm:$0xff] %v11645_v58  ;;  %v7389_v58 = vmul.f32 %v7247_v1, %v11599_v26 }
 0x7a2   :  { %v7629_v13 = vpop.f32.mrf.mxu1  ;;  %v7672_v16 = vpop.f32.mrf.mxu0 }
 0x7a3   :  { %v7767_v47 = vmul.f32 %v7629_v13, %v7452_v5  ;;  %v7769_v21 = vmul.f32 %v7672_v16, %v7495_v51  ;;  %v7816_v5 = vrot.slane %v11641_v45, %v12007_v17  ;;  %v7408_v13 = vadd.f32 %v7392_v10, %v11581_v24 }
 0x7a4   :  { %v7631_v41 = vpop.f32.mrf.mxu1  ;;  %v7674_v46 = vpop.f32.mrf.mxu0  ;;  %v7388_v24 = vmul.f32 %v11617_v40, %v11609_v57 }
 0x7a5   :  { %v7783_v4 = vadd.f32 %v7767_v47, %v7397_v28  ;;  %v7785_v62 = vadd.f32 %v7769_v21, %v7399_v42  ;;  %v7768_v48 = vmul.f32 %v7631_v41, %v7454_v0  ;;  %v7770_v32 = vmul.f32 %v7674_v46, %v7497_v31 }
 0x7a6   :  { %v7633_v26 = vpop.f32.mrf.mxu1  ;;  %v7676_v1 = vpop.f32.mrf.mxu0  ;;  %v7405_v31 = vadd.f32 %v7389_v58, %v11572_v35  ;;  %v7406_v42 = vadd.f32 %v7390_v3, %v11578_v60  ;;  %v7386_v60 = vmul.f32 %v11615_v34, %v11607_v37  ;;  %v12010_v34 = vsub.s32 5, %v12004_v54 }
 0x7a7   :  { %v11675_v20 = vadd.f32 %v7804_v23, %v7783_v4  ;;  %v11677_v43 = vadd.f32 %v7812_v50, %v7785_v62  ;;  %v7784_v51 = vadd.f32 %v7768_v48, %v7398_v55  ;;  %v7786_v0 = vadd.f32 %v7770_v32, %v7400_v38 }
 0x7a8   :  { %v7775_v18 = vmul.f32 %v7633_v26, %v7456_v56  ;;  %v7777_v6 = vmul.f32 %v7676_v1, %v7499_v14  ;;  %v7635_v21 = vpop.f32.mrf.mxu1  ;;  %v7678_v28 = vpop.f32.mrf.mxu0  ;;  %v7824_v40 = vrot.slane %v11641_v45, %v12010_v34 }
 0x7a9   :  { %v7873_v16 = vmul.f32 0.70710677, %v11675_v20  ;;  %v7875_v4 = vmul.f32 0.70710677, %v11677_v43  ;;  %v11685_v62 = vadd.f32 %v7808_v9, %v7784_v51  ;;  %v11687_v48 = vadd.f32 %v7816_v5, %v7786_v0 }
 0x7aa   :  { %v7791_v55 = vadd.f32 %v7775_v18, %v7405_v31  ;;  %v7793_v35 = vadd.f32 %v7777_v6, %v7407_v30  ;;  %v7715_v58 = vpop.f32.mrf.mxu1  ;;  %v7776_v8 = vmul.f32 %v7635_v21, %v7458_v11  ;;  %v7778_v56 = vmul.f32 %v7678_v28, %v7501_v29  ;;  %v12012_v6 = vld [vmem:[#allocation74_spill] sm:$0xff]  ;;  %v12013_v21 = vld [vmem:[#allocation69_spill] sm:$0xff] }
 0x7ab   :  { %9349 = verf.f32 %v7873_v16  ;;  %v7771_v14 = vmul.f32 %v7715_v58, %v7538_v36  ;;  %v7758_v38 = vpop.f32.mrf.mxu0  ;;  %v7874_v47 = vmul.f32 0.70710677, %v11685_v62  ;;  %v7876_v3 = vmul.f32 0.70710677, %v11687_v48  ;;  %v12015_v16 = vld [vmem:[#allocation71_spill] sm:$0xff] }
 0x7ac   :  { %9351 = verf.f32 %v7875_v4  ;;  %v7717_v2 = vpop.f32.mrf.mxu1  ;;  %v11695_v10 = vadd.f32 %v7804_v23, %v7791_v55  ;;  %v11697_v41 = vadd.f32 %v7812_v50, %v7793_v35  ;;  %v7792_v11 = vadd.f32 %v7776_v8, %v7406_v42  ;;  %v12014_v42 = vld [vmem:[#allocation73_spill] sm:$0xff]  ;;  %v12017_v35 = vld [vmem:[#allocation78_spill] sm:$0xff] }
 0x7ad   :  { %v7760_v29 = vpop.f32.mrf.mxu0  ;;  %9353 = verf.f32 %v7874_v47  ;;  %v7794_v36 = vadd.f32 %v7778_v56, %v7408_v13  ;;  %v7787_v46 = vadd.f32 %v7771_v14, %v11619_v63  ;;  %v7773_v37 = vmul.f32 %v7758_v38, %v11631_v25  ;;  %v12018_v56 = vld [vmem:[#allocation76_spill] sm:$0xff] }
 0x7ae   :  { %9355 = verf.f32 %v7876_v3  ;;  %v7881_v57 = vmul.f32 0.70710677, %v11695_v10  ;;  %v12011_v23 = vsub.s32 7, %v12004_v54  ;;  %v7883_v32 = vmul.f32 0.70710677, %v11697_v41  ;;  %v7719_v25 = vpop.f32.mrf.mxu1 }
 0x7af   :  { %v11709_v17 = vadd.f32 %v7808_v9, %v7792_v11  ;;  %v11711_v26 = vadd.f32 %v7816_v5, %v7794_v36  ;;  %v11714_v63 = vadd.f32 %v11668_v19, %v7787_v46  ;;  %v7762_v1 = vpop.f32.mrf.mxu0  ;;  %v7789_v7 = vadd.f32 %v7773_v37, %v11621_v53 }
 0x7b0   :  { %v7832_v50 = vrot.slane %v11641_v45, %v12011_v23  ;;  %9357 = verf.f32 %v7881_v57  ;;  %v7772_v27 = vmul.f32 %v7717_v2, %v11633_v61  ;;  %v7774_v54 = vmul.f32 %v7760_v29, %v11635_v12 }
 0x7b1   :  { %v7402_v45 = vadd.f32 %v7386_v60, %v11586_v49  ;;  %v7404_v51 = vadd.f32 %v7388_v24, %v11589_v39  ;;  %9359 = verf.f32 %v7883_v32  ;;  %v7882_v9 = vmul.f32 0.70710677, %v11709_v17  ;;  %v7721_v39 = vpop.f32.mrf.mxu1  ;;  %v7764_v30 = vpop.f32.mrf.mxu0 }
 0x7b2   :  { %v7394_v5 = vmul.f32 %v11623_v33, %v11611_v59  ;;  %v7396_v0 = vmul.f32 %v11625_v44, %v11613_v15  ;;  %v7884_v31 = vmul.f32 0.70710677, %v11711_v26  ;;  %v11728_v53 = vadd.f32 %v11673_v22, %v7789_v7 }
 0x7b3   :  { %9361 = verf.f32 %v7882_v9  ;;  %v7788_v61 = vadd.f32 %v7772_v27, %v7402_v45  ;;  %v7790_v12 = vadd.f32 %v7774_v54, %v7404_v51  ;;  %v7779_v49 = vmul.f32 %v7719_v25, %v11637_v52  ;;  %v12016_v52 = vld [vmem:[#allocation77_spill] sm:$0xff] }
 0x7b4   :  { %9363 = verf.f32 %v7884_v31  ;;  %v7877_v18 = vmul.f32 0.70710677, %v11714_v63  ;;  %v7781_v59 = vmul.f32 %v7762_v1, %v12012_v6  ;;  %v7879_v33 = vmul.f32 0.70710677, %v11728_v53 }
 0x7b5   :  { %v11734_v15 = vadd.f32 %v7824_v40, %v7788_v61  ;;  %v11736_v44 = vadd.f32 %v7832_v50, %v7790_v12  ;;  %v7795_v28 = vadd.f32 %v7779_v49, %v12013_v21  ;;  %v7410_v13 = vadd.f32 %v7394_v5, %v12014_v42 }
 0x7b6   :  { %v7797_v4 = vadd.f32 %v7781_v59, %v12015_v16  ;;  %v7780_v55 = vmul.f32 %v7721_v39, %v12016_v52  ;;  %v7782_v58 = vmul.f32 %v7764_v30, %v12017_v35  ;;  %v7412_v14 = vadd.f32 %v7396_v0, %v12018_v56  ;;  %v9308_v52 = vld [vmem:[#allocation22 + $0x1b8] sm:$0xff]   ;;  %v9310_v35 = vld [vmem:[#allocation22 + $0x1f0] sm:$0xff]  }
 0x7b7   :  { %v7878_v38 = vmul.f32 0.70710677, %v11734_v15  ;;  %v7880_v60 = vmul.f32 0.70710677, %v11736_v44  ;;  %9365 = verf.f32 %v7877_v18  ;;  %v11747_v47 = vadd.f32 %v11668_v19, %v7795_v28  ;;  %v9311_v56 = vld [vmem:[#allocation22 + $0x130] sm:$0xff]  }
 0x7b8   :  { %v9350_v8 = vpop.eup %9349  ;;  %v11750_v2 = vadd.f32 %v11673_v22, %v7797_v4  ;;  %v7796_v3 = vadd.f32 %v7780_v55, %v7410_v13  ;;  %9367 = verf.f32 %v7879_v33  ;;  %v7798_v11 = vadd.f32 %v7782_v58, %v7412_v14  ;;  %v9307_v13 = vld [vmem:[#allocation22 + $0x138] sm:$0xff]   ;;  %v9309_v55 = vld [vmem:[#allocation22 + $0x170] sm:$0xff]  }
 0x7b9   :  { %v9352_v24 = vpop.eup %9351  ;;  %9369 = verf.f32 %v7878_v38  ;;  %v7885_v36 = vmul.f32 0.70710677, %v11747_v47  ;;  %v7857_v34 = vmul.f32 0.5, %v11675_v20  ;;  %v7905_v19 = vadd.f32 1.0, %v9350_v8 }
 0x7ba   :  { %v9354_v29 = vpop.eup %9353  ;;  %9371 = verf.f32 %v7880_v60  ;;  %v7887_v37 = vmul.f32 0.70710677, %v11750_v2  ;;  %v11754_v57 = vadd.f32 %v7824_v40, %v7796_v3  ;;  %v11757_v23 = vadd.f32 %v7832_v50, %v7798_v11  ;;  %v9312_v3 = vld [vmem:[#allocation22 + $0x1b0] sm:$0xff]   ;;  %v9313_v11 = vld [vmem:[#allocation22 + $0x168] sm:$0xff]  }
 0x7bb   :  { %v9356_v46 = vpop.eup %9355  ;;  %9373 = verf.f32 %v7885_v36  ;;  %v7859_v32 = vmul.f32 0.5, %v11677_v43  ;;  %v7907_v25 = vadd.f32 1.0, %v9352_v24  ;;  %v7858_v27 = vmul.f32 0.5, %v11685_v62 }
 0x7bc   :  { %9375 = verf.f32 %v7887_v37  ;;  %v7886_v1 = vmul.f32 0.70710677, %v11754_v57  ;;  %v7865_v54 = vmul.f32 0.5, %v11695_v10  ;;  %v7888_v45 = vmul.f32 0.70710677, %v11757_v23 }
 0x7bd   :  { %v9358_v22 = vpop.eup %9357  ;;  %v7867_v20 = vmul.f32 0.5, %v11697_v41  ;;  %v7906_v50 = vadd.f32 1.0, %v9354_v29  ;;  %v7921_v5 = vmul.f32 %v7905_v19, %v7857_v34  ;;  %v7908_v0 = vadd.f32 1.0, %v9356_v46  ;;  %v9314_v34 = vld [vmem:[#allocation22 + $0x1e8] sm:$0xff]  }
 0x7be   :  { %v9360_v7 = vpop.eup %9359  ;;  %v7913_v40 = vadd.f32 1.0, %v9358_v22  ;;  %9377 = verf.f32 %v7886_v1  ;;  %v7923_v61 = vmul.f32 %v7907_v25, %v7859_v32  ;;  %v7866_v62 = vmul.f32 0.5, %v11709_v17 }
 0x7bf   :  { %v7915_v51 = vadd.f32 1.0, %v9360_v7  ;;  %9379 = verf.f32 %v7888_v45  ;;  %v7860_v10 = vmul.f32 0.5, %v11687_v48  ;;  %v7868_v30 = vmul.f32 0.5, %v11711_v26 }
 0x7c0   :  { %v9362_v9 = vpop.eup %9361  ;;  %v7929_v43 = vmul.f32 %v7913_v40, %v7865_v54  ;;  %v7922_v6 = vmul.f32 %v7906_v50, %v7858_v27  ;;  %v7861_v38 = vmul.f32 0.5, %v11714_v63  ;;  %v7869_v60 = vmul.f32 0.5, %v11747_v47  ;;  %v9315_v27 = vld [vmem:[#allocation22 + $0x128] sm:$0xff]  }
 0x7c1   :  { %v9364_v31 = vpop.eup %9363  ;;  %v7931_v12 = vmul.f32 %v7915_v51, %v7867_v20  ;;  %v7914_v49 = vadd.f32 1.0, %v9362_v9  ;;  %v7924_v33 = vmul.f32 %v7908_v0, %v7860_v10  ;;  %v7863_v29 = vmul.f32 0.5, %v11728_v53  ;;  %v9316_v20 = vld [vmem:[#allocation22 + $0x1a8] sm:$0xff]   ;;  %v9317_v51 = vld [vmem:[#allocation22 + $0x160] sm:$0xff]   ;;  %v9324_v10 = vld [vmem:[#allocation22 + $0x198] sm:$0xff]  }
 0x7c2   :  { %v7937_v39 = vpack.c.bf16 %v7929_v43, %v7921_v5  ;;  %v7916_v41 = vadd.f32 1.0, %v9364_v31  ;;  %v7871_v36 = vmul.f32 0.5, %v11750_v2  ;;  %v7862_v63 = vmul.f32 0.5, %v11734_v15  ;;  %v9318_v5 = vld [vmem:[#allocation22 + $0x1e0] sm:$0xff]  }
 0x7c3   :  { %v7939_v18 = vpack.c.bf16 %v7931_v12, %v7923_v61  ;;  %v7930_v59 = vmul.f32 %v7914_v49, %v7866_v62  ;;  %v7870_v53 = vmul.f32 0.5, %v11754_v57  ;;  %v7864_v54 = vmul.f32 0.5, %v11736_v44  ;;  %v9319_v31 = vld [vmem:[#allocation22 + $0x120] sm:$0xff]   ;;  %v9321_v12 = vld [vmem:[#allocation22 + $0x158] sm:$0xff]  }
 0x7c4   :  { %v7932_v21 = vmul.f32 %v7916_v41, %v7868_v30  ;;  %v9366_v28 = vpop.eup %9365  ;;  %v7872_v15 = vmul.f32 0.5, %v11757_v23  ;;  %v9320_v23 = vld [vmem:[#allocation22 + $0x1a0] sm:$0xff]   ;;  %v9322_v62 = vld [vmem:[#allocation22 + $0x1d8] sm:$0xff]   ;;  %v9326_v30 = vld [vmem:[#allocation22 + $0x1d0] sm:$0xff]  }
 0x7c5   :  { %v7938_v42 = vpack.c.bf16 %v7930_v59, %v7922_v6  ;;  %v9368_v16 = vpop.eup %9367  ;;  %v7909_v58 = vadd.f32 1.0, %v9366_v28  ;;  %v9323_v49 = vld [vmem:[#allocation22 + $0x118] sm:$0xff]   ;;  %v9327_v41 = vld [vmem:[#allocation22 + $0x110] sm:$0xff]   ;;  %v9329_v6 = vld [vmem:[#allocation22 + $0x148] sm:$0xff]  }
 0x7c6   :  { %v7940_v4 = vpack.c.bf16 %v7932_v21, %v7924_v33  ;;  %v9370_v17 = vpop.eup %9369  ;;  %v7911_v8 = vadd.f32 1.0, %v9368_v16  ;;  %v9330_v59 = vld [vmem:[#allocation22 + $0x1c8] sm:$0xff]   ;;  %v9333_v28 = vld [vmem:[#allocation22 + $0x140] sm:$0xff]  }
 0x7c7   :  { %8496 = vmatprep.mubr.bf16.mxu1 %v7938_v42  ;;  %v9372_v48 = vpop.eup %9371  ;;  %v7910_v37 = vadd.f32 1.0, %v9370_v17  ;;  %v11772_v22 = vmul.f32 %v7909_v58, %v7861_v38  ;;  %v9331_v33 = vld [vmem:[#allocation22 + $0x108] sm:$0xff]   ;;  %v9334_v42 = vld [vmem:[#allocation22 + $0x1c0] sm:$0xff]  }
 0x7c8   :  { %8537 = vmatprep.mubr.bf16.mxu0 %v7940_v4  ;;  %8497 = vmatmul.mubr.bf16.vlgmr.msra.gmra.mxu1 %v7937_v39  ;;  %v9374_v26 = vpop.eup %9373  ;;  %v7912_v47 = vadd.f32 1.0, %v9372_v48  ;;  %v11777_v1 = vmul.f32 %v7911_v8, %v7863_v29  ;;  %v9325_v39 = vld [vmem:[#allocation22 + $0x150] sm:$0xff]   ;;  %v9332_v21 = vld [vmem:[#allocation22 + $0x188] sm:$0xff]   ;;  %v9336_v16 = vld [vmem:[#allocation22 + $0x180] sm:$0xff]  }
 0x7c9   :  { %8538 = vmatmul.mubr.bf16.vlgmr.msra.gmra.mxu0 %v7939_v18  ;;  %9054 = vmatpush3.bf16.msra.mxu1 %v9307_v13  ;;  %v9376_v14 = vpop.eup %9375  ;;  %v7917_v24 = vadd.f32 1.0, %v9374_v26  ;;  %v7926_v9 = vmul.f32 %v7910_v37, %v7862_v63  ;;  %v9328_v18 = vld [vmem:[#allocation22 + $0x190] sm:$0xff]   ;;  %v9335_v13 = vld [vmem:[#allocation22 + $0x100] sm:$0xff]  }
 0x7ca   :  { %9076 = vmatpush3.bf16.msra.mxu0 %v9308_v52  ;;  %9055 = vmatprep.subr.bf16.mxu1 %v9309_v55  ;;  %v7919_v46 = vadd.f32 1.0, %v9376_v14  ;;  %v7928_v43 = vmul.f32 %v7912_v47, %v7864_v54  ;;  %v8938_v26 = vld [vmem:[%s11812_s15] ss:$0 sm:$0xff]  ;;  %s9714_s15 = smov [#allocation23]  }
 0x7cb   :  { %9077 = vmatprep.subr.bf16.mxu0 %v9310_v35  ;;  %v9378_v19 = vpop.eup %9377  ;;  %v11775_v32 = vmul.f32 %v7917_v24, %v7869_v60  ;;  %s8635_s29 = sshll.u32 %s9714_s15, 4  ;;  %s8636_s29 = int_to_ptr.vmem [resolvable:$true] %s8635_s29 }
 0x7cc   :  { %v9380_v25 = vpop.eup %9379  ;;  %v11779_v7 = vmul.f32 %v7919_v46, %v7871_v36  ;;  %v7918_v2 = vadd.f32 1.0, %v9378_v19  ;;  %s9645_s8 = scalar_lea.vmem %s8636_s29, 256  ;;  %p9650_p10 = scmp.lt.s32.totalorder %s8636_s29, %s8636_s29 }
 0x7cd   :  { %9056 = vmatpush3.bf16.msra.mxu1 %v9311_v56  ;;  %v7941_v40 = vpack.c.bf16 %v11775_v32, %v11772_v22  ;;  %v7920_v45 = vadd.f32 1.0, %v9380_v25  ;;  %p9646_p9 = scmp.ne.s32.totalorder %s8636_s29, %s9645_s8  ;;  %p9651_p11 = scmp.lt.s32.totalorder %s9645_s8, %s9645_s8 }
 0x7ce   :  { %9078 = vmatpush3.bf16.msra.mxu0 %v9312_v3  ;;  %9057 = vmatprep.subr.bf16.mxu1 %v9313_v11  ;;  %v7943_v50 = vpack.c.bf16 %v11779_v7, %v11777_v1  ;;  %v7934_v57 = vmul.f32 %v7918_v2, %v7870_v53 }
 0x7cf   :  { %9079 = vmatprep.subr.bf16.mxu0 %v9314_v34  ;;  %v7936_v0 = vmul.f32 %v7920_v45, %v7872_v15  ;;  %p9652_p12 = por %p9651_p11, %p9650_p10 }
 0x7d0   :  { %v7942_v44 = vpack.c.bf16 %v7934_v57, %v7926_v9 }
 0x7d1   :  { %9058 = vmatpush3.bf16.msra.mxu1 %v9315_v27  ;;  %v7944_v61 = vpack.c.bf16 %v7936_v0, %v7928_v43  ;;  %p9653_p13 = pnand %p9652_p12, %p9646_p9 }
 0x7d2   :  { %9080 = vmatpush3.bf16.msra.mxu0 %v9316_v20  ;;  %9059 = vmatprep.subr.bf16.mxu1 %v9317_v51 }
 0x7d3   :  { %8578 = vmatprep.mubr.bf16.mxu1 %v7942_v44  ;;  %9081 = vmatprep.subr.bf16.mxu0 %v9318_v5 }
 0x7d4   :  { %8619 = vmatprep.mubr.bf16.mxu0 %v7944_v61 }
 0x7d5   :  { %9060 = vmatpush3.bf16.msra.mxu1 %v9319_v31 }
 0x7d6   :  { %9082 = vmatpush3.bf16.msra.mxu0 %v9320_v23  ;;  %9061 = vmatprep.subr.bf16.mxu1 %v9321_v12 }
 0x7d7   :  { %9083 = vmatprep.subr.bf16.mxu0 %v9322_v62 }
 0x7d9   :  { %9062 = vmatpush3.bf16.msra.mxu1 %v9323_v49 }
 0x7da   :  { %9084 = vmatpush3.bf16.msra.mxu0 %v9324_v10  ;;  %9063 = vmatprep.subr.bf16.mxu1 %v9325_v39 }
 0x7db   :  { %9085 = vmatprep.subr.bf16.mxu0 %v9326_v30 }
 0x7dd   :  { %9064 = vmatpush3.bf16.msra.mxu1 %v9327_v41 }
 0x7de   :  { %9086 = vmatpush3.bf16.msra.mxu0 %v9328_v18  ;;  %9065 = vmatprep.subr.bf16.mxu1 %v9329_v6 }
 0x7df   :  { %9087 = vmatprep.subr.bf16.mxu0 %v9330_v59 }
 0x7e1   :  { %9066 = vmatpush3.bf16.msra.mxu1 %v9331_v33 }
 0x7e2   :  { %9088 = vmatpush3.bf16.msra.mxu0 %v9332_v21  ;;  %9067 = vmatprep.subr.bf16.mxu1 %v9333_v28 }
 0x7e3   :  { %9089 = vmatprep.subr.bf16.mxu0 %v9334_v42 }
 0x7e5   :  { %9068 = vmatpush3.bf16.msra.mxu1 %v9335_v13 }
 0x7e6   :  { %9090 = vmatpush3.bf16.msra.mxu0 %v9336_v16 }
 0x7e8   :  { %8579 = vmatmul.mubr.bf16.vlgmr.msra.gmra.mxu1 %v7941_v40 }
 0x7e9   :  { %8620 = vmatmul.mubr.bf16.vlgmr.msra.gmra.mxu0 %v7943_v50 }
 0x888   :  { %v9025_v4 = vpop.f32.mrf.mxu1 }
 0x889   :  { %v9047_v52 = vpop.f32.mrf.mxu0 }
 0x88a   :  { %v9026_v55 = vpop.f32.mrf.mxu1 }
 0x88b   :  { %v9048_v17 = vpop.f32.mrf.mxu0  ;;  %v9027_v48 = vadd.f32 %v9026_v55, %v9025_v4 }
 0x88c   :  { %v9028_v35 = vpop.f32.mrf.mxu1  ;;  %v9049_v24 = vadd.f32 %v9048_v17, %v9047_v52 }
 0x88d   :  { %v9050_v58 = vpop.f32.mrf.mxu0  ;;  %v8499_v56 = vadd.f32 %v9027_v48, %v8938_v26 }
 0x88e   :  { %v9029_v8 = vpop.f32.mrf.mxu1 }
 0x88f   :  { %v9030_v14 = vadd.f32 %v9029_v8, %v9028_v35  ;;  %v9051_v38 = vpop.f32.mrf.mxu0  ;;  %v8540_v29 = vadd.f32 %v9049_v24, %v8499_v56 }
 0x890   :  { %v9052_v19 = vadd.f32 %v9051_v38, %v9050_v58 }
 0x891   :  { %v8502_v36 = vadd.f32 %v9030_v14, %v8938_v26 }
 0x893   :  { %v8543_v25 = vadd.f32 %v9052_v19, %v8502_v36 }
 0x8a8   :  { %v9069_v60 = vpop.f32.mrf.mxu1 }
 0x8a9   :  { %v9091_v3 = vpop.f32.mrf.mxu0 }
 0x8aa   :  { %v9070_v11 = vpop.f32.mrf.mxu1 }
 0x8ab   :  { %v9071_v46 = vadd.f32 %v9070_v11, %v9069_v60  ;;  %v9092_v37 = vpop.f32.mrf.mxu0 }
 0x8ac   :  { %v9072_v34 = vpop.f32.mrf.mxu1  ;;  %v9093_v63 = vadd.f32 %v9092_v37, %v9091_v3 }
 0x8ad   :  { %v8581_v22 = vadd.f32 %v9071_v46, %v8540_v29  ;;  %v9094_v32 = vpop.f32.mrf.mxu0 }
 0x8ae   :  { %v9073_v47 = vpop.f32.mrf.mxu1 }
 0x8af   :  { %v8622_v1 = vadd.f32 %v9093_v63, %v8581_v22  ;;  %v9074_v7 = vadd.f32 %v9073_v47, %v9072_v34  ;;  %v9095_v53 = vpop.f32.mrf.mxu0 }
 0x8b0   :  { %v9096_v27 = vadd.f32 %v9095_v53, %v9094_v32 }
 0x8b1   :  { %8628 = vst [vmem:[#allocation23] sm:$0xff] %v8622_v1  ;;  %v8584_v2 = vadd.f32 %v9074_v7, %v8543_v25 }
 0x8b3   :  { %v8625_v54 = vadd.f32 %v9096_v27, %v8584_v2 }
 0x8b5   :  { %8629 = vst [vmem:[#allocation23 + $0x8] sm:$0xff] %v8625_v54 }
 0x8b6   :  { %9656 = shalt.err (!%p9653_p13)
}
 0x8b7   :  { %8641 = dma.vmem_to_hbm [thread:$0]  %s8636_s29, 256, %s11813_s16, [#allocation4], %s9683_s26, %s9683_s26, %s9684_s27  }
 0x8b8   :  { %9679 = dma.done.wait [#allocation4], 256  }
 0x8b9   :  { %9680 = vsyncadd [#allocation4], 4294967040 }
 0x8ba   :  { %8645 = vsyncpa [#allocation3], 1 }
 0x8bb   :  { %8646 = vsyncpa [#allocation6], 1 }
 0x8bc   :  { %8647 = vsyncpa [#allocation9], 1 }
 0x8bd   :  { %8648 = vsyncpa [#allocation12], 1 }
 0x8be   :  { %8649 = vsyncpa [#allocation15], 1 }
 0x8bf   :  { %8650 = vsyncpa [#allocation18], 1 }
 0x8c0   :  { %8651 = vsyncpa [#allocation21], 1 }
 0x8c1   :  { %8652 = vsyncpa [#allocation4], 1 }

</bundles_post_ra>
